<compile_context>
chip_gen: v5e
topology: v5e:2x2
jax: 0.10.0
libtpu: 0.0.40
codegen_flags: <defaults>
</compile_context>

<pallas_src>
import functools
import math

import numpy as np
import jax
import jax.numpy as jnp
from jax import lax
from jax.experimental import pallas as pl
from jax.experimental.pallas import tpu as pltpu

LN2D_EPS = 1e-6   # timm LayerNorm2d default (Downsample2d norms)
LN_EPS = 1e-5     # nn.LayerNorm default (transformer block norms)

MXU_DTYPE = jnp.bfloat16   # matmul operand dtype (accumulation stays float32)
ACT_DTYPE = jnp.bfloat16   # inter-kernel activation storage dtype


def _gelu(x):
    # tanh-approx GELU -> EUP-backed (deviation from exact erf GELU < ~1e-3)
    c = 0.7978845608028654  # sqrt(2/pi)
    return 0.5 * x * (1.0 + jnp.tanh(c * (x + 0.044715 * x * x * x)))


def _sigmoid(x):
    return 0.5 * (jnp.tanh(0.5 * x) + 1.0)


# ---------------------------------------------------------------------------
# Pallas kernels
# ---------------------------------------------------------------------------
def _mlp_block_kernel(x_ref, g_ref, b_ref, w1_ref, b1_ref, w2_ref, b2_ref,
                      o_ref, *, eps):
    # fused: y = x + fc2(gelu(fc1(layernorm(x))))
    x = x_ref[...].astype(jnp.float32)
    mu = jnp.mean(x, axis=-1, keepdims=True)
    xc = x - mu
    var = jnp.mean(xc * xc, axis=-1, keepdims=True)
    y = xc * lax.rsqrt(var + eps) * g_ref[...] + b_ref[...]
    h = _gelu(jnp.dot(y.astype(MXU_DTYPE), w1_ref[...],
                      preferred_element_type=jnp.float32) + b1_ref[...])
    out = x + jnp.dot(h.astype(MXU_DTYPE), w2_ref[...],
                      preferred_element_type=jnp.float32) + b2_ref[...]
    o_ref[...] = out.astype(o_ref.dtype)


def _make_mbconv_kernel(apply_ln, eps=LN2D_EPS):
    # fused: [LayerNorm ->] dw3x3 -> GELU -> SE -> pw1x1 -> +residual
    # x: (1, H, W, C) unpadded; the zero-padded copy lives only in VMEM scratch.
    def kernel(x_ref, g_ref, b_ref, dw_ref, sw1_ref, sw2_ref, pw_ref,
               o_ref, pad_ref):
        _, H, W, C = x_ref.shape
        x = x_ref[0].astype(jnp.float32)
        if apply_ln:
            mu = jnp.mean(x, axis=-1, keepdims=True)
            xc = x - mu
            var = jnp.mean(xc * xc, axis=-1, keepdims=True)
            y = xc * lax.rsqrt(var + eps) * g_ref[...] + b_ref[...]
        else:
            y = x
        # zero-padded copy of y in VMEM (replaces an XLA pad + duplicate input DMA)
        pad_ref[...] = jnp.zeros_like(pad_ref)
        pad_ref[1:H + 1, 1:W + 1, :] = y
        yp = pad_ref[...]

        dw = dw_ref[...].astype(jnp.float32)                     # (9, C)
        acc = jnp.zeros((H, W, C), jnp.float32)
        for di in range(3):                                      # depthwise 3x3, s1, p1
            for dj in range(3):
                acc = acc + yp[di:di + H, dj:dj + W, :] * dw[di * 3 + dj].reshape(1, 1, C)
        h = _gelu(acc)
        h2 = h.reshape(H * W, C)
        hm = jnp.mean(h2, axis=0, keepdims=True)                 # (1, C)  SE squeeze
        s = _gelu(jnp.dot(hm.astype(MXU_DTYPE), sw1_ref[...],
                          preferred_element_type=jnp.float32))
        gate = _sigmoid(jnp.dot(s.astype(MXU_DTYPE), sw2_ref[...],
                                preferred_element_type=jnp.float32))
        h2 = h2 * gate
        out = jnp.dot(h2.astype(MXU_DTYPE), pw_ref[...],
                      preferred_element_type=jnp.float32)
        o_ref[0] = (out.reshape(H, W, C) + y).astype(o_ref.dtype)
    return kernel


def _conv3x3s2_ln_kernel(ph_ref, w_ref, g_ref, b_ref, o_ref, *, eps):
    # ph: (1, 4*Hh, Wh, Cin) phase-split padded input, phase p = 2*(row%2)+(col%2)
    #     lives in rows [p*Hh, (p+1)*Hh); every conv tap is a CONTIGUOUS slice.
    # w : (9*Cin, Cout)  single deep-K matmul; LayerNorm (norm2) fused epilogue.
    _, Ho, Wo, Cout = o_ref.shape
    Cin = ph_ref.shape[-1]
    Hh = ph_ref.shape[1] // 4
    ph = ph_ref[0]
    taps = []
    for ki in range(3):
        for kj in range(3):
            p = (ki % 2) * 2 + (kj % 2)
            r0 = p * Hh + ki // 2
            c0 = kj // 2
            taps.append(ph[r0:r0 + Ho, c0:c0 + Wo, :])            # (Ho, Wo, Cin)
    patches = jnp.concatenate(taps, axis=-1).reshape(Ho * Wo, 9 * Cin)
    acc = jnp.dot(patches.astype(MXU_DTYPE), w_ref[...],
                  preferred_element_type=jnp.float32)             # (Ho*Wo, Cout)
    mu = jnp.mean(acc, axis=-1, keepdims=True)
    xc = acc - mu
    var = jnp.mean(xc * xc, axis=-1, keepdims=True)
    y = xc * lax.rsqrt(var + eps) * g_ref[...] + b_ref[...]
    o_ref[0] = y.reshape(Ho, Wo, Cout).astype(o_ref.dtype)


def _maxpool3x3s2_kernel(ph_ref, o_ref):
    # phase-split (-inf)-padded input -> compute only the stride-2 outputs
    _, Ho, Wo, C = o_ref.shape
    Hh = ph_ref.shape[1] // 4
    ph = ph_ref[0]
    m = None
    for ki in range(3):
        for kj in range(3):
            p = (ki % 2) * 2 + (kj % 2)
            r0 = p * Hh + ki // 2
            c0 = kj // 2
            tap = ph[r0:r0 + Ho, c0:c0 + Wo, :]
            m = tap if m is None else jnp.maximum(m, tap)
    o_ref[0] = m.astype(o_ref.dtype)


def _make_attn_block_kernel(num_heads, scale, use_global, batch_g, eps=LN_EPS):
    # fused: out = x_win + proj( MHA_relbias( LN(x_win), q_global ) )
    def kernel(*refs):
        if use_global:
            (xw_ref, qg_ref, g1_ref, b1_ref, wqkv_ref, bqkv_ref,
             bias_ref, wp_ref, bp_ref, o_ref) = refs
        else:
            (xw_ref, g1_ref, b1_ref, wqkv_ref, bqkv_ref,
             bias_ref, wp_ref, bp_ref, o_ref) = refs
        G, N, C = xw_ref.shape
        hd = C // num_heads

        x = xw_ref[...].astype(jnp.float32)                      # (G, N, C)
        mu = jnp.mean(x, axis=-1, keepdims=True)
        xc = x - mu
        var = jnp.mean(xc * xc, axis=-1, keepdims=True)
        y = xc * lax.rsqrt(var + eps) * g1_ref[...] + b1_ref[...]
        y2 = y.reshape(G * N, C)

        qkv = jnp.dot(y2.astype(MXU_DTYPE), wqkv_ref[...],
                      preferred_element_type=jnp.float32) + bqkv_ref[...]

        if use_global:
            # torch: q = q_global.repeat(BW // Bg, 1, 1, 1)  =>  q[w] = q_global[w % Bg]
            # G is a multiple of Bg and every group base is a multiple of Bg, so
            # the gather is a static tile of q_global (free broadcast, no dynamic
            # loads / stack).
            qg = qg_ref[...].astype(jnp.float32)                  # (Bg, N, C)
            if G == batch_g:
                q_all = qg
            else:
                q_all = jnp.broadcast_to(
                    qg[None], (G // batch_g, batch_g, N, C)).reshape(G, N, C)
            k_off, v_off = 0, C
        else:
            q_all = qkv[:, :C].reshape(G, N, C)
            k_off, v_off = C, 2 * C

        heads = []
        for h in range(num_heads):
            lo = h * hd
            q_h = q_all[:, :, lo:lo + hd] * scale                 # (G, N, hd)
            k_h = qkv[:, k_off + lo:k_off + lo + hd].reshape(G, N, hd)
            v_h = qkv[:, v_off + lo:v_off + lo + hd].reshape(G, N, hd)
            attn = jnp.einsum('gnd,gmd->gnm',
                              q_h.astype(MXU_DTYPE), k_h.astype(MXU_DTYPE),
                              preferred_element_type=jnp.float32)
            attn = attn + bias_ref[h][None].astype(jnp.float32)   # rel-pos bias
            attn = attn - jnp.max(attn, axis=-1, keepdims=True)
            attn = jnp.exp(attn)
            attn = attn * pl.reciprocal(jnp.sum(attn, axis=-1, keepdims=True),
                                        approx=True)
            heads.append(jnp.einsum('gnm,gmd->gnd',
                                    attn.astype(MXU_DTYPE), v_h.astype(MXU_DTYPE),
                                    preferred_element_type=jnp.float32))
        out = jnp.concatenate(heads, axis=-1).reshape(G * N, C)
        out = jnp.dot(out.astype(MXU_DTYPE), wp_ref[...],
                      preferred_element_type=jnp.float32) + bp_ref[...]
        o_ref[...] = (x + out.reshape(G, N, C)).astype(o_ref.dtype)

    return kernel


# ---------------------------------------------------------------------------
# wrappers (pallas_call plumbing)
# ---------------------------------------------------------------------------
def _pick_row_tile(M, bytes_per_row, target_bytes=2 << 20, min_steps=4):
    # biggest multiple-of-8 divisor of M that stays under ~target_bytes per tile
    # while keeping >= min_steps grid steps (pipelining / dual-TC sharding).
    cap = max(8, min(M, target_bytes // max(bytes_per_row, 1)))
    cap = max(8, (cap // 8) * 8)
    for t in range(cap, 7, -8):
        if M % t == 0 and M // t >= min_steps:
            return t
    for t in range(cap, 7, -8):
        if M % t == 0:
            return t
    return min(M, cap)


def _pick_group(BW, Bg, N, C, min_steps=8, target_bytes=1 << 20):
    # windows-per-grid-step G: multiple of Bg (so the q_global tile is static),
    # divides BW, keeps >= min_steps grid steps when the window count allows.
    nw = BW // Bg
    unit_bytes = Bg * N * C * 2            # one Bg-sized chunk of windows, bf16
    cap = max(1, target_bytes // max(unit_bytes, 1))
    best = 1
    for g2 in range(1, nw + 1):
        if nw % g2 == 0 and g2 <= cap and (nw // g2) >= min_steps:
            best = g2
    return Bg * best


def mlp_block(x2d, p, eps=LN_EPS, out_dtype=ACT_DTYPE):
    M, C = x2d.shape
    hidden = p['mlp_w1'].shape[1]
    tm = _pick_row_tile(M, bytes_per_row=4 * (C + hidden))
    return pl.pallas_call(
        functools.partial(_mlp_block_kernel, eps=eps),
        out_shape=jax.ShapeDtypeStruct((M, C), out_dtype),
        grid=(pl.cdiv(M, tm),),
        in_specs=[pl.BlockSpec((tm, C), lambda i: (i, 0)),
                  pl.BlockSpec((1, C), lambda i: (0, 0)),
                  pl.BlockSpec((1, C), lambda i: (0, 0)),
                  pl.BlockSpec((C, hidden), lambda i: (0, 0)),
                  pl.BlockSpec((1, hidden), lambda i: (0, 0)),
                  pl.BlockSpec((hidden, C), lambda i: (0, 0)),
                  pl.BlockSpec((1, C), lambda i: (0, 0))],
        out_specs=pl.BlockSpec((tm, C), lambda i: (i, 0)),
        compiler_params=pltpu.CompilerParams(dimension_semantics=("parallel",)),
    )(x2d, p['norm2_g'].reshape(1, C), p['norm2_b'].reshape(1, C),
      p['mlp_w1'], p['mlp_b1'].reshape(1, hidden),
      p['mlp_w2'], p['mlp_b2'].reshape(1, C))


def mbconv(x, p, ln=None, out_dtype=ACT_DTYPE):
    # TODO(synk): grid is (B,) only — the SE global pooling ties each grid step
    # to a full (H, W) slab, so spatial row-tiling would need a two-pass kernel.
    B, H, W, C = x.shape
    rd = p['se_w1'].shape[1]
    apply_ln = ln is not None
    if apply_ln:
        gamma, beta = ln
    else:
        gamma = jnp.ones((C,), jnp.float32)
        beta = jnp.zeros((C,), jnp.float32)
    kernel = _make_mbconv_kernel(apply_ln)
    return pl.pallas_call(
        kernel,
        out_shape=jax.ShapeDtypeStruct((B, H, W, C), out_dtype),
        grid=(B,),
        in_specs=[pl.BlockSpec((1, H, W, C), lambda b: (b, 0, 0, 0)),
                  pl.BlockSpec((1, C), lambda b: (0, 0)),
                  pl.BlockSpec((1, C), lambda b: (0, 0)),
                  pl.BlockSpec((9, C), lambda b: (0, 0)),
                  pl.BlockSpec((C, rd), lambda b: (0, 0)),
                  pl.BlockSpec((rd, C), lambda b: (0, 0)),
                  pl.BlockSpec((C, C), lambda b: (0, 0))],
        out_specs=pl.BlockSpec((1, H, W, C), lambda b: (b, 0, 0, 0)),
        scratch_shapes=[pltpu.VMEM((H + 2, W + 2, C), jnp.float32)],
        compiler_params=pltpu.CompilerParams(dimension_semantics=("parallel",)),
    )(x, gamma.reshape(1, C), beta.reshape(1, C),
      p['dw_w'], p['se_w1'], p['se_w2'], p['pw_w'])


def _phase_split(x, pad_value):
    # pad by 1 and split into the 4 (row%2, col%2) phases, stacked along H:
    # result[:, p*Hh + i, j, :] == pad(x)[:, 2*i + p//2, 2*j + p%2, :]
    # TODO(synk): this is still one extra HBM round trip of the feature map;
    # fusing the pad/phase-split into the producing kernel needs sublane-strided
    # stores and was left out for lowering safety (traffic is already halved by bf16).
    B, H, W, C = x.shape
    assert H % 2 == 0 and W % 2 == 0, "even spatial dims expected"
    xp = jnp.pad(x, ((0, 0), (1, 1), (1, 1), (0, 0)), constant_values=pad_value)
    ph = jnp.stack([xp[:, p::2, q::2, :] for p in (0, 1) for q in (0, 1)], axis=1)
    Hh, Wh = ph.shape[2], ph.shape[3]
    return ph.reshape(B, 4 * Hh, Wh, C), Hh, Wh


def conv3x3_s2_ln(x, w9, gamma, beta, out_dtype=ACT_DTYPE):
    # 3x3 stride-2 pad-1 conv (single 9*Cin-deep matmul) + fused LayerNorm2d
    B, H, W, Cin = x.shape
    Cout = w9.shape[-1]
    Ho, Wo = H // 2, W // 2
    ph, Hh, Wh = _phase_split(x, 0.0)
    return pl.pallas_call(
        functools.partial(_conv3x3s2_ln_kernel, eps=LN2D_EPS),
        out_shape=jax.ShapeDtypeStruct((B, Ho, Wo, Cout), out_dtype),
        grid=(B,),
        in_specs=[pl.BlockSpec((1, 4 * Hh, Wh, Cin), lambda b: (b, 0, 0, 0)),
                  pl.BlockSpec((9 * Cin, Cout), lambda b: (0, 0)),
                  pl.BlockSpec((1, Cout), lambda b: (0, 0)),
                  pl.BlockSpec((1, Cout), lambda b: (0, 0))],
        out_specs=pl.BlockSpec((1, Ho, Wo, Cout), lambda b: (b, 0, 0, 0)),
        compiler_params=pltpu.CompilerParams(dimension_semantics=("parallel",)),
    )(ph, w9, gamma.reshape(1, Cout), beta.reshape(1, Cout))


def maxpool_3x3_s2(x, out_dtype=ACT_DTYPE):
    B, H, W, C = x.shape
    Ho, Wo = H // 2, W // 2
    ph, Hh, Wh = _phase_split(x, -jnp.inf)
    return pl.pallas_call(
        _maxpool3x3s2_kernel,
        out_shape=jax.ShapeDtypeStruct((B, Ho, Wo, C), out_dtype),
        grid=(B,),
        in_specs=[pl.BlockSpec((1, 4 * Hh, Wh, C), lambda b: (b, 0, 0, 0))],
        out_specs=pl.BlockSpec((1, Ho, Wo, C), lambda b: (b, 0, 0, 0)),
        compiler_params=pltpu.CompilerParams(dimension_semantics=("parallel",)),
    )(ph)


def attn_block(x_win, q_global, blk_p, num_heads, use_global, out_dtype=ACT_DTYPE):
    # fused LN1 + WindowAttentionGlobal + proj + residual over window groups
    BW, N, C = x_win.shape
    pa = blk_p['attn']
    hd = C // num_heads
    scale = hd ** (-0.5)
    Bg = q_global.shape[0]
    G = _pick_group(BW, Bg, N, C)                 # windows per grid step
    qkv_out = pa['qkv_w'].shape[1]
    kernel = _make_attn_block_kernel(num_heads, scale, use_global, Bg)

    in_specs = [pl.BlockSpec((G, N, C), lambda i: (i, 0, 0))]
    args = [x_win]
    if use_global:
        in_specs.append(pl.BlockSpec((Bg, N, C), lambda i: (0, 0, 0)))  # resident
        args.append(q_global)
    in_specs += [pl.BlockSpec((1, C), lambda i: (0, 0)),
                 pl.BlockSpec((1, C), lambda i: (0, 0)),
                 pl.BlockSpec((C, qkv_out), lambda i: (0, 0)),
                 pl.BlockSpec((1, qkv_out), lambda i: (0, 0)),
                 pl.BlockSpec((num_heads, N, N), lambda i: (0, 0, 0)),
                 pl.BlockSpec((C, C), lambda i: (0, 0)),
                 pl.BlockSpec((1, C), lambda i: (0, 0))]
    args += [blk_p['norm1_g'].reshape(1, C), blk_p['norm1_b'].reshape(1, C),
             pa['qkv_w'], pa['qkv_b'].reshape(1, qkv_out),
             pa['rel_bias'], pa['proj_w'], pa['proj_b'].reshape(1, C)]

    return pl.pallas_call(
        kernel,
        out_shape=jax.ShapeDtypeStruct((BW, N, C), out_dtype),
        grid=(BW // G,),
        in_specs=in_specs,
        out_specs=pl.BlockSpec((G, N, C), lambda i: (i, 0, 0)),
        compiler_params=pltpu.CompilerParams(dimension_semantics=("parallel",)),
    )(*args)


# ---------------------------------------------------------------------------
# model glue (layout only: window partition / reverse, module composition)
# ---------------------------------------------------------------------------
def window_partition_jax(x, ws):
    B, H, W, C = x.shape
    x = x.reshape(B, H // ws, ws, W // ws, ws, C)
    x = jnp.transpose(x, (0, 1, 3, 2, 4, 5))
    return x.reshape(-1, ws * ws, C)


def window_reverse_jax(wins, ws, H, W):
    C = wins.shape[-1]
    x = wins.reshape(-1, H // ws, W // ws, ws, ws, C)
    x = jnp.transpose(x, (0, 1, 3, 2, 4, 5))
    return x.reshape(-1, H, W, C)


def gcvit_block(x, q_global, blk_p, num_heads, ws, use_global, out_dtype=ACT_DTYPE):
    # norm_layer_cl resolves to channels-last LayerNorm (as in the full timm
    # model); norm1 is fused into the attention kernel, norm2 into the MLP
    # kernel.  ls1/ls2/drop_path are Identity under the default stage config.
    B, H, W, C = x.shape
    x_win = window_partition_jax(x, ws)                          # (BW, N, C)
    x_win = attn_block(x_win, q_global, blk_p, num_heads, use_global)
    x = window_reverse_jax(x_win, ws, H, W)                      # residual added in-kernel
    x = mlp_block(x.reshape(B * H * W, C), blk_p,
                  out_dtype=out_dtype).reshape(B, H, W, C)
    return x


def downsample2d(x, p):
    # norm1 fused into the MbConv kernel; norm2 fused into the reduction conv.
    x = mbconv(x, p['conv_block'], ln=(p['norm1_g'], p['norm1_b']))
    x = conv3x3_s2_ln(x, p['red_w'], p['norm2_g'], p['norm2_b'])
    return x


def gcvit_stage_forward(x_nchw, params, num_heads, window_size):
    x = jnp.transpose(x_nchw, (0, 2, 3, 1)).astype(ACT_DTYPE)    # NCHW -> NHWC, bf16
    x = downsample2d(x, params['downsample'])
    # FeatureBlock (global query path): MbConv (+ MaxPool) per level
    gq = x
    feat_levels = params['feat_levels']
    for i, mb_p in enumerate(params['global_block']):
        gq = mbconv(gq, mb_p)
        if i < feat_levels:
            gq = maxpool_3x3_s2(gq)
    B, _, _, C = gq.shape
    gq = gq.reshape(B, -1, C)                 # (B, ws*ws, C); global_norm = Identity
    n_blocks = len(params['blocks'])
    for i, blk_p in enumerate(params['blocks']):
        last = (i == n_blocks - 1)
        x = gcvit_block(x, gq, blk_p, num_heads, window_size,
                        use_global=(i % 2 != 0),
                        out_dtype=jnp.float32 if last else ACT_DTYPE)
    # stage norm = Identity (stage_norm=False default)
    return jnp.transpose(x, (0, 3, 1, 2))                        # NHWC -> NCHW


# ---------------------------------------------------------------------------
# deterministic parameter initialization (synthetic; shapes per __init__).
# MXU weight operands are stored pre-cast to bf16; LN params / biases / the
# relative-position bias stay float32.
# ---------------------------------------------------------------------------
def make_divisible(v, divisor=8, min_value=None, round_limit=0.0):
    min_value = min_value or divisor
    new_v = max(min_value, int(v + divisor / 2) // divisor * divisor)
    if new_v < round_limit * v:
        new_v += divisor
    return new_v


def _init(key, shape, scale=0.02, dtype=jnp.float32):
    return (scale * jax.random.normal(key, shape, jnp.float32)).astype(dtype)


def init_mbconv_params(key, C):
    rd = make_divisible(C * 0.25, 8, round_limit=0.0)
    k1, k2, k3, k4 = jax.random.split(key, 4)
    return dict(dw_w=_init(k1, (9, C), 0.1),                       # VPU operand, f32
                se_w1=_init(k2, (C, rd), 0.1, MXU_DTYPE),
                se_w2=_init(k3, (rd, C), 0.1, MXU_DTYPE),
                pw_w=_init(k4, (C, C), 0.1, MXU_DTYPE))


def init_downsample_params(key, C_in, C_out):
    k1, k2 = jax.random.split(key, 2)
    # reduction conv weight stored as (9*Cin, Cout), row index = (ki*3+kj)*Cin + ci
    return dict(norm1_g=jnp.ones((C_in,), jnp.float32),
                norm1_b=jnp.zeros((C_in,), jnp.float32),
                conv_block=init_mbconv_params(k1, C_in),
                red_w=_init(k2, (9 * C_in, C_out), 0.1, MXU_DTYPE),
                norm2_g=jnp.ones((C_out,), jnp.float32),
                norm2_b=jnp.zeros((C_out,), jnp.float32))


def gen_relative_position_index(ws):
    coords = np.stack(np.meshgrid(np.arange(ws), np.arange(ws), indexing='ij'))
    coords = coords.reshape(2, -1)
    rel = coords[:, :, None] - coords[:, None, :]
    rel = rel.transpose(1, 2, 0).astype(np.int32)
    rel[:, :, 0] += ws - 1
    rel[:, :, 1] += ws - 1
    rel[:, :, 0] *= 2 * ws - 1
    return rel.sum(-1)                                           # (N, N)


def init_block_params(key, C, num_heads, ws, use_global, mlp_ratio=4.0):
    N = ws * ws
    hidden = int(C * mlp_ratio)
    ks = jax.random.split(key, 9)
    qkv_out = 2 * C if use_global else 3 * C
    table = _init(ks[8], ((2 * ws - 1) * (2 * ws - 1), num_heads), 0.02)
    idx = jnp.asarray(gen_relative_position_index(ws))
    rel_bias = jnp.transpose(table[idx.reshape(-1)].reshape(N, N, num_heads), (2, 0, 1))
    return dict(
        norm1_g=jnp.ones((C,), jnp.float32), norm1_b=jnp.zeros((C,), jnp.float32),
        norm2_g=jnp.ones((C,), jnp.float32), norm2_b=jnp.zeros((C,), jnp.float32),
        attn=dict(qkv_w=_init(ks[0], (C, qkv_out), 0.02, MXU_DTYPE),
                  qkv_b=_init(ks[1], (qkv_out,)),
                  proj_w=_init(ks[2], (C, C), 0.02, MXU_DTYPE),
                  proj_b=_init(ks[3], (C,)),
                  rel_bias=rel_bias),
        mlp_w1=_init(ks[4], (C, hidden), 0.02, MXU_DTYPE), mlp_b1=_init(ks[5], (hidden,)),
        mlp_w2=_init(ks[6], (hidden, C), 0.02, MXU_DTYPE), mlp_b2=_init(ks[7], (C,)))


def init_stage_params(key, dim, depth, num_heads, feat_size, window_size, mlp_ratio=4.0):
    kd, kg, kb = jax.random.split(key, 3)
    dim_out = dim * 2                                   # downsample=True
    feat_size = (feat_size[0] // 2, feat_size[1] // 2)
    feat_levels = int(math.log2(min(feat_size) / window_size))
    n_levels = max(1, feat_levels)
    gkeys = jax.random.split(kg, n_levels)
    bkeys = jax.random.split(kb, depth)
    return dict(
        downsample=init_downsample_params(kd, dim, dim_out),
        global_block=[init_mbconv_params(gkeys[i], dim_out) for i in range(n_levels)],
        blocks=[init_block_params(bkeys[i], dim_out, num_heads, window_size,
                                  use_global=(i % 2 != 0), mlp_ratio=mlp_ratio)
                for i in range(depth)],
        feat_levels=feat_levels)


# ---------------------------------------------------------------------------
if __name__ == "__main__":
    key = jax.random.PRNGKey(0)
    kx, kp = jax.random.split(key)

    # stage config: dim=16 -> 32 after downsample, feat 16x16 -> 8x8,
    # window 4x4, depth=2 (block0 local, block1 global), heads=2
    B, C0, H, W = 2, 16, 16, 16
    depth, num_heads, window_size = 2, 2, 4

    x = jax.random.normal(kx, (B, C0, H, W), jnp.float32)       # NCHW like PyTorch
    params = init_stage_params(kp, dim=C0, depth=depth, num_heads=num_heads,
                               feat_size=(H, W), window_size=window_size)

    out = gcvit_stage_forward(x, params, num_heads=num_heads, window_size=window_size)
    out = jax.block_until_ready(out)

    assert out.shape == (B, 2 * C0, H // 2, W // 2), out.shape
    assert bool(jnp.isfinite(out).all())
    print("KERNEL_OK")
</pallas_src>

<mosaic_0001>
module attributes {stable_mosaic.version = 11 : i64} {
  func.func @kernel(%arg0: i32, %arg1: memref<1x16x16x16xbf16, #tpu.memory_space<vmem>>, %arg2: memref<1x16xf32, #tpu.memory_space<vmem>>, %arg3: memref<1x16xf32, #tpu.memory_space<vmem>>, %arg4: memref<9x16xf32, #tpu.memory_space<vmem>>, %arg5: memref<16x8xbf16, #tpu.memory_space<vmem>>, %arg6: memref<8x16xbf16, #tpu.memory_space<vmem>>, %arg7: memref<16x16xbf16, #tpu.memory_space<vmem>>, %arg8: memref<1x16x16x16xbf16, #tpu.memory_space<vmem>>, %arg9: memref<18x18x16xf32, #tpu.memory_space<vmem>>) attributes {dimension_semantics = [#tpu.dimension_semantics<parallel>], iteration_bounds = array<i64: 2>, scalar_prefetch = 0 : i64, scratch_operands = 1 : i64, tpu.core_type = #tpu.core_type<tc>, window_params = [{transform_indices = @transform_0, window_bounds = array<i64: 1, 16, 16, 16>}, {pipeline_mode = #tpu.pipeline_mode<synchronous>, transform_indices = @transform_1, window_bounds = array<i64: 1, 16>}, {pipeline_mode = #tpu.pipeline_mode<synchronous>, transform_indices = @transform_2, window_bounds = array<i64: 1, 16>}, {pipeline_mode = #tpu.pipeline_mode<synchronous>, transform_indices = @transform_3, window_bounds = array<i64: 9, 16>}, {pipeline_mode = #tpu.pipeline_mode<synchronous>, transform_indices = @transform_4, window_bounds = array<i64: 16, 8>}, {pipeline_mode = #tpu.pipeline_mode<synchronous>, transform_indices = @transform_5, window_bounds = array<i64: 8, 16>}, {pipeline_mode = #tpu.pipeline_mode<synchronous>, transform_indices = @transform_6, window_bounds = array<i64: 16, 16>}, {transform_indices = @transform_7, window_bounds = array<i64: 1, 16, 16, 16>}]} {
    %c0 = arith.constant 0 : index
    %c0_0 = arith.constant 0 : index
    %c0_1 = arith.constant 0 : index
    %c0_2 = arith.constant 0 : index
    %0 = vector.load %arg1[%c0, %c0_0, %c0_1, %c0_2] : memref<1x16x16x16xbf16, #tpu.memory_space<vmem>>, vector<1x16x16x16xbf16>
    %1 = vector.shape_cast %0 : vector<1x16x16x16xbf16> to vector<16x16x16xbf16>
    %2 = arith.extf %1 : vector<16x16x16xbf16> to vector<16x16x16xf32>
    %cst = arith.constant dense<0.000000e+00> : vector<16x16xf32>
    %3 = vector.multi_reduction <add>, %2, %cst [2] : vector<16x16x16xf32> to vector<16x16xf32>
    %4 = vector.shape_cast %3 : vector<16x16xf32> to vector<16x16x1xf32>
    %cst_3 = arith.constant 1.600000e+01 : f32
    %5 = vector.broadcast %cst_3 : f32 to vector<16x16x1xf32>
    %6 = arith.divf %4, %5 : vector<16x16x1xf32>
    %7 = vector.broadcast %6 : vector<16x16x1xf32> to vector<16x16x16xf32>
    %8 = arith.subf %2, %7 : vector<16x16x16xf32>
    %9 = arith.mulf %8, %8 : vector<16x16x16xf32>
    %cst_4 = arith.constant dense<0.000000e+00> : vector<16x16xf32>
    %10 = vector.multi_reduction <add>, %9, %cst_4 [2] : vector<16x16x16xf32> to vector<16x16xf32>
    %11 = vector.shape_cast %10 : vector<16x16xf32> to vector<16x16x1xf32>
    %cst_5 = arith.constant 1.600000e+01 : f32
    %12 = vector.broadcast %cst_5 : f32 to vector<16x16x1xf32>
    %13 = arith.divf %11, %12 : vector<16x16x1xf32>
    %cst_6 = arith.constant 9.99999997E-7 : f32
    %14 = vector.broadcast %cst_6 : f32 to vector<16x16x1xf32>
    %15 = arith.addf %13, %14 : vector<16x16x1xf32>
    %16 = math.rsqrt %15 : vector<16x16x1xf32>
    %17 = vector.broadcast %16 : vector<16x16x1xf32> to vector<16x16x16xf32>
    %18 = arith.mulf %8, %17 : vector<16x16x16xf32>
    %c0_7 = arith.constant 0 : index
    %c0_8 = arith.constant 0 : index
    %19 = vector.load %arg2[%c0_7, %c0_8] : memref<1x16xf32, #tpu.memory_space<vmem>>, vector<1x16xf32>
    %20 = vector.shape_cast %19 : vector<1x16xf32> to vector<1x1x16xf32>
    %21 = vector.broadcast %20 : vector<1x1x16xf32> to vector<16x16x16xf32>
    %22 = arith.mulf %18, %21 : vector<16x16x16xf32>
    %c0_9 = arith.constant 0 : index
    %c0_10 = arith.constant 0 : index
    %23 = vector.load %arg3[%c0_9, %c0_10] : memref<1x16xf32, #tpu.memory_space<vmem>>, vector<1x16xf32>
    %24 = vector.shape_cast %23 : vector<1x16xf32> to vector<1x1x16xf32>
    %25 = vector.broadcast %24 : vector<1x1x16xf32> to vector<16x16x16xf32>
    %26 = arith.addf %22, %25 : vector<16x16x16xf32>
    %cst_11 = arith.constant 0.000000e+00 : f32
    %27 = vector.broadcast %cst_11 : f32 to vector<18x18x16xf32>
    %c0_12 = arith.constant 0 : index
    %c0_13 = arith.constant 0 : index
    %c0_14 = arith.constant 0 : index
    %28 = vector.load %arg9[%c0_12, %c0_13, %c0_14] : memref<18x18x16xf32, #tpu.memory_space<vmem>>, vector<18x18x16xf32>
    tpu.vector_store %arg9[%c0_12, %c0_13, %c0_14], %27 {strides = array<i32>} : memref<18x18x16xf32, #tpu.memory_space<vmem>>, vector<18x18x16xf32>,
    %c1 = arith.constant 1 : index
    %c1_15 = arith.constant 1 : index
    %c0_16 = arith.constant 0 : index
    %29 = vector.load %arg9[%c1, %c1_15, %c0_16] : memref<18x18x16xf32, #tpu.memory_space<vmem>>, vector<16x16x16xf32>
    tpu.vector_store %arg9[%c1, %c1_15, %c0_16], %26 {strides = array<i32>} : memref<18x18x16xf32, #tpu.memory_space<vmem>>, vector<16x16x16xf32>,
    %c0_17 = arith.constant 0 : index
    %c0_18 = arith.constant 0 : index
    %c0_19 = arith.constant 0 : index
    %30 = vector.load %arg9[%c0_17, %c0_18, %c0_19] : memref<18x18x16xf32, #tpu.memory_space<vmem>>, vector<18x18x16xf32>
    %c0_20 = arith.constant 0 : index
    %c0_21 = arith.constant 0 : index
    %31 = vector.load %arg4[%c0_20, %c0_21] : memref<9x16xf32, #tpu.memory_space<vmem>>, vector<9x16xf32>
    %cst_22 = arith.constant 0.000000e+00 : f32
    %32 = vector.broadcast %cst_22 : f32 to vector<16x16x16xf32>
    %33 = vector.extract_strided_slice %30 {offsets = [0, 0, 0], sizes = [16, 16, 16], strides = [1, 1, 1]} : vector<18x18x16xf32> to vector<16x16x16xf32>
    %34 = vector.extract_strided_slice %31 {offsets = [0, 0], sizes = [1, 16], strides = [1, 1]} : vector<9x16xf32> to vector<1x16xf32>
    %35 = vector.shape_cast %34 : vector<1x16xf32> to vector<16xf32>
    %36 = vector.shape_cast %35 : vector<16xf32> to vector<1x1x16xf32>
    %37 = vector.broadcast %36 : vector<1x1x16xf32> to vector<16x16x16xf32>
    %38 = arith.mulf %33, %37 : vector<16x16x16xf32>
    %39 = arith.addf %32, %38 : vector<16x16x16xf32>
    %40 = vector.extract_strided_slice %30 {offsets = [0, 1, 0], sizes = [16, 16, 16], strides = [1, 1, 1]} : vector<18x18x16xf32> to vector<16x16x16xf32>
    %41 = vector.extract_strided_slice %31 {offsets = [1, 0], sizes = [1, 16], strides = [1, 1]} : vector<9x16xf32> to vector<1x16xf32>
    %42 = vector.shape_cast %41 : vector<1x16xf32> to vector<16xf32>
    %43 = vector.shape_cast %42 : vector<16xf32> to vector<1x1x16xf32>
    %44 = vector.broadcast %43 : vector<1x1x16xf32> to vector<16x16x16xf32>
    %45 = arith.mulf %40, %44 : vector<16x16x16xf32>
    %46 = arith.addf %39, %45 : vector<16x16x16xf32>
    %47 = vector.extract_strided_slice %30 {offsets = [0, 2, 0], sizes = [16, 16, 16], strides = [1, 1, 1]} : vector<18x18x16xf32> to vector<16x16x16xf32>
    %48 = vector.extract_strided_slice %31 {offsets = [2, 0], sizes = [1, 16], strides = [1, 1]} : vector<9x16xf32> to vector<1x16xf32>
    %49 = vector.shape_cast %48 : vector<1x16xf32> to vector<16xf32>
    %50 = vector.shape_cast %49 : vector<16xf32> to vector<1x1x16xf32>
    %51 = vector.broadcast %50 : vector<1x1x16xf32> to vector<16x16x16xf32>
    %52 = arith.mulf %47, %51 : vector<16x16x16xf32>
    %53 = arith.addf %46, %52 : vector<16x16x16xf32>
    %54 = vector.extract_strided_slice %30 {offsets = [1, 0, 0], sizes = [16, 16, 16], strides = [1, 1, 1]} : vector<18x18x16xf32> to vector<16x16x16xf32>
    %55 = vector.extract_strided_slice %31 {offsets = [3, 0], sizes = [1, 16], strides = [1, 1]} : vector<9x16xf32> to vector<1x16xf32>
    %56 = vector.shape_cast %55 : vector<1x16xf32> to vector<16xf32>
    %57 = vector.shape_cast %56 : vector<16xf32> to vector<1x1x16xf32>
    %58 = vector.broadcast %57 : vector<1x1x16xf32> to vector<16x16x16xf32>
    %59 = arith.mulf %54, %58 : vector<16x16x16xf32>
    %60 = arith.addf %53, %59 : vector<16x16x16xf32>
    %61 = vector.extract_strided_slice %30 {offsets = [1, 1, 0], sizes = [16, 16, 16], strides = [1, 1, 1]} : vector<18x18x16xf32> to vector<16x16x16xf32>
    %62 = vector.extract_strided_slice %31 {offsets = [4, 0], sizes = [1, 16], strides = [1, 1]} : vector<9x16xf32> to vector<1x16xf32>
    %63 = vector.shape_cast %62 : vector<1x16xf32> to vector<16xf32>
    %64 = vector.shape_cast %63 : vector<16xf32> to vector<1x1x16xf32>
    %65 = vector.broadcast %64 : vector<1x1x16xf32> to vector<16x16x16xf32>
    %66 = arith.mulf %61, %65 : vector<16x16x16xf32>
    %67 = arith.addf %60, %66 : vector<16x16x16xf32>
    %68 = vector.extract_strided_slice %30 {offsets = [1, 2, 0], sizes = [16, 16, 16], strides = [1, 1, 1]} : vector<18x18x16xf32> to vector<16x16x16xf32>
    %69 = vector.extract_strided_slice %31 {offsets = [5, 0], sizes = [1, 16], strides = [1, 1]} : vector<9x16xf32> to vector<1x16xf32>
    %70 = vector.shape_cast %69 : vector<1x16xf32> to vector<16xf32>
    %71 = vector.shape_cast %70 : vector<16xf32> to vector<1x1x16xf32>
    %72 = vector.broadcast %71 : vector<1x1x16xf32> to vector<16x16x16xf32>
    %73 = arith.mulf %68, %72 : vector<16x16x16xf32>
    %74 = arith.addf %67, %73 : vector<16x16x16xf32>
    %75 = vector.extract_strided_slice %30 {offsets = [2, 0, 0], sizes = [16, 16, 16], strides = [1, 1, 1]} : vector<18x18x16xf32> to vector<16x16x16xf32>
    %76 = vector.extract_strided_slice %31 {offsets = [6, 0], sizes = [1, 16], strides = [1, 1]} : vector<9x16xf32> to vector<1x16xf32>
    %77 = vector.shape_cast %76 : vector<1x16xf32> to vector<16xf32>
    %78 = vector.shape_cast %77 : vector<16xf32> to vector<1x1x16xf32>
    %79 = vector.broadcast %78 : vector<1x1x16xf32> to vector<16x16x16xf32>
    %80 = arith.mulf %75, %79 : vector<16x16x16xf32>
    %81 = arith.addf %74, %80 : vector<16x16x16xf32>
    %82 = vector.extract_strided_slice %30 {offsets = [2, 1, 0], sizes = [16, 16, 16], strides = [1, 1, 1]} : vector<18x18x16xf32> to vector<16x16x16xf32>
    %83 = vector.extract_strided_slice %31 {offsets = [7, 0], sizes = [1, 16], strides = [1, 1]} : vector<9x16xf32> to vector<1x16xf32>
    %84 = vector.shape_cast %83 : vector<1x16xf32> to vector<16xf32>
    %85 = vector.shape_cast %84 : vector<16xf32> to vector<1x1x16xf32>
    %86 = vector.broadcast %85 : vector<1x1x16xf32> to vector<16x16x16xf32>
    %87 = arith.mulf %82, %86 : vector<16x16x16xf32>
    %88 = arith.addf %81, %87 : vector<16x16x16xf32>
    %89 = vector.extract_strided_slice %30 {offsets = [2, 2, 0], sizes = [16, 16, 16], strides = [1, 1, 1]} : vector<18x18x16xf32> to vector<16x16x16xf32>
    %90 = vector.extract_strided_slice %31 {offsets = [8, 0], sizes = [1, 16], strides = [1, 1]} : vector<9x16xf32> to vector<1x16xf32>
    %91 = vector.shape_cast %90 : vector<1x16xf32> to vector<16xf32>
    %92 = vector.shape_cast %91 : vector<16xf32> to vector<1x1x16xf32>
    %93 = vector.broadcast %92 : vector<1x1x16xf32> to vector<16x16x16xf32>
    %94 = arith.mulf %89, %93 : vector<16x16x16xf32>
    %95 = arith.addf %88, %94 : vector<16x16x16xf32>
    %cst_23 = arith.constant 5.000000e-01 : f32
    %96 = vector.broadcast %cst_23 : f32 to vector<16x16x16xf32>
    %97 = arith.mulf %96, %95 : vector<16x16x16xf32>
    %cst_24 = arith.constant 4.471500e-02 : f32
    %98 = vector.broadcast %cst_24 : f32 to vector<16x16x16xf32>
    %99 = arith.mulf %98, %95 : vector<16x16x16xf32>
    %100 = arith.mulf %99, %95 : vector<16x16x16xf32>
    %101 = arith.mulf %100, %95 : vector<16x16x16xf32>
    %102 = arith.addf %95, %101 : vector<16x16x16xf32>
    %cst_25 = arith.constant 0.797884583 : f32
    %103 = vector.broadcast %cst_25 : f32 to vector<16x16x16xf32>
    %104 = arith.mulf %103, %102 : vector<16x16x16xf32>
    %105 = math.tanh %104 : vector<16x16x16xf32>
    %cst_26 = arith.constant 1.000000e+00 : f32
    %106 = vector.broadcast %cst_26 : f32 to vector<16x16x16xf32>
    %107 = arith.addf %106, %105 : vector<16x16x16xf32>
    %108 = arith.mulf %97, %107 : vector<16x16x16xf32>
    %109 = vector.shape_cast %108 : vector<16x16x16xf32> to vector<256x16xf32>
    %cst_27 = arith.constant dense<0.000000e+00> : vector<16xf32>
    %110 = vector.multi_reduction <add>, %109, %cst_27 [0] : vector<256x16xf32> to vector<16xf32>
    %111 = vector.shape_cast %110 : vector<16xf32> to vector<1x16xf32>
    %cst_28 = arith.constant 2.560000e+02 : f32
    %112 = vector.broadcast %cst_28 : f32 to vector<1x16xf32>
    %113 = arith.divf %111, %112 : vector<1x16xf32>
    %114 = arith.truncf %113 : vector<1x16xf32> to vector<1x16xbf16>
    %c0_29 = arith.constant 0 : index
    %c0_30 = arith.constant 0 : index
    %115 = vector.load %arg5[%c0_29, %c0_30] : memref<16x8xbf16, #tpu.memory_space<vmem>>, vector<16x8xbf16>
    %cst_31 = arith.constant dense<0.000000e+00> : vector<1x8xf32>
    %116 = tpu.matmul %114, %115, %cst_31 {dimension_numbers = #tpu.dot_dimension_numbers<[1], [0], [0], [1], [0, 0, 1, 1], [], []>} : vector<1x16xbf16>, vector<16x8xbf16>, vector<1x8xf32> -> vector<1x8xf32>
    %cst_32 = arith.constant 5.000000e-01 : f32
    %117 = vector.broadcast %cst_32 : f32 to vector<1x8xf32>
    %118 = arith.mulf %117, %116 : vector<1x8xf32>
    %cst_33 = arith.constant 4.471500e-02 : f32
    %119 = vector.broadcast %cst_33 : f32 to vector<1x8xf32>
    %120 = arith.mulf %119, %116 : vector<1x8xf32>
    %121 = arith.mulf %120, %116 : vector<1x8xf32>
    %122 = arith.mulf %121, %116 : vector<1x8xf32>
    %123 = arith.addf %116, %122 : vector<1x8xf32>
    %cst_34 = arith.constant 0.797884583 : f32
    %124 = vector.broadcast %cst_34 : f32 to vector<1x8xf32>
    %125 = arith.mulf %124, %123 : vector<1x8xf32>
    %126 = math.tanh %125 : vector<1x8xf32>
    %cst_35 = arith.constant 1.000000e+00 : f32
    %127 = vector.broadcast %cst_35 : f32 to vector<1x8xf32>
    %128 = arith.addf %127, %126 : vector<1x8xf32>
    %129 = arith.mulf %118, %128 : vector<1x8xf32>
    %130 = arith.truncf %129 : vector<1x8xf32> to vector<1x8xbf16>
    %c0_36 = arith.constant 0 : index
    %c0_37 = arith.constant 0 : index
    %131 = vector.load %arg6[%c0_36, %c0_37] : memref<8x16xbf16, #tpu.memory_space<vmem>>, vector<8x16xbf16>
    %cst_38 = arith.constant dense<0.000000e+00> : vector<1x16xf32>
    %132 = tpu.matmul %130, %131, %cst_38 {dimension_numbers = #tpu.dot_dimension_numbers<[1], [0], [0], [1], [0, 0, 1, 1], [], []>} : vector<1x8xbf16>, vector<8x16xbf16>, vector<1x16xf32> -> vector<1x16xf32>
    %cst_39 = arith.constant 5.000000e-01 : f32
    %133 = vector.broadcast %cst_39 : f32 to vector<1x16xf32>
    %134 = arith.mulf %133, %132 : vector<1x16xf32>
    %135 = math.tanh %134 : vector<1x16xf32>
    %cst_40 = arith.constant 1.000000e+00 : f32
    %136 = vector.broadcast %cst_40 : f32 to vector<1x16xf32>
    %137 = arith.addf %135, %136 : vector<1x16xf32>
    %cst_41 = arith.constant 5.000000e-01 : f32
    %138 = vector.broadcast %cst_41 : f32 to vector<1x16xf32>
    %139 = arith.mulf %138, %137 : vector<1x16xf32>
    %140 = vector.broadcast %139 : vector<1x16xf32> to vector<256x16xf32>
    %141 = arith.mulf %109, %140 : vector<256x16xf32>
    %142 = arith.truncf %141 : vector<256x16xf32> to vector<256x16xbf16>
    %c0_42 = arith.constant 0 : index
    %c0_43 = arith.constant 0 : index
    %143 = vector.load %arg7[%c0_42, %c0_43] : memref<16x16xbf16, #tpu.memory_space<vmem>>, vector<16x16xbf16>
    %cst_44 = arith.constant dense<0.000000e+00> : vector<256x16xf32>
    %144 = tpu.matmul %142, %143, %cst_44 {dimension_numbers = #tpu.dot_dimension_numbers<[1], [0], [0], [1], [0, 0, 1, 1], [], []>} : vector<256x16xbf16>, vector<16x16xbf16>, vector<256x16xf32> -> vector<256x16xf32>
    %145 = vector.shape_cast %144 : vector<256x16xf32> to vector<16x16x16xf32>
    %146 = arith.addf %145, %26 : vector<16x16x16xf32>
    %147 = arith.truncf %146 : vector<16x16x16xf32> to vector<16x16x16xbf16>
    %c0_45 = arith.constant 0 : index
    %c0_46 = arith.constant 0 : index
    %c0_47 = arith.constant 0 : index
    %c0_48 = arith.constant 0 : index
    %148 = vector.load %arg8[%c0_45, %c0_46, %c0_47, %c0_48] : memref<1x16x16x16xbf16, #tpu.memory_space<vmem>>, vector<1x16x16x16xbf16>
    %149 = vector.shape_cast %148 : vector<1x16x16x16xbf16> to vector<16x16x16xbf16>
    %150 = vector.shape_cast %147 : vector<16x16x16xbf16> to vector<1x16x16x16xbf16>
    tpu.vector_store %arg8[%c0_45, %c0_46, %c0_47, %c0_48], %150 {strides = array<i32>} : memref<1x16x16x16xbf16, #tpu.memory_space<vmem>>, vector<1x16x16x16xbf16>,
    return
  }
  func.func @transform_0(%arg0: i32) -> (i32, i32, i32, i32) {
    %c0_i32 = arith.constant 0 : i32
    %c0_i32_0 = arith.constant 0 : i32
    %c0_i32_1 = arith.constant 0 : i32
    %c0_i32_2 = arith.constant 0 : i32
    return %arg0, %c0_i32, %c0_i32_0, %c0_i32_1 : i32, i32, i32, i32
  }
  func.func @transform_1(%arg0: i32) -> (i32, i32) {
    %c0_i32 = arith.constant 0 : i32
    %c0_i32_0 = arith.constant 0 : i32
    %c0_i32_1 = arith.constant 0 : i32
    return %c0_i32, %c0_i32_0 : i32, i32
  }
  func.func @transform_2(%arg0: i32) -> (i32, i32) {
    %c0_i32 = arith.constant 0 : i32
    %c0_i32_0 = arith.constant 0 : i32
    %c0_i32_1 = arith.constant 0 : i32
    return %c0_i32, %c0_i32_0 : i32, i32
  }
  func.func @transform_3(%arg0: i32) -> (i32, i32) {
    %c0_i32 = arith.constant 0 : i32
    %c0_i32_0 = arith.constant 0 : i32
    %c0_i32_1 = arith.constant 0 : i32
    return %c0_i32, %c0_i32_0 : i32, i32
  }
  func.func @transform_4(%arg0: i32) -> (i32, i32) {
    %c0_i32 = arith.constant 0 : i32
    %c0_i32_0 = arith.constant 0 : i32
    %c0_i32_1 = arith.constant 0 : i32
    return %c0_i32, %c0_i32_0 : i32, i32
  }
  func.func @transform_5(%arg0: i32) -> (i32, i32) {
    %c0_i32 = arith.constant 0 : i32
    %c0_i32_0 = arith.constant 0 : i32
    %c0_i32_1 = arith.constant 0 : i32
    return %c0_i32, %c0_i32_0 : i32, i32
  }
  func.func @transform_6(%arg0: i32) -> (i32, i32) {
    %c0_i32 = arith.constant 0 : i32
    %c0_i32_0 = arith.constant 0 : i32
    %c0_i32_1 = arith.constant 0 : i32
    return %c0_i32, %c0_i32_0 : i32, i32
  }
  func.func @transform_7(%arg0: i32) -> (i32, i32, i32, i32) {
    %c0_i32 = arith.constant 0 : i32
    %c0_i32_0 = arith.constant 0 : i32
    %c0_i32_1 = arith.constant 0 : i32
    %c0_i32_2 = arith.constant 0 : i32
    return %arg0, %c0_i32, %c0_i32_0, %c0_i32_1 : i32, i32, i32, i32
  }
}

</mosaic_0001>

<bundles_post_ra>
// kernel: tpu_custom_call.1
= control target key start
LH: loop header
LB: loop body
LE: loop exit
PB: predicated region body
PF: predicated region fallthrough
CT: control target
= control target key end

     0   :  { %s8268_s0 = inlined_call_operand.hbm [shape: bf16[2,16,16,16], index: 0, kind: input, shape index: {}]   ;;  %s8269_s1 = inlined_call_operand.vmem [shape: f32[1,16], index: 1, kind: input, shape index: {}]   ;;  %s8270_s2 = inlined_call_operand.vmem [shape: f32[1,16], index: 2, kind: input, shape index: {}]   ;;  %s8271_s3 = inlined_call_operand.hbm [shape: f32[9,16], index: 3, kind: input, shape index: {}]   ;;  %s8272_s4 = inlined_call_operand.vmem [shape: bf16[16,8], index: 4, kind: input, shape index: {}]   ;;  %s8273_s5 = inlined_call_operand.vmem [shape: bf16[8,16], index: 5, kind: input, shape index: {}]   ;;  %s8274_s6 = inlined_call_operand.vmem [shape: bf16[16,16], index: 6, kind: input, shape index: {}]   ;;  %s8275_s7 = inlined_call_operand.hbm [shape: bf16[2,16,16,16], index: 7, kind: output, shape index: {}]  }
   0x1   :  { %8487 = sst [smem:[#allocation135_spill]] %s8271_s3 }
   0x2   :  { %12 = vsyncpa [#allocation4], 0 }
   0x3   :  { %14 = vsyncpa [#allocation4 + $0x1], 0 }
   0x4   :  { %15 = vsyncpa [#allocation7], 0 }
   0x5   :  { %16 = vsyncpa [#allocation5], 0 }
   0x6   :  { %18 = vsyncpa [#allocation5 + $0x1], 0  ;;  %s4311_s24 = smov 0   ;;  %s4313_s25 = smov 0  }
   0x7   :  { %s4315_s26 = smov 0   ;;  %s4317_s27 = smov 0  }
   0x8 LB: > { %s4332_s28 = sadd.s32 4294967295, %s4259_s27   ;;  %s3768_s29 = sadd.s32 4294967294, %s4259_s27   ;;  %s4259_s27 = sphi %s4317_s27, %s9103_s27   ;;  %s4255_s26 = sphi %s4315_s26, %s9102_s26   ;;  %s4251_s25 = sphi %s4313_s25, %s9101_s25   ;;  %s4247_s24 = sphi %s4311_s24, %s9100_s24  }
   0x9   : > { %p44_p0 = scmp.ne.s32.totalorder %s4251_s25, %s4247_s24  ;;  %p45_p1 = scmp.eq.s32.totalorder %s4332_s28, 0 }
   0xa   : > { %p194_p2 = scmp.eq.s32.totalorder %s4332_s28, 1  ;;  %p200_p3 = scmp.eq.s32.totalorder %s3768_s29, 1 }
   0xb   : > { %p4341_p4 = por %p45_p1, %p44_p0  ;;  %p3769_p5 = scmp.ge.s32.totalorder %s4259_s27, 1 }
   0xc   : > { %p4346_p6 = por %p200_p3, %p44_p0  ;;  %p207_p7 = scmp.lt.s32.totalorder %s4259_s27, 3 }
   0xd   : > { %s8490_s3 = sld [smem:[#allocation135_spill]]  ;;  %s4261_s13 = smov [#allocation6]  }
   0xe   : > { %p4354_p8 = pnand %p3769_p5, %p207_p7  ;;  %s226_s14 = sshll.u32 %s4261_s13, 4  ;;  %s227_s14 = int_to_ptr.vmem [resolvable:$true] %s226_s14 }
   0xf   : > { %s4364_s15 = sadd.s32 1, %s4259_s27   ;;  %s4262_s16 = smov 128  }
  0x10   : > { %p3904_p9 = pneg %p4354_p8  ;;  %s4263_s17 = smov 8  }
  0x11   : > { %s28_s18 = ssub.s32 %s4259_s27, %s4364_s15  ;;  %s31_s19 = sadd.s32 1, %s4255_s26 }
  0x12   : > { %p3905_p10 = pnand %p3904_p9, %p45_p1  ;;  %p29_p12 = scmp.eq.s32.totalorder %s28_s18, 0 }
  0x13   : > { %s224_s11 = sshll.u32 %s8490_s3, 4  ;;  %p38_p13 = scmp.ne.s32.totalorder %s4255_s26, %s4251_s25  ;;  %s225_s11 = int_to_ptr.hbm [resolvable:$true] %s224_s11 }
  0x14   : > { %3907 = dma.hbm_to_vmem [thread:$0]  (!%p3905_p10), %s225_s11, 256, %s227_s14, [#allocation7], %s4262_s16, %s4262_s16, %s4263_s17  }
  0x15   : > { %p39_p0 = scmp.eq.s32.totalorder %s4259_s27, 0  ;;  %p3917_p3 = scmp.lt.s32.totalorder %s4259_s27, 2 }
  0x16   : > { %s4374_s20 = scalar_select %p29_p12, %s4255_s26, %s31_s19  }
  0x17   : > { %p40_p5 = por %p39_p0, %p38_p13  ;;  %p4378_p7 = por %p194_p2, %p38_p13 }
  0x18   : > { %s249_s22 = sand.u32 1, %s4255_s26   ;;  %s3810_s23 = sshll.u32 %s4259_s27, 7 }
  0x19   : > { %s3772_s29 = sshll.u32 %s249_s22, 7  ;;  %s258_s11 = scalar_lea.hbm %s8268_s0, %s3810_s23 }
  0x1a   : > { %s259_s13 = sshll.u32 %s258_s11, 4  ;;  %s253_s14 = scalar_lea.vmem [#allocation3], %s3772_s29  ;;  %s260_s13 = int_to_ptr.hbm [resolvable:$true] %s259_s13 }
  0x1b   : > { %s261_s16 = sshll.u32 %s253_s14, 4  ;;  %p4389_p9 = pnand %p3917_p3, %p40_p5  ;;  %s262_s16 = int_to_ptr.vmem [resolvable:$true] %s261_s16 }
  0x1c   : > { %s250_s18 = scalar_lea.sflag [#allocation4], %s249_s22  ;;  %s4159_s19 = sshra.s32 %s260_s13, 4  ;;  %s4160_s19 = int_to_ptr.hbm [resolvable:$true] %s4159_s19 }
  0x1d   : > { %s4161_s3 = scalar_lea.hbm %s4160_s19, 128  ;;  %p4163_p10 = pneg %p4389_p9 }
  0x1e   : > { %p4162_p2 = scmp.ne.s32.totalorder %s4160_s19, %s4161_s3  ;;  %s4166_s9 = scalar_lea.hbm %s8268_s0, 256 }
  0x1f   : > { %p4167_p0 = scmp.lt.s32.totalorder %s4160_s19, %s8268_s0  ;;  %p4168_p3 = scmp.lt.s32.totalorder %s4166_s9, %s4161_s3 }
  0x20   : > { %p4164_p12 = pnand %p4163_p10, %p4162_p2 }
  0x21   : > { %p4169_p5 = por %p4168_p3, %p4167_p0 }
  0x22   : > { %p4165_p13 = pneg %p4164_p12 }
  0x24   : > { %p4170_p11 = pnand %p4169_p5, %p4165_p13 }
  0x26   : > { %4173 = shalt.err (!%p4170_p11)
}
  0x27   : > { %s4264_s22 = smov 64   ;;  %s4265_s14 = smov 4  }
  0x28   : > { %3911 = dma.hbm_to_vmem [thread:$0]  (!%p4389_p9), %s260_s13, 2048, %s262_s16, %s250_s18, %s4264_s22, %s4264_s22, %s4265_s14  }
  0x29   : > { %273 = sbr.rel (%p4354_p8) target bundleno = 1363 (0x553), region = 48 }
  0x2e   : > { %s4406_s23 = sand.u32 1, %s4251_s25  }
  0x2f   : > { %s3776_s19 = sshll.u32 %s4406_s23, 7  ;;  %s276_s3 = scalar_lea.sflag [#allocation4], %s4406_s23 }
  0x30   : > { %s4412_s29 = scalar_lea.vmem [#allocation3], %s3776_s19 }
  0x31   : > { %4234 = dma.done.wait (%p4341_p4), %s276_s3, 2048  }
  0x32   : > { %4236 = vsyncadd (%p4341_p4), %s276_s3, 4294965248 }
  0x33   : > { %4238 = dma.done.wait (%p45_p1), [#allocation7], 256  }
  0x34   : > { %4240 = vsyncadd (%p45_p1), [#allocation7], 4294967040  ;;  %v4423_v0 = vld [vmem:[%s4412_s29 + $0x10] sm:$0xff]   ;;  %vm381_vm0 = vcmask 130048   ;;  %v4426_v1 = vld [vmem:[%s4412_s29 + $0x8] sm:$0xff]   ;;  %vm1167_vm2 = vcmask 123904  }
  0x35   : > { %v4429_v2 = vld [vmem:[%s4412_s29] sm:$0xff]   ;;  %v3824_v3 = vunpack.c.l.bf16 %v4423_v0  ;;  %v3820_v4 = vunpack.c.l.bf16 %v4426_v1  ;;  %v3825_v9 = vunpack.c.h.bf16 %v4423_v0  ;;  %v3821_v10 = vunpack.c.h.bf16 %v4426_v1  ;;  %v4459_v16 = vld [vmem:[%s4412_s29 + $0x18] sm:$0xff]   ;;  %v4474_v23 = vld [vmem:[%s4412_s29 + $0x28] sm:$0xff]   ;;  %s8138_s12 = scalar_lea.vmem [#allocation8], %s3776_s19  ;;  %s3813_s19 = sshll.u32 %s4332_s28, 7 }
  0x36   : > { %v3816_v5 = vunpack.c.l.bf16 %v4429_v2  ;;  %v3817_v11 = vunpack.c.h.bf16 %v4429_v2  ;;  %v4456_v15 = vld [vmem:[%s4412_s29 + $0x20] sm:$0xff]   ;;  %v3829_v18 = vunpack.c.h.bf16 %v4459_v16  ;;  %v3828_v19 = vunpack.c.l.bf16 %v4459_v16  ;;  %v4489_v30 = vld [vmem:[%s4412_s29 + $0x38] sm:$0xff]   ;;  %v4492_v31 = vld [vmem:[%s4412_s29 + $0x30] sm:$0xff]   ;;  %s3681_s17 = scalar_lea.hbm %s8275_s7, %s3813_s19  ;;  %s3682_s18 = sshll.u32 %s8138_s12, 4  ;;  %s3683_s18 = int_to_ptr.vmem [resolvable:$true] %s3682_s18 }
  0x37   : > { %v394_v6 = vsel %vm381_vm0, %v3824_v3, 0.0  ;;  %v388_v7 = vsel %vm381_vm0, %v3820_v4, 0.0  ;;  %v397_v12 = vsel %vm381_vm0, %v3825_v9, 0.0  ;;  %v391_v13 = vsel %vm381_vm0, %v3821_v10, 0.0  ;;  %v4507_v38 = vld [vmem:[%s4412_s29 + $0x40] sm:$0xff]   ;;  %v4522_v45 = vld [vmem:[%s4412_s29 + $0x50] sm:$0xff]  }
  0x38   : > { %v382_v8 = vsel %vm381_vm0, %v3816_v5, 0.0  ;;  %395 = vadd.xlane.f32.xlu2 %v394_v6  ;;  %389 = vadd.xlane.f32.xlu1 %v388_v7  ;;  %v385_v14 = vsel %vm381_vm0, %v3817_v11, 0.0  ;;  %v3832_v17 = vunpack.c.l.bf16 %v4456_v15  ;;  %v403_v21 = vsel %vm381_vm0, %v3829_v18, 0.0  ;;  %v4525_v46 = vld [vmem:[%s4412_s29 + $0x48] sm:$0xff]   ;;  %v4540_v53 = vld [vmem:[%s4412_s29 + $0x58] sm:$0xff]   ;;  %v4555_v60 = vld [vmem:[%s4412_s29 + $0x60] sm:$0xff]  }
  0x39   : > { %383 = vadd.xlane.f32.xlu0 %v382_v8  ;;  %v400_v22 = vsel %vm381_vm0, %v3828_v19, 0.0  ;;  %v3837_v24 = vunpack.c.h.bf16 %v4474_v23  ;;  %v3836_v25 = vunpack.c.l.bf16 %v4474_v23  ;;  %v3833_v26 = vunpack.c.h.bf16 %v4456_v15  ;;  %v4558_v61 = vld [vmem:[%s4412_s29 + $0x68] sm:$0xff]   ;;  %s3684_s9 = sshll.u32 %s3681_s17, 4  ;;  %s3670_s28 = scalar_lea.sflag [#allocation5], %s4406_s23  ;;  %s3685_s9 = int_to_ptr.hbm [resolvable:$true] %s3684_s9 }
  0x3a   : > { %v406_v20 = vsel %vm381_vm0, %v3832_v17, 0.0  ;;  %v3844_v32 = vunpack.c.l.bf16 %v4489_v30  ;;  %v3841_v33 = vunpack.c.h.bf16 %v4492_v31  ;;  %v3840_v34 = vunpack.c.l.bf16 %v4492_v31  ;;  %s4203_s10 = sshra.s32 %s3685_s9, 4  ;;  %s4209_s3 = scalar_lea.hbm %s8275_s7, 256  ;;  %s4204_s10 = int_to_ptr.hbm [resolvable:$true] %s4203_s10 }
  0x3b   : > { %v415_v27 = vsel %vm381_vm0, %v3837_v24, 0.0  ;;  %v412_v28 = vsel %vm381_vm0, %v3836_v25, 0.0  ;;  %v409_v29 = vsel %vm381_vm0, %v3833_v26, 0.0  ;;  %v3849_v39 = vunpack.c.h.bf16 %v4507_v38  ;;  %s4205_s11 = scalar_lea.hbm %s4204_s10, 128  ;;  %p4210_p11 = scmp.lt.s32.totalorder %s4204_s10, %s8275_s7 }
  0x3c   : > { %v424_v35 = vsel %vm381_vm0, %v3844_v32, 0.0  ;;  %v421_v36 = vsel %vm381_vm0, %v3841_v33, 0.0  ;;  %v418_v37 = vsel %vm381_vm0, %v3840_v34, 0.0  ;;  %v3848_v40 = vunpack.c.l.bf16 %v4507_v38  ;;  %p4206_p1 = scmp.ne.s32.totalorder %s4204_s10, %s4205_s11  ;;  %p4211_p9 = scmp.lt.s32.totalorder %s4209_s3, %s4205_s11 }
  0x3d   : > { %v3845_v41 = vunpack.c.h.bf16 %v4489_v30  ;;  %v433_v42 = vsel %vm381_vm0, %v3849_v39, 0.0  ;;  %v3856_v47 = vunpack.c.l.bf16 %v4522_v45  ;;  %v3853_v48 = vunpack.c.h.bf16 %v4525_v46 }
  0x3e   : > { %v430_v43 = vsel %vm381_vm0, %v3848_v40, 0.0  ;;  %v3852_v49 = vunpack.c.l.bf16 %v4525_v46  ;;  %v3861_v54 = vunpack.c.h.bf16 %v4540_v53  ;;  %v3860_v55 = vunpack.c.l.bf16 %v4540_v53  ;;  %p4207_p4 = pnand %p4206_p1, %p4378_p7  ;;  %p4212_p2 = por %p4211_p9, %p4210_p11 }
  0x3f   : > { %v427_v44 = vsel %vm381_vm0, %v3845_v41, 0.0  ;;  %v442_v50 = vsel %vm381_vm0, %v3856_v47, 0.0  ;;  %v439_v51 = vsel %vm381_vm0, %v3853_v48, 0.0  ;;  %v3857_v56 = vunpack.c.h.bf16 %v4522_v45 }
  0x40   : > { %398 = vadd.xlane.f32.xlu2 %v397_v12  ;;  %392 = vadd.xlane.f32.xlu1 %v391_v13  ;;  %v436_v52 = vsel %vm381_vm0, %v3852_v49, 0.0  ;;  %v451_v57 = vsel %vm381_vm0, %v3861_v54, 0.0  ;;  %v448_v58 = vsel %vm381_vm0, %v3860_v55, 0.0  ;;  %v3864_v62 = vunpack.c.l.bf16 %v4555_v60  ;;  %v4573_v13 = vld [vmem:[%s4412_s29 + $0x70] sm:$0xff]   ;;  %p4208_p8 = pneg %p4207_p4 }
  0x41   : > { %386 = vadd.xlane.f32.xlu0 %v385_v14  ;;  %v445_v59 = vsel %vm381_vm0, %v3857_v56, 0.0  ;;  %v3869_v63 = vunpack.c.h.bf16 %v4558_v61  ;;  %v3865_v6 = vunpack.c.h.bf16 %v4555_v60  ;;  %v3873_v14 = vunpack.c.h.bf16 %v4573_v13 }
  0x42   : > { %v454_v7 = vsel %vm381_vm0, %v3864_v62, 0.0  ;;  %p4213_p10 = pnand %p4212_p2, %p4208_p8 }
  0x43   : > { %v463_v8 = vsel %vm381_vm0, %v3869_v63, 0.0  ;;  %v457_v12 = vsel %vm381_vm0, %v3865_v6, 0.0 }
  0x48   : > { %407 = vadd.xlane.f32.xlu2 %v406_v20  ;;  %404 = vadd.xlane.f32.xlu1 %v403_v21  ;;  %v3872_v20 = vunpack.c.l.bf16 %v4573_v13  ;;  %v3868_v21 = vunpack.c.l.bf16 %v4558_v61 }
  0x49   : > { %401 = vadd.xlane.f32.xlu0 %v400_v22  ;;  %v469_v22 = vsel %vm381_vm0, %v3873_v14, 0.0 }
  0x50   : > { %416 = vadd.xlane.f32.xlu2 %v415_v27  ;;  %413 = vadd.xlane.f32.xlu1 %v412_v28  ;;  %v466_v27 = vsel %vm381_vm0, %v3872_v20, 0.0  ;;  %v460_v28 = vsel %vm381_vm0, %v3868_v21, 0.0 }
  0x51   : > { %410 = vadd.xlane.f32.xlu0 %v409_v29  ;;  %v4588_v29 = vld [vmem:[%s4412_s29 + $0x78] sm:$0xff]  }
  0x58   : > { %425 = vadd.xlane.f32.xlu2 %v424_v35  ;;  %422 = vadd.xlane.f32.xlu1 %v421_v36  ;;  %v3876_v35 = vunpack.c.l.bf16 %v4588_v29  ;;  %v3877_v36 = vunpack.c.h.bf16 %v4588_v29 }
  0x59   : > { %419 = vadd.xlane.f32.xlu0 %v418_v37 }
  0x5a   : > { %v472_v37 = vsel %vm381_vm0, %v3876_v35, 0.0 }
  0x60   : > { %434 = vadd.xlane.f32.xlu2 %v433_v42  ;;  %431 = vadd.xlane.f32.xlu1 %v430_v43  ;;  %v475_v42 = vsel %vm381_vm0, %v3877_v36, 0.0  ;;  %v4266_v43 = vmov 16.0  }
  0x61   : > { %428 = vadd.xlane.f32.xlu0 %v427_v44  ;;  %3965 = vrcp.f32 %v4266_v43 }
  0x67   : > { %v3966_v44 = vpop.eup %3965 }
  0x68   : > { %443 = vadd.xlane.f32.xlu2 %v442_v50  ;;  %440 = vadd.xlane.f32.xlu1 %v439_v51  ;;  %v479_v50 = vmul.f32 16.0, %v3966_v44  ;;  %vm483_vm1 = vweird.f32 %v3966_v44 }
  0x69   : > { %437 = vadd.xlane.f32.xlu0 %v436_v52 }
  0x6a   : > { %v480_v51 = vsub.f32 1.0, %v479_v50 }
  0x6c   : > { %v481_v52 = vmul.f32 %v3966_v44, %v480_v51 }
  0x70   : > { %452 = vadd.xlane.f32.xlu2 %v451_v57  ;;  %449 = vadd.xlane.f32.xlu1 %v448_v58  ;;  %v482_v57 = vadd.f32 %v3966_v44, %v481_v52 }
  0x71   : > { %446 = vadd.xlane.f32.xlu0 %v445_v59 }
  0x72   : > { %v4598_v58 = vsel %vm483_vm1, %v3966_v44, %v482_v57 }
  0x78   : > { %455 = vadd.xlane.f32.xlu2 %v454_v7  ;;  %464 = vadd.xlane.f32.xlu1 %v463_v8 }
  0x79   : > { %458 = vadd.xlane.f32.xlu0 %v457_v12 }
  0x80   : > { %470 = vadd.xlane.f32.xlu2 %v469_v22  ;;  %467 = vadd.xlane.f32.xlu1 %v466_v27 }
  0x81   : > { %461 = vadd.xlane.f32.xlu0 %v460_v28 }
  0x88   : > { %473 = vadd.xlane.f32.xlu2 %v472_v37 }
  0x89   : > { %476 = vadd.xlane.f32.xlu0 %v475_v42 }
  0xab   : > { %v396_v59 = vpop.xlane.xlu2 %395  ;;  %v390_v7 = vpop.xlane.xlu1 %389 }
  0xac   : > { %v384_v8 = vpop.xlane.xlu0 %383  ;;  %v489_v52 = vmul.f32 %v4598_v58, %v396_v59 }
  0xad   : > { %v485_v12 = vmul.f32 %v4598_v58, %v384_v8  ;;  %v487_v8 = vmul.f32 %v4598_v58, %v390_v7 }
  0xaf   : > { %v4603_v22 = vsub.f32 %v3816_v5, %v485_v12  ;;  %v4639_v2 = vsub.f32 %v3820_v4, %v487_v8 }
  0xb1   : > { %v549_v27 = vmul.f32 %v4603_v22, %v4603_v22  ;;  %v551_v4 = vmul.f32 %v4639_v2, %v4639_v2 }
  0xb3   : > { %v399_v28 = vpop.xlane.xlu2 %398  ;;  %v393_v37 = vpop.xlane.xlu1 %392  ;;  %v581_v42 = vsel %vm381_vm0, %v549_v27, 0.0 }
  0xb4   : > { %v490_v43 = vmul.f32 %v4598_v58, %v399_v28  ;;  %v488_v44 = vmul.f32 %v4598_v58, %v393_v37  ;;  %582 = vadd.xlane.f32.xlu0 %v581_v42  ;;  %v387_v50 = vpop.xlane.xlu0 %386  ;;  %v4633_v28 = vsub.f32 %v3824_v3, %v489_v52 }
  0xb5   : > { %v486_v51 = vmul.f32 %v4598_v58, %v387_v50 }
  0xb6   : > { %v4614_v5 = vsub.f32 %v3825_v9, %v490_v43  ;;  %v4618_v57 = vsub.f32 %v3821_v10, %v488_v44  ;;  %v553_v44 = vmul.f32 %v4633_v28, %v4633_v28 }
  0xb7   : > { %v4623_v12 = vsub.f32 %v3817_v11, %v486_v51 }
  0xb8   : > { %v552_v27 = vmul.f32 %v4618_v57, %v4618_v57  ;;  %v554_v59 = vmul.f32 %v4614_v5, %v4614_v5  ;;  %v593_v52 = vsel %vm381_vm0, %v553_v44, 0.0 }
  0xb9   : > { %v550_v9 = vmul.f32 %v4623_v12, %v4623_v12 }
  0xba   : > { %v590_v10 = vsel %vm381_vm0, %v552_v27, 0.0  ;;  %v596_v7 = vsel %vm381_vm0, %v554_v59, 0.0  ;;  %v587_v59 = vsel %vm381_vm0, %v551_v4, 0.0 }
  0xbb   : > { %v408_v11 = vpop.xlane.xlu2 %407  ;;  %591 = vadd.xlane.f32.xlu2 %v590_v10  ;;  %v405_v37 = vpop.xlane.xlu1 %404  ;;  %v584_v42 = vsel %vm381_vm0, %v550_v9, 0.0 }
  0xbc   : > { %597 = vadd.xlane.f32.xlu0 %v596_v7  ;;  %585 = vadd.xlane.f32.xlu1 %v584_v42  ;;  %v402_v43 = vpop.xlane.xlu0 %401  ;;  %v492_v0 = vmul.f32 %v4598_v58, %v405_v37  ;;  %v493_v37 = vmul.f32 %v4598_v58, %v408_v11 }
  0xbd   : > { %v491_v3 = vmul.f32 %v4598_v58, %v402_v43 }
  0xbe   : > { %v4654_v50 = vsub.f32 %v3829_v18, %v492_v0 }
  0xbf   : > { %v4648_v1 = vsub.f32 %v3828_v19, %v491_v3 }
  0xc0   : > { %v556_v18 = vmul.f32 %v4654_v50, %v4654_v50 }
  0xc1   : > { %v555_v51 = vmul.f32 %v4648_v1, %v4648_v1 }
  0xc2   : > { %v602_v0 = vsel %vm381_vm0, %v556_v18, 0.0 }
  0xc3   : > { %v417_v8 = vpop.xlane.xlu2 %416  ;;  %594 = vadd.xlane.f32.xlu2 %v593_v52  ;;  %v414_v27 = vpop.xlane.xlu1 %413  ;;  %v599_v19 = vsel %vm381_vm0, %v555_v51, 0.0 }
  0xc4   : > { %v495_v9 = vmul.f32 %v4598_v58, %v414_v27  ;;  %588 = vadd.xlane.f32.xlu1 %v587_v59  ;;  %600 = vadd.xlane.f32.xlu0 %v599_v19  ;;  %v411_v10 = vpop.xlane.xlu0 %410  ;;  %v496_v15 = vmul.f32 %v4598_v58, %v417_v8 }
  0xc5   : > { %v494_v16 = vmul.f32 %v4598_v58, %v411_v10 }
  0xc6   : > { %v4667_v7 = vsub.f32 %v3836_v25, %v495_v9  ;;  %v4682_v25 = vsub.f32 %v3832_v17, %v493_v37 }
  0xc7   : > { %v4672_v42 = vsub.f32 %v3833_v26, %v494_v16 }
  0xc8   : > { %v559_v43 = vmul.f32 %v4667_v7, %v4667_v7  ;;  %8494 = vst [vmem:[#allocation12_spill] sm:$0xff] %v4682_v25  ;;  %v557_v19 = vmul.f32 %v4682_v25, %v4682_v25 }
  0xc9   : > { %v558_v3 = vmul.f32 %v4672_v42, %v4672_v42 }
  0xca   : > { %v611_v44 = vsel %vm381_vm0, %v559_v43, 0.0  ;;  %v605_v31 = vsel %vm381_vm0, %v557_v19, 0.0 }
  0xcb   : > { %v426_v4 = vpop.xlane.xlu2 %425  ;;  %v423_v11 = vpop.xlane.xlu1 %422  ;;  %v608_v51 = vsel %vm381_vm0, %v558_v3, 0.0 }
  0xcc   : > { %v498_v26 = vmul.f32 %v4598_v58, %v423_v11  ;;  %603 = vadd.xlane.f32.xlu1 %v602_v0  ;;  %612 = vadd.xlane.f32.xlu0 %v611_v44  ;;  %v420_v52 = vpop.xlane.xlu0 %419  ;;  %v499_v23 = vmul.f32 %v4598_v58, %v426_v4 }
  0xcd   : > { %609 = vadd.xlane.f32.xlu2 %v608_v51  ;;  %v497_v27 = vmul.f32 %v4598_v58, %v420_v52 }
  0xce   : > { %v4689_v59 = vsub.f32 %v3841_v33, %v498_v26  ;;  %v4705_v33 = vsub.f32 %v3837_v24, %v496_v15 }
  0xcf   : > { %v4694_v17 = vsub.f32 %v3840_v34, %v497_v27 }
  0xd0   : > { %8495 = vst [vmem:[#allocation13_spill] sm:$0xff] %v4689_v59  ;;  %v562_v9 = vmul.f32 %v4689_v59, %v4689_v59  ;;  %v560_v44 = vmul.f32 %v4705_v33, %v4705_v33 }
  0xd1   : > { %8496 = vst [vmem:[#allocation14_spill] sm:$0xff] %v4694_v17  ;;  %v561_v10 = vmul.f32 %v4694_v17, %v4694_v17 }
  0xd2   : > { %v620_v16 = vsel %vm381_vm0, %v562_v9, 0.0  ;;  %8497 = vst [vmem:[#allocation15_spill] sm:$0xff] %v4705_v33 }
  0xd3   : > { %v435_v8 = vpop.xlane.xlu2 %434  ;;  %v432_v18 = vpop.xlane.xlu1 %431  ;;  %v617_v34 = vsel %vm381_vm0, %v561_v10, 0.0 }
  0xd4   : > { %v501_v37 = vmul.f32 %v4598_v58, %v432_v18  ;;  %606 = vadd.xlane.f32.xlu1 %v605_v31  ;;  %621 = vadd.xlane.f32.xlu0 %v620_v16  ;;  %v429_v43 = vpop.xlane.xlu0 %428  ;;  %v502_v30 = vmul.f32 %v4598_v58, %v435_v8 }
  0xd5   : > { %618 = vadd.xlane.f32.xlu2 %v617_v34  ;;  %v500_v0 = vmul.f32 %v4598_v58, %v429_v43 }
  0xd6   : > { %v4713_v3 = vsub.f32 %v3848_v40, %v501_v37  ;;  %v4729_v40 = vsub.f32 %v3844_v32, %v499_v23 }
  0xd7   : > { %v4718_v24 = vsub.f32 %v3845_v41, %v500_v0  ;;  %v614_v41 = vsel %vm381_vm0, %v560_v44, 0.0 }
  0xd8   : > { %8498 = vst [vmem:[#allocation16_spill] sm:$0xff] %v4713_v3  ;;  %v565_v11 = vmul.f32 %v4713_v3, %v4713_v3  ;;  %v563_v16 = vmul.f32 %v4729_v40, %v4729_v40 }
  0xd9   : > { %8499 = vst [vmem:[#allocation17_spill] sm:$0xff] %v4718_v24  ;;  %v564_v51 = vmul.f32 %v4718_v24, %v4718_v24 }
  0xda   : > { %v629_v26 = vsel %vm381_vm0, %v565_v11, 0.0  ;;  %8500 = vst [vmem:[#allocation18_spill] sm:$0xff] %v4729_v40  ;;  %v623_v46 = vsel %vm381_vm0, %v563_v16, 0.0 }
  0xdb   : > { %v444_v4 = vpop.xlane.xlu2 %443  ;;  %v441_v52 = vpop.xlane.xlu1 %440  ;;  %v626_v27 = vsel %vm381_vm0, %v564_v51, 0.0 }
  0xdc   : > { %v504_v15 = vmul.f32 %v4598_v58, %v441_v52  ;;  %615 = vadd.xlane.f32.xlu1 %v614_v41  ;;  %630 = vadd.xlane.f32.xlu0 %v629_v26  ;;  %v438_v19 = vpop.xlane.xlu0 %437  ;;  %v505_v38 = vmul.f32 %v4598_v58, %v444_v4 }
  0xdd   : > { %627 = vadd.xlane.f32.xlu2 %v626_v27  ;;  %v503_v9 = vmul.f32 %v4598_v58, %v438_v19 }
  0xde   : > { %v4737_v10 = vsub.f32 %v3853_v48, %v504_v15  ;;  %v4753_v48 = vsub.f32 %v3849_v39, %v502_v30  ;;  %v4267_v30 = vmov 0.0  }
  0xdf   : > { %v4742_v32 = vsub.f32 %v3852_v49, %v503_v9  ;;  %1165 = vst.msk [vmem:[#allocation2] sm:$0xff] %vm381_vm0, %v4267_v30 }
  0xe0   : > { %8501 = vst [vmem:[#allocation19_spill] sm:$0xff] %v4737_v10  ;;  %v568_v18 = vmul.f32 %v4737_v10, %v4737_v10  ;;  %v566_v11 = vmul.f32 %v4753_v48, %v4753_v48 }
  0xe1   : > { %8502 = vst [vmem:[#allocation20_spill] sm:$0xff] %v4742_v32  ;;  %v567_v31 = vmul.f32 %v4742_v32, %v4742_v32 }
  0xe2   : > { %v638_v34 = vsel %vm381_vm0, %v568_v18, 0.0  ;;  %8503 = vst [vmem:[#allocation21_spill] sm:$0xff] %v4753_v48 }
  0xe3   : > { %v453_v8 = vpop.xlane.xlu2 %452  ;;  %v450_v37 = vpop.xlane.xlu1 %449  ;;  %v635_v49 = vsel %vm381_vm0, %v567_v31, 0.0  ;;  %1166 = vst.msk [vmem:[#allocation2 + $0x8] sm:$0xff] %vm381_vm0, %v4267_v30 }
  0xe4   : > { %v507_v43 = vmul.f32 %v4598_v58, %v450_v37  ;;  %624 = vadd.xlane.f32.xlu1 %v623_v46  ;;  %639 = vadd.xlane.f32.xlu0 %v638_v34  ;;  %v447_v0 = vpop.xlane.xlu0 %446  ;;  %v508_v16 = vmul.f32 %v4598_v58, %v453_v8  ;;  %1169 = vst.msk [vmem:[#allocation2 + $0x18] sm:$0xff] %vm381_vm0, %v4267_v30 }
  0xe5   : > { %636 = vadd.xlane.f32.xlu2 %v635_v49  ;;  %v506_v23 = vmul.f32 %v4598_v58, %v447_v0  ;;  %1170 = vst.msk [vmem:[#allocation2 + $0x20] sm:$0xff] %vm381_vm0, %v4267_v30 }
  0xe6   : > { %v4761_v44 = vsub.f32 %v3860_v55, %v507_v43  ;;  %v4777_v55 = vsub.f32 %v3856_v47, %v505_v38  ;;  %1172 = vst.msk [vmem:[#allocation2 + $0x30] sm:$0xff] %vm381_vm0, %v4267_v30  ;;  %v4818_v8 = vsub.f32 %v3861_v54, %v508_v16 }
  0xe7   : > { %v4766_v39 = vsub.f32 %v3857_v56, %v506_v23  ;;  %v632_v56 = vsel %vm381_vm0, %v566_v11, 0.0  ;;  %1173 = vst.msk [vmem:[#allocation2 + $0x38] sm:$0xff] %vm381_vm0, %v4267_v30 }
  0xe8   : > { %8504 = vst [vmem:[#allocation22_spill] sm:$0xff] %v4761_v44  ;;  %v571_v51 = vmul.f32 %v4761_v44, %v4761_v44  ;;  %v569_v31 = vmul.f32 %v4777_v55, %v4777_v55  ;;  %v572_v38 = vmul.f32 %v4818_v8, %v4818_v8 }
  0xe9   : > { %8505 = vst [vmem:[#allocation23_spill] sm:$0xff] %v4766_v39  ;;  %v570_v26 = vmul.f32 %v4766_v39, %v4766_v39 }
  0xea   : > { %v647_v52 = vsel %vm381_vm0, %v571_v51, 0.0  ;;  %8506 = vst [vmem:[#allocation24_spill] sm:$0xff] %v4777_v55  ;;  %v641_v49 = vsel %vm381_vm0, %v569_v31, 0.0 }
  0xeb   : > { %v456_v4 = vpop.xlane.xlu2 %455  ;;  %v465_v41 = vpop.xlane.xlu1 %464  ;;  %v644_v27 = vsel %vm381_vm0, %v570_v26, 0.0  ;;  %8510 = vst [vmem:[#allocation28_spill] sm:$0xff] %v4818_v8 }
  0xec   : > { %v509_v15 = vmul.f32 %v4598_v58, %v456_v4  ;;  %633 = vadd.xlane.f32.xlu1 %v632_v56  ;;  %648 = vadd.xlane.f32.xlu0 %v647_v52  ;;  %v459_v19 = vpop.xlane.xlu0 %458  ;;  %v512_v47 = vmul.f32 %v4598_v58, %v465_v41  ;;  %1175 = vst.msk [vmem:[#allocation2 + $0x48] sm:$0xff] %vm381_vm0, %v4267_v30  ;;  %v650_v4 = vsel %vm381_vm0, %v572_v38, 0.0 }
  0xed   : > { %645 = vadd.xlane.f32.xlu2 %v644_v27  ;;  %v510_v9 = vmul.f32 %v4598_v58, %v459_v19  ;;  %1176 = vst.msk [vmem:[#allocation2 + $0x50] sm:$0xff] %vm381_vm0, %v4267_v30 }
  0xee   : > { %v4787_v45 = vsub.f32 %v3864_v62, %v509_v15  ;;  %v4811_v60 = vsub.f32 %v3869_v63, %v512_v47  ;;  %1178 = vst.msk [vmem:[#allocation2 + $0x60] sm:$0xff] %vm381_vm0, %v4267_v30 }
  0xef   : > { %v4795_v18 = vsub.f32 %v3865_v6, %v510_v9  ;;  %1179 = vst.msk [vmem:[#allocation2 + $0x68] sm:$0xff] %vm381_vm0, %v4267_v30 }
  0xf0   : > { %8507 = vst [vmem:[#allocation25_spill] sm:$0xff] %v4787_v45  ;;  %v573_v62 = vmul.f32 %v4787_v45, %v4787_v45  ;;  %v576_v23 = vmul.f32 %v4811_v60, %v4811_v60 }
  0xf1   : > { %8508 = vst [vmem:[#allocation26_spill] sm:$0xff] %v4795_v18  ;;  %v574_v34 = vmul.f32 %v4795_v18, %v4795_v18 }
  0xf2   : > { %8509 = vst [vmem:[#allocation27_spill] sm:$0xff] %v4811_v60  ;;  %v653_v6 = vsel %vm381_vm0, %v573_v62, 0.0  ;;  %v662_v51 = vsel %vm381_vm0, %v576_v23, 0.0 }
  0xf3   : > { %v471_v37 = vpop.xlane.xlu2 %470  ;;  %v468_v46 = vpop.xlane.xlu1 %467  ;;  %v656_v43 = vsel %vm381_vm0, %v574_v34, 0.0  ;;  %1181 = vst.msk [vmem:[#allocation2 + $0x78] sm:$0xff] %vm381_vm0, %v4267_v30 }
  0xf4   : > { %v513_v63 = vmul.f32 %v4598_v58, %v468_v46  ;;  %642 = vadd.xlane.f32.xlu1 %v641_v49  ;;  %657 = vadd.xlane.f32.xlu0 %v656_v43  ;;  %v462_v0 = vpop.xlane.xlu0 %461  ;;  %1182 = vst.msk [vmem:[#allocation2 + $0x80] sm:$0xff] %vm381_vm0, %v4267_v30  ;;  %v514_v15 = vmul.f32 %v4598_v58, %v471_v37 }
  0xf5   : > { %654 = vadd.xlane.f32.xlu2 %v653_v6  ;;  %v511_v53 = vmul.f32 %v4598_v58, %v462_v0  ;;  %1184 = vst.msk [vmem:[#allocation2 + $0x90] sm:$0xff] %vm381_vm0, %v4267_v30 }
  0xf6   : > { %v4830_v54 = vsub.f32 %v3872_v20, %v513_v63  ;;  %1185 = vst.msk [vmem:[#allocation2 + $0x98] sm:$0xff] %vm381_vm0, %v4267_v30 }
  0xf7   : > { %v4846_v20 = vsub.f32 %v3868_v21, %v511_v53  ;;  %1187 = vst.msk [vmem:[#allocation2 + $0xa8] sm:$0xff] %vm381_vm0, %v4267_v30 }
  0xf8   : > { %8511 = vst [vmem:[#allocation29_spill] sm:$0xff] %v4830_v54  ;;  %v577_v11 = vmul.f32 %v4830_v54, %v4830_v54 }
  0xf9   : > { %8512 = vst [vmem:[#allocation30_spill] sm:$0xff] %v4846_v20  ;;  %v575_v56 = vmul.f32 %v4846_v20, %v4846_v20 }
  0xfa   : > { %v665_v26 = vsel %vm381_vm0, %v577_v11, 0.0  ;;  %1188 = vst.msk [vmem:[#allocation2 + $0xb0] sm:$0xff] %vm381_vm0, %v4267_v30 }
  0xfb   : > { %v474_v52 = vpop.xlane.xlu2 %473  ;;  %1190 = vst.msk [vmem:[#allocation2 + $0xc0] sm:$0xff] %vm381_vm0, %v4267_v30 }
  0xfc   : > { %v515_v61 = vmul.f32 %v4598_v58, %v474_v52  ;;  %651 = vadd.xlane.f32.xlu1 %v650_v4  ;;  %666 = vadd.xlane.f32.xlu0 %v665_v26  ;;  %v477_v21 = vpop.xlane.xlu0 %476  ;;  %1191 = vst.msk [vmem:[#allocation2 + $0xc8] sm:$0xff] %vm381_vm0, %v4267_v30 }
  0xfd   : > { %663 = vadd.xlane.f32.xlu2 %v662_v51  ;;  %v516_v41 = vmul.f32 %v4598_v58, %v477_v21  ;;  %1193 = vst.msk [vmem:[#allocation2 + $0xd8] sm:$0xff] %vm381_vm0, %v4267_v30 }
  0xfe   : > { %v4867_v27 = vsub.f32 %v3876_v35, %v515_v61  ;;  %v659_v35 = vsel %vm381_vm0, %v575_v56, 0.0  ;;  %1194 = vst.msk [vmem:[#allocation2 + $0xe0] sm:$0xff] %vm381_vm0, %v4267_v30 }
  0xff   : > { %v4874_v19 = vsub.f32 %v3877_v36, %v516_v41  ;;  %1196 = vst.msk [vmem:[#allocation2 + $0xf0] sm:$0xff] %vm381_vm0, %v4267_v30  ;;  %v4892_v36 = vsub.f32 %v3873_v14, %v514_v15 }
 0x100   : > { %8513 = vst [vmem:[#allocation31_spill] sm:$0xff] %v4867_v27  ;;  %v579_v9 = vmul.f32 %v4867_v27, %v4867_v27 }
 0x101   : > { %8514 = vst [vmem:[#allocation32_spill] sm:$0xff] %v4874_v19  ;;  %v580_v47 = vmul.f32 %v4874_v19, %v4874_v19  ;;  %v578_v13 = vmul.f32 %v4892_v36, %v4892_v36 }
 0x102   : > { %v671_v29 = vsel %vm381_vm0, %v579_v9, 0.0  ;;  %8515 = vst [vmem:[#allocation33_spill] sm:$0xff] %v4892_v36 }
 0x103   : > { %v674_v16 = vsel %vm381_vm0, %v580_v47, 0.0  ;;  %1197 = vst.msk [vmem:[#allocation2 + $0xf8] sm:$0xff] %vm381_vm0, %v4267_v30  ;;  %v668_v14 = vsel %vm381_vm0, %v578_v13, 0.0 }
 0x104   : > { %660 = vadd.xlane.f32.xlu1 %v659_v35  ;;  %675 = vadd.xlane.f32.xlu0 %v674_v16  ;;  %1199 = vst.msk [vmem:[#allocation2 + $0x108] sm:$0xff] %vm381_vm0, %v4267_v30 }
 0x105   : > { %672 = vadd.xlane.f32.xlu2 %v671_v29  ;;  %1200 = vst.msk [vmem:[#allocation2 + $0x110] sm:$0xff] %vm381_vm0, %v4267_v30  ;;  %v4974_v29 = vld [vmem:[%s8269_s1] ss:$0 sm:$0xff] }
 0x106   : > { %1202 = vst.msk [vmem:[#allocation2 + $0x120] sm:$0xff] %vm381_vm0, %v4267_v30 }
 0x107   : > { %1203 = vst.msk [vmem:[#allocation2 + $0x128] sm:$0xff] %vm381_vm0, %v4267_v30 }
 0x108   : > { %1205 = vst.msk [vmem:[#allocation2 + $0x138] sm:$0xff] %vm381_vm0, %v4267_v30 }
 0x109   : > { %1206 = vst.msk [vmem:[#allocation2 + $0x140] sm:$0xff] %vm381_vm0, %v4267_v30 }
 0x10a   : > { %1208 = vst.msk [vmem:[#allocation2 + $0x150] sm:$0xff] %vm381_vm0, %v4267_v30 }
 0x10b   : > { %1209 = vst.msk [vmem:[#allocation2 + $0x158] sm:$0xff] %vm381_vm0, %v4267_v30 }
 0x10c   : > { %669 = vadd.xlane.f32.xlu1 %v668_v14  ;;  %1211 = vst.msk [vmem:[#allocation2 + $0x168] sm:$0xff] %vm381_vm0, %v4267_v30 }
 0x10d   : > { %1212 = vst.msk [vmem:[#allocation2 + $0x170] sm:$0xff] %vm381_vm0, %v4267_v30 }
 0x10e   : > { %1214 = vst.msk [vmem:[#allocation2 + $0x180] sm:$0xff] %vm381_vm0, %v4267_v30 }
 0x10f   : > { %1215 = vst.msk [vmem:[#allocation2 + $0x188] sm:$0xff] %vm381_vm0, %v4267_v30 }
 0x110   : > { %1217 = vst.msk [vmem:[#allocation2 + $0x198] sm:$0xff] %vm381_vm0, %v4267_v30 }
 0x111   : > { %1218 = vst.msk [vmem:[#allocation2 + $0x1a0] sm:$0xff] %vm381_vm0, %v4267_v30 }
 0x112   : > { %1174 = vst.msk [vmem:[#allocation2 + $0x40] sm:$0x3] %vm1167_vm2, %v4267_v30 }
 0x113   : > { %1168 = vst.msk [vmem:[#allocation2 + $0x10] sm:$0x3] %vm1167_vm2, %v4267_v30 }
 0x114   : > { %1171 = vst.msk [vmem:[#allocation2 + $0x28] sm:$0x3] %vm1167_vm2, %v4267_v30 }
 0x115   : > { %1177 = vst.msk [vmem:[#allocation2 + $0x58] sm:$0x3] %vm1167_vm2, %v4267_v30 }
 0x116   : > { %1180 = vst.msk [vmem:[#allocation2 + $0x70] sm:$0x3] %vm1167_vm2, %v4267_v30 }
 0x117   : > { %1183 = vst.msk [vmem:[#allocation2 + $0x88] sm:$0x3] %vm1167_vm2, %v4267_v30 }
 0x118   : > { %1186 = vst.msk [vmem:[#allocation2 + $0xa0] sm:$0x3] %vm1167_vm2, %v4267_v30 }
 0x119   : > { %1189 = vst.msk [vmem:[#allocation2 + $0xb8] sm:$0x3] %vm1167_vm2, %v4267_v30 }
 0x11a   : > { %1192 = vst.msk [vmem:[#allocation2 + $0xd0] sm:$0x3] %vm1167_vm2, %v4267_v30 }
 0x11b   : > { %1195 = vst.msk [vmem:[#allocation2 + $0xe8] sm:$0x3] %vm1167_vm2, %v4267_v30 }
 0x11c   : > { %1198 = vst.msk [vmem:[#allocation2 + $0x100] sm:$0x3] %vm1167_vm2, %v4267_v30 }
 0x11d   : > { %1201 = vst.msk [vmem:[#allocation2 + $0x118] sm:$0x3] %vm1167_vm2, %v4267_v30 }
 0x11e   : > { %1204 = vst.msk [vmem:[#allocation2 + $0x130] sm:$0x3] %vm1167_vm2, %v4267_v30 }
 0x11f   : > { %1207 = vst.msk [vmem:[#allocation2 + $0x148] sm:$0x3] %vm1167_vm2, %v4267_v30 }
 0x120   : > { %1210 = vst.msk [vmem:[#allocation2 + $0x160] sm:$0x3] %vm1167_vm2, %v4267_v30 }
 0x121   : > { %1213 = vst.msk [vmem:[#allocation2 + $0x178] sm:$0x3] %vm1167_vm2, %v4267_v30 }
 0x122   : > { %1216 = vst.msk [vmem:[#allocation2 + $0x190] sm:$0x3] %vm1167_vm2, %v4267_v30 }
 0x123   : > { %1219 = vst.msk [vmem:[#allocation2 + $0x1a8] sm:$0x3] %vm1167_vm2, %v4267_v30 }
 0x127   : > { %v583_v31 = vpop.xlane.xlu0 %582 }
 0x128   : > { %v677_v62 = vmul.f32 %v583_v31, %v4598_v58 }
 0x12a   : > { %v709_v34 = vadd.f32 1e-06, %v677_v62  ;;  %v4981_v62 = vld [vmem:[%s8270_s2] ss:$0 sm:$0xff] }
 0x12c   : > { %3967 = vrsqrt.f32 %v709_v34  ;;  %vm747_vm4 = vweird.f32 %v709_v34 }
 0x12e   : > { %v592_v6 = vpop.xlane.xlu2 %591 }
 0x12f   : > { %v680_v37 = vmul.f32 %v592_v6, %v4598_v58  ;;  %v586_v46 = vpop.xlane.xlu1 %585  ;;  %v598_v49 = vpop.xlane.xlu0 %597 }
 0x130   : > { %v678_v43 = vmul.f32 %v586_v46, %v4598_v58  ;;  %v682_v0 = vmul.f32 %v598_v49, %v4598_v58 }
 0x131   : > { %v712_v63 = vadd.f32 1e-06, %v680_v37 }
 0x132   : > { %v3968_v53 = vpop.eup %3967  ;;  %v710_v23 = vadd.f32 1e-06, %v678_v43  ;;  %v714_v51 = vadd.f32 1e-06, %v682_v0 }
 0x133   : > { %v742_v38 = vmul.f32 %v3968_v53, %v709_v34  ;;  %3969 = vrsqrt.f32 %v712_v63  ;;  %vm748_vm3 = vweird.f32 %v3968_v53  ;;  %vm777_vm6 = vweird.f32 %v712_v63 }
 0x134   : > { %3971 = vrsqrt.f32 %v710_v23  ;;  %vm749_vm5 = vmor %vm747_vm4, %vm748_vm3  ;;  %vm757_vm10 = vweird.f32 %v710_v23  ;;  %vm797_vm12 = vweird.f32 %v714_v51 }
 0x135   : > { %v743_v11 = vmul.f32 %v3968_v53, %v742_v38  ;;  %3973 = vrsqrt.f32 %v714_v51 }
 0x136   : > { %v595_v26 = vpop.xlane.xlu2 %594 }
 0x137   : > { %v744_v52 = vmul.f32 0.5, %v743_v11  ;;  %v681_v4 = vmul.f32 %v595_v26, %v4598_v58  ;;  %v589_v9 = vpop.xlane.xlu1 %588 }
 0x138   : > { %v679_v31 = vmul.f32 %v589_v9, %v4598_v58 }
 0x139   : > { %v3970_v61 = vpop.eup %3969  ;;  %v745_v21 = vsub.f32 1.5, %v744_v52  ;;  %v4969_v15 = vadd.f32 1e-06, %v681_v4 }
 0x13a   : > { %v3972_v41 = vpop.eup %3971  ;;  %v772_v56 = vmul.f32 %v3970_v61, %v712_v63  ;;  %vm778_vm7 = vweird.f32 %v3970_v61  ;;  %v4985_v38 = vadd.f32 1e-06, %v679_v31  ;;  %v601_v31 = vpop.xlane.xlu0 %600 }
 0x13b   : > { %v746_v35 = vmul.f32 %v3968_v53, %v745_v21  ;;  %v752_v47 = vmul.f32 %v3972_v41, %v710_v23  ;;  %3975 = vrsqrt.f32 %v4969_v15  ;;  %v3974_v16 = vpop.eup %3973  ;;  %vm758_vm8 = vweird.f32 %v3972_v41  ;;  %vm779_vm9 = vmor %vm777_vm6, %vm778_vm7 }
 0x13c   : > { %v773_v30 = vmul.f32 %v3970_v61, %v772_v56  ;;  %v792_v37 = vmul.f32 %v3974_v16, %v714_v51  ;;  %vm759_vm11 = vmor %vm757_vm10, %vm758_vm8  ;;  %vm798_vm13 = vweird.f32 %v3974_v16  ;;  %3977 = vrsqrt.f32 %v4985_v38 }
 0x13d   : > { %v750_v13 = vsel %vm749_vm5, %v3968_v53, %v746_v35  ;;  %v753_v14 = vmul.f32 %v3972_v41, %v752_v47  ;;  %vm799_vm14 = vmor %vm797_vm12, %vm798_vm13  ;;  %vm787_vm1 = vweird.f32 %v4969_v15  ;;  %vm767_vm4 = vweird.f32 %v4985_v38 }
 0x13e   : > { %v1061_v34 = vmul.f32 %v750_v13, %v4603_v22  ;;  %v774_v6 = vmul.f32 0.5, %v773_v30  ;;  %v793_v0 = vmul.f32 %v3974_v16, %v792_v37  ;;  %vm1471_vm6 = vcmask 1046528  }
 0x13f   : > { %v754_v46 = vmul.f32 0.5, %v753_v14  ;;  %vm1713_vm7 = vcmask 1045504  }
 0x140   : > { %v1097_v49 = vmul.f32 %v4974_v29, %v1061_v34  ;;  %v775_v43 = vsub.f32 1.5, %v774_v6  ;;  %v794_v4 = vmul.f32 0.5, %v793_v0 }
 0x141   : > { %v755_v53 = vsub.f32 1.5, %v754_v46  ;;  %v3976_v11 = vpop.eup %3975 }
 0x142   : > { %v4988_v26 = vadd.f32 %v4981_v62, %v1097_v49  ;;  %v776_v52 = vmul.f32 %v3970_v61, %v775_v43  ;;  %v782_v63 = vmul.f32 %v3976_v11, %v4969_v15  ;;  %v795_v56 = vsub.f32 1.5, %v794_v4  ;;  %v3978_v37 = vpop.eup %3977  ;;  %v613_v36 = vpop.xlane.xlu0 %612 }
 0x143   : > { %v756_v22 = vmul.f32 %v3972_v41, %v755_v53  ;;  %vm788_vm15 = vweird.f32 %v3976_v11  ;;  %v762_v0 = vmul.f32 %v3978_v37, %v4985_v38  ;;  %vm768_vm3 = vweird.f32 %v3978_v37 }
 0x144   : > { %8516 = vst [vmem:[#allocation34_spill] sm:$0xff] %v4988_v26  ;;  %v780_v21 = vsel %vm779_vm9, %v3970_v61, %v776_v52  ;;  %v783_v47 = vmul.f32 %v3976_v11, %v782_v63  ;;  %v796_v13 = vmul.f32 %v3974_v16, %v795_v56  ;;  %vm789_vm2 = vmor %vm787_vm1, %vm788_vm15  ;;  %v5025_v63 = vld [vmem:[#allocation6] sm:$0xff] }
 0x145   : > { %1221 = vst.msk [vmem:[#allocation2 + $0x19] sm:$0xff] %vm381_vm0, %v4988_v26  ;;  %v1064_v9 = vmul.f32 %v780_v21, %v4618_v57  ;;  %v760_v35 = vsel %vm759_vm11, %v3972_v41, %v756_v22  ;;  %v763_v4 = vmul.f32 %v3978_v37, %v762_v0  ;;  %v5028_v21 = vperm.slane %v5025_v63, 1  ;;  %vm769_vm5 = vmor %vm767_vm4, %vm768_vm3 }
 0x146   : > { %v1062_v30 = vmul.f32 %v760_v35, %v4623_v12  ;;  %v784_v14 = vmul.f32 0.5, %v783_v47  ;;  %v800_v34 = vsel %vm799_vm14, %v3974_v16, %v796_v13  ;;  %v683_v12 = vmul.f32 %v601_v31, %v4598_v58  ;;  %v1254_v35 = vld [vmem:[#allocation2 + $0x8] sm:$0xff]  ;;  %v1255_v31 = vld [vmem:[#allocation2 + $0x10] sm:$0x3] }
 0x147   : > { %v1100_v23 = vmul.f32 %v4974_v29, %v1064_v9  ;;  %v1066_v57 = vmul.f32 %v800_v34, %v4614_v5  ;;  %v764_v22 = vmul.f32 0.5, %v763_v4  ;;  %8521 = vst [vmem:[#allocation39_spill] sm:$0xff] %v5028_v21  ;;  %v1253_v9 = vld [vmem:[#allocation2] sm:$0xff]  ;;  %v1376_v13 = vmul.f32 %v5028_v21, %v1254_v35 }
 0x148   : > { %v1098_v61 = vmul.f32 %v4974_v29, %v1062_v30  ;;  %v785_v41 = vsub.f32 1.5, %v784_v14  ;;  %v715_v53 = vadd.f32 1e-06, %v683_v12  ;;  %v1375_v30 = vmul.f32 %v5028_v21, %v1253_v9 }
 0x149   : > { %v4999_v51 = vadd.f32 %v4981_v62, %v1100_v23  ;;  %v1102_v46 = vmul.f32 %v4974_v29, %v1066_v57  ;;  %v5033_v14 = vperm.slane %v5025_v63, 2  ;;  %v1377_v12 = vmul.f32 %v5028_v21, %v1255_v31 }
 0x14a   : > { %v5003_v6 = vadd.f32 %v4981_v62, %v1098_v61  ;;  %v786_v49 = vmul.f32 %v3976_v11, %v785_v41  ;;  %3979 = vrsqrt.f32 %v715_v53  ;;  %v5037_v61 = vperm.slane %v5025_v63, 0 }
 0x14b   : > { %8517 = vst [vmem:[#allocation35_spill] sm:$0xff] %v4999_v51  ;;  %v5013_v5 = vadd.f32 %v4981_v62, %v1102_v46  ;;  %v1472_v57 = vrot.slane %v1375_v30, 1  ;;  %v1473_v41 = vrot.slane %v1376_v13, 1  ;;  %v1619_v4 = vmul.f32 %v5033_v14, %v1255_v31 }
 0x14c   : > { %8518 = vst [vmem:[#allocation36_spill] sm:$0xff] %v5003_v6  ;;  %v790_v16 = vsel %vm789_vm2, %v3976_v11, %v786_v49  ;;  %v1617_v49 = vmul.f32 %v5033_v14, %v1253_v9  ;;  %v1310_v0 = vmul.f32 %v5037_v61, %v1253_v9  ;;  %vm807_vm8 = vweird.f32 %v715_v53 }
 0x14d   : > { %1224 = vst.msk [vmem:[#allocation2 + $0x39] sm:$0xff] %vm381_vm0, %v4999_v51  ;;  %v1065_v43 = vmul.f32 %v790_v16, %v4633_v28  ;;  %v765_v28 = vsub.f32 1.5, %v764_v22  ;;  %v1618_v16 = vmul.f32 %v5033_v14, %v1254_v35  ;;  %v1474_v38 = vsel %vm1471_vm6, %v1472_v57, %v1473_v41  ;;  %v1256_v57 = vld [vmem:[#allocation2 + $0x18] sm:$0xff] }
 0x14e   : > { %1222 = vst.msk [vmem:[#allocation2 + $0x21] sm:$0xff] %vm381_vm0, %v5003_v6  ;;  %v1714_v22 = vrot.slane %v1617_v49, 2  ;;  %v1311_v30 = vmul.f32 %v5037_v61, %v1254_v35  ;;  %v1717_v13 = vrot.slane %v1619_v4, 2  ;;  %v5060_v35 = vperm.slane %v5025_v63, 5  ;;  %v5092_v51 = vld [vmem:[#allocation6 + $0x8] ss:$0 sm:$0xff] }
 0x14f   : > { %8519 = vst [vmem:[#allocation37_spill] sm:$0xff] %v5013_v5  ;;  %v1101_v52 = vmul.f32 %v4974_v29, %v1065_v43  ;;  %v766_v47 = vmul.f32 %v3978_v37, %v765_v28  ;;  %v1715_v28 = vrot.slane %v1618_v16, 2 }
 0x150   : > { %1226 = vst.msk [vmem:[#allocation2 + $0x51] sm:$0xff] %vm381_vm0, %v5013_v5  ;;  %v3980_v11 = vpop.eup %3979 }
 0x151   : > { %v5021_v15 = vadd.f32 %v4981_v62, %v1101_v52  ;;  %v802_v56 = vmul.f32 %v3980_v11, %v715_v53  ;;  %v770_v34 = vsel %vm769_vm5, %v3978_v37, %v766_v47  ;;  %v1475_v52 = vrot.slane %v1377_v12, 1  ;;  %v604_v12 = vpop.xlane.xlu1 %603  ;;  %8525 = vst [vmem:[#allocation43_spill] sm:$0xff] %v5060_v35 }
 0x152   : > { %v1063_v43 = vmul.f32 %v770_v34, %v4639_v2  ;;  %vm808_vm9 = vweird.f32 %v3980_v11  ;;  %v1584_v47 = vadd.f32 %v1474_v38, %v1310_v0  ;;  %v1716_v31 = vsel %vm1713_vm7, %v1714_v22, %v1715_v28 }
 0x153   : > { %8520 = vst [vmem:[#allocation38_spill] sm:$0xff] %v5021_v15  ;;  %v803_v23 = vmul.f32 %v3980_v11, %v802_v56  ;;  %v1476_v2 = vsel %vm1471_vm6, %v1473_v41, %v1475_v52  ;;  %v5054_v34 = vperm.slane %v5025_v63, 3  ;;  %vm809_vm10 = vmor %vm807_vm8, %vm808_vm9  ;;  %v5057_v53 = vperm.slane %v5025_v63, 4 }
 0x154   : > { %1225 = vst.msk [vmem:[#allocation2 + $0x49] sm:$0xff] %vm381_vm0, %v5021_v15  ;;  %v1099_v56 = vmul.f32 %v4974_v29, %v1063_v43  ;;  %v1585_v49 = vadd.f32 %v1476_v2, %v1311_v30  ;;  %v1826_v43 = vadd.f32 %v1716_v31, %v1584_v47  ;;  %v1378_v0 = vmul.f32 %v5028_v21, %v1256_v57 }
 0x155   : > { %v804_v46 = vmul.f32 0.5, %v803_v23  ;;  %8523 = vst [vmem:[#allocation41_spill] sm:$0xff] %v5054_v34  ;;  %v1257_v41 = vld [vmem:[#allocation2 + $0x20] sm:$0xff]  ;;  %v1718_v38 = vsel %vm1713_vm7, %v1715_v28, %v1717_v13  ;;  %v1258_v52 = vld [vmem:[#allocation2 + $0x28] sm:$0x3]  ;;  %v684_v4 = vmul.f32 %v604_v12, %v4598_v58  ;;  %v1859_v22 = vmul.f32 %v5054_v34, %v1256_v57 }
 0x156   : > { %v5050_v9 = vadd.f32 %v4981_v62, %v1099_v56  ;;  %8524 = vst [vmem:[#allocation42_spill] sm:$0xff] %v5057_v53  ;;  %v1379_v56 = vmul.f32 %v5028_v21, %v1257_v41  ;;  %v1924_v30 = vmul.f32 %v5057_v53, %v1256_v57  ;;  %v5079_v47 = vperm.slane %v5025_v63, 7  ;;  %v1261_v28 = vld [vmem:[#allocation2 + $0x40] sm:$0x3] }
 0x157   : > { %v805_v37 = vsub.f32 1.5, %v804_v46  ;;  %v1827_v2 = vadd.f32 %v1718_v38, %v1585_v49  ;;  %v1380_v13 = vmul.f32 %v5028_v21, %v1258_v52  ;;  %v1312_v31 = vmul.f32 %v5037_v61, %v1256_v57 }
 0x158   : > { %8522 = vst [vmem:[#allocation40_spill] sm:$0xff] %v5050_v9  ;;  %v1477_v12 = vrot.slane %v1378_v0, 1  ;;  %v1891_v15 = vadd.f32 %v1859_v22, %v1826_v43  ;;  %v1925_v49 = vmul.f32 %v5057_v53, %v1257_v41  ;;  %v2020_v38 = vrot.slane %v1924_v30, 1 }
 0x159   : > { %v806_v23 = vmul.f32 %v3980_v11, %v805_v37  ;;  %1223 = vst.msk [vmem:[#allocation2 + $0x31] sm:$0xff] %vm381_vm0, %v5050_v9  ;;  %v5069_v37 = vmul.f32 %v5033_v14, %v1256_v57  ;;  %v1478_v9 = vrot.slane %v1379_v56, 1  ;;  %v5099_v0 = vmul.f32 %v5028_v21, %v1261_v28  ;;  %v607_v24 = vpop.xlane.xlu1 %606 }
 0x15a   : > { %8526 = vst [vmem:[#allocation44_spill] sm:$0xff] %v5079_v47  ;;  %v5106_v43 = vmul.f32 %v5057_v53, %v1261_v28  ;;  %v1621_v22 = vmul.f32 %v5033_v14, %v1257_v41  ;;  %v5110_v56 = vmul.f32 %v5060_v35, %v1261_v28  ;;  %v1622_v30 = vmul.f32 %v5033_v14, %v1258_v52 }
 0x15b   : > { %v810_v46 = vsel %vm809_vm10, %v3980_v11, %v806_v23  ;;  %v1719_v5 = vrot.slane %v5069_v37, 2  ;;  %v1480_v37 = vrot.slane %v1380_v13, 1  ;;  %v1479_v6 = vsel %vm1471_vm6, %v1477_v12, %v1478_v9 }
 0x15c   : > { %v1067_v16 = vmul.f32 %v810_v46, %v4648_v1  ;;  %v5076_v1 = vmul.f32 %v5060_v35, %v1256_v57  ;;  %v5087_v46 = vperm.slane %v5025_v63, 6  ;;  %v1926_v63 = vmul.f32 %v5057_v53, %v1258_v52 }
 0x15d   : > { %v1860_v13 = vmul.f32 %v5054_v34, %v1257_v41  ;;  %v2021_v26 = vrot.slane %v1925_v49, 1  ;;  %v1313_v20 = vmul.f32 %v5037_v61, %v1257_v41  ;;  %v2166_v54 = vmul.f32 %v5060_v35, %v1257_v41 }
 0x15e   : > { %v1103_v11 = vmul.f32 %v4974_v29, %v1067_v16  ;;  %8528 = vst [vmem:[#allocation46_spill] sm:$0xff] %v5087_v46  ;;  %v5089_v16 = vadd.f32 1e-06, %v684_v4  ;;  %v2261_v57 = vrot.slane %v5076_v1, 2  ;;  %v5103_v4 = vmul.f32 %v5033_v14, %v1261_v28  ;;  %v610_v1 = vpop.xlane.xlu2 %609 }
 0x15f   : > { %v2023_v27 = vrot.slane %v1926_v63, 1  ;;  %v1481_v60 = vsel %vm1471_vm6, %v1478_v9, %v1480_v37  ;;  %v1720_v8 = vrot.slane %v1621_v22, 2  ;;  %v2167_v18 = vmul.f32 %v5060_v35, %v1258_v52 }
 0x160   : > { %v5083_v23 = vadd.f32 %v4981_v62, %v1103_v11  ;;  %v5113_v11 = vmul.f32 %v5079_v47, %v1261_v28  ;;  %3981 = vrsqrt.f32 %v5089_v16  ;;  %v1586_v45 = vadd.f32 %v1479_v6, %v1312_v31  ;;  %v5139_v6 = vld [vmem:[#allocation2 + $0x50] sm:$0xff] }
 0x161   : > { %v1722_v55 = vrot.slane %v1622_v30, 2  ;;  %v687_v49 = vmul.f32 %v613_v36, %v4598_v58  ;;  %v1892_v63 = vadd.f32 %v1860_v13, %v1827_v2  ;;  %v2022_v41 = vsel %vm1471_vm6, %v2020_v38, %v2021_v26  ;;  %v1264_v2 = vld [vmem:[#allocation2 + $0x58] sm:$0x3]  ;;  %v5251_v10 = vld [vmem:[#allocation2 + $0x30] sm:$0xff] }
 0x162   : > { %8527 = vst [vmem:[#allocation45_spill] sm:$0xff] %v5083_v23  ;;  %v1587_v52 = vadd.f32 %v1481_v60, %v1313_v20  ;;  %v2024_v37 = vsel %vm1471_vm6, %v2021_v26, %v2023_v27  ;;  %v2262_v22 = vrot.slane %v2166_v54, 2  ;;  %v1721_v31 = vsel %vm1713_vm7, %v1719_v5, %v1720_v8 }
 0x163   : > { %1227 = vst.msk [vmem:[#allocation2 + $0x61] sm:$0xff] %vm381_vm0, %v5083_v23  ;;  %v5118_v23 = vmul.f32 %v5092_v51, %v1261_v28  ;;  %v686_v28 = vmul.f32 %v610_v1, %v4598_v58  ;;  %v5137_v1 = vld [vmem:[#allocation2 + $0x48] sm:$0xff]  ;;  %v2264_v30 = vrot.slane %v2167_v18, 2  ;;  %v1723_v38 = vsel %vm1713_vm7, %v1720_v8, %v1722_v55 }
 0x164   : > { %v5146_v12 = vadd.f32 %v1721_v31, %v1586_v45  ;;  %v2132_v60 = vadd.f32 %v2022_v41, %v1891_v15  ;;  %v5148_v20 = vadd.f32 1e-06, %v687_v49  ;;  %v2133_v54 = vadd.f32 %v2024_v37, %v1892_v63 }
 0x165   : > { %8529 = vst [vmem:[#allocation47_spill] sm:$0xff] %v5118_v23  ;;  %v5143_v13 = vadd.f32 1e-06, %v686_v28  ;;  %v1384_v27 = vmul.f32 %v5028_v21, %v5137_v1  ;;  %v5154_v26 = vmul.f32 %v5028_v21, %v5139_v6  ;;  %v5158_v5 = vadd.f32 %v1723_v38, %v1587_v52 }
 0x166   : > { %v5133_v39 = vpop.eup %3981  ;;  %v2263_v55 = vsel %vm1713_vm7, %v2261_v57, %v2262_v22  ;;  %v5162_v45 = vmul.f32 %v5028_v21, %v1264_v2  ;;  %v5165_v8 = vmul.f32 %v5033_v14, %v1264_v2  ;;  %v2265_v15 = vsel %vm1713_vm7, %v2262_v22, %v2264_v30 }
 0x167   : > { %8530 = vst [vmem:[#allocation48_spill] sm:$0xff] %v5154_v26  ;;  %v812_v18 = vmul.f32 %v5133_v39, %v5089_v16  ;;  %v5169_v28 = vmul.f32 %v5057_v53, %v1264_v2  ;;  %v5172_v49 = vmul.f32 %v5060_v35, %v1264_v2  ;;  %3983 = vrsqrt.f32 %v5143_v13 }
 0x168   : > { %8531 = vst [vmem:[#allocation49_spill] sm:$0xff] %v5162_v45  ;;  %v5175_v63 = vadd.f32 %v2263_v55, %v2132_v60  ;;  %v5178_v57 = vmul.f32 %v5079_v47, %v1264_v2  ;;  %v5181_v41 = vmul.f32 %v5092_v51, %v1264_v2  ;;  %3985 = vrsqrt.f32 %v5148_v20 }
 0x169   : > { %8532 = vst [vmem:[#allocation50_spill] sm:$0xff] %v5165_v8  ;;  %v5184_v52 = vadd.f32 %v2265_v15, %v2133_v54  ;;  %v1487_v37 = vrot.slane %v1384_v27, 1  ;;  %v8297_v22 = vrot.slane %v5154_v26, 1  ;;  %v813_v31 = vmul.f32 %v5133_v39, %v812_v18 }
 0x16a   : > { %8533 = vst [vmem:[#allocation51_spill] sm:$0xff] %v5169_v28  ;;  %v1930_v60 = vmul.f32 %v5057_v53, %v5137_v1  ;;  %v5194_v2 = vmul.f32 %v5057_v53, %v5139_v6  ;;  %v5200_v27 = vmul.f32 %v5033_v14, %v5137_v1  ;;  %v5204_v18 = vmul.f32 %v5033_v14, %v5139_v6 }
 0x16b   : > { %8534 = vst [vmem:[#allocation52_spill] sm:$0xff] %v5172_v49  ;;  %v1316_v30 = vmul.f32 %v5037_v61, %v5137_v1  ;;  %v5212_v55 = vmul.f32 %v5037_v61, %v5139_v6  ;;  %v1489_v36 = vsel %vm1471_vm6, %v1487_v37, %v8297_v22  ;;  %v5221_v9 = vmul.f32 %v5054_v34, %v5137_v1 }
 0x16c   : > { %8535 = vst [vmem:[#allocation53_spill] sm:$0xff] %v5194_v2  ;;  %v5225_v44 = vmul.f32 %v5060_v35, %v5137_v1  ;;  %v814_v38 = vmul.f32 0.5, %v813_v31  ;;  %v5231_v19 = vmul.f32 %v5054_v34, %v5139_v6  ;;  %v2030_v48 = vrot.slane %v1930_v60, 1 }
 0x16d   : > { %8536 = vst [vmem:[#allocation54_spill] sm:$0xff] %v5204_v18  ;;  %v5214_v54 = vpop.eup %3983  ;;  %v5236_v37 = vmul.f32 %v5060_v35, %v5139_v6  ;;  %v1729_v22 = vrot.slane %v5200_v27, 2  ;;  %vm818_vm11 = vweird.f32 %v5133_v39  ;;  %v5241_v31 = vadd.f32 %v1489_v36, %v1316_v30 }
 0x16e   : > { %8537 = vst [vmem:[#allocation55_spill] sm:$0xff] %v5212_v55  ;;  %v5227_v15 = vpop.eup %3985  ;;  %v815_v40 = vsub.f32 1.5, %v814_v38  ;;  %v5245_v3 = vmul.f32 %v5087_v46, %v5137_v1  ;;  %v5249_v60 = vmul.f32 %v5087_v46, %v5139_v6  ;;  %v832_v27 = vmul.f32 %v5214_v54, %v5143_v13  ;;  %v5256_v38 = vld [vmem:[#allocation2 + $0x38] sm:$0xff] }
 0x16f   : > { %8538 = vst [vmem:[#allocation56_spill] sm:$0xff] %v5231_v19  ;;  %vm817_vm12 = vweird.f32 %v5089_v16  ;;  %v842_v30 = vmul.f32 %v5227_v15, %v5148_v20  ;;  %v8539_v49 = vrot.slane %v5194_v2, 1  ;;  %v5270_v32 = vmul.f32 %v5079_v47, %v5137_v1 }
 0x170   : > { %v816_v36 = vmul.f32 %v5133_v39, %v815_v40  ;;  %vm819_vm13 = vmor %vm817_vm12, %vm818_vm11  ;;  %v833_v40 = vmul.f32 %v5214_v54, %v832_v27  ;;  %v5277_v16 = vmul.f32 %v5079_v47, %v5139_v6  ;;  %v1381_v2 = vmul.f32 %v5028_v21, %v5251_v10 }
 0x171   : > { %v5265_v33 = vsel %vm1471_vm6, %v2030_v48, %v8539_v49  ;;  %v843_v49 = vmul.f32 %v5227_v15, %v842_v30  ;;  %v5285_v28 = vmul.f32 %v5028_v21, %v5256_v38  ;;  %v685_v27 = vmul.f32 %v607_v24, %v4598_v58 }
 0x172   : > { %v820_v48 = vsel %vm819_vm13, %v5133_v39, %v816_v36  ;;  %v834_v17 = vmul.f32 0.5, %v833_v40  ;;  %v5291_v19 = vmul.f32 %v5092_v51, %v5137_v1  ;;  %vm847_vm14 = vweird.f32 %v5148_v20 }
 0x173   : > { %v1068_v59 = vmul.f32 %v820_v48, %v4654_v50  ;;  %v844_v8 = vmul.f32 0.5, %v843_v49  ;;  %vm848_vm15 = vweird.f32 %v5227_v15  ;;  %vm837_vm1 = vweird.f32 %v5143_v13  ;;  %v619_v48 = vpop.xlane.xlu2 %618 }
 0x174   : > { %v835_v36 = vsub.f32 1.5, %v834_v17  ;;  %vm838_vm2 = vweird.f32 %v5214_v54  ;;  %v2572_v50 = vrot.slane %v5270_v32, 1  ;;  %v5301_v24 = vmul.f32 %v5092_v51, %v5139_v6  ;;  %vm5308_vm3 = vmor %vm847_vm14, %vm848_vm15 }
 0x175   : > { %v1104_v39 = vmul.f32 %v4974_v29, %v1068_v59  ;;  %v1482_v1 = vrot.slane %v1381_v2, 1  ;;  %v845_v30 = vsub.f32 1.5, %v844_v8  ;;  %v1483_v40 = vrot.slane %v5285_v28, 1  ;;  %vm839_vm4 = vmor %vm837_vm1, %vm838_vm2 }
 0x176   : > { %v836_v59 = vmul.f32 %v5214_v54, %v835_v36  ;;  %v5312_v13 = vadd.f32 1e-06, %v685_v27  ;;  %v1927_v32 = vmul.f32 %v5057_v53, %v5251_v10  ;;  %v1928_v6 = vmul.f32 %v5057_v53, %v5256_v38 }
 0x177   : > { %v5305_v20 = vadd.f32 %v4981_v62, %v1104_v39  ;;  %v8543_v8 = vrot.slane %v5204_v18, 2  ;;  %v846_v2 = vmul.f32 %v5227_v15, %v845_v30  ;;  %v2573_v49 = vrot.slane %v5277_v16, 1  ;;  %v622_v18 = vpop.xlane.xlu0 %621 }
 0x178   : > { %v1623_v27 = vmul.f32 %v5033_v14, %v5251_v10  ;;  %v5327_v39 = vmul.f32 %v5033_v14, %v5256_v38  ;;  %v840_v36 = vsel %vm839_vm4, %v5214_v54, %v836_v59  ;;  %v1861_v30 = vmul.f32 %v5054_v34, %v5251_v10 }
 0x179   : > { %8540 = vst [vmem:[#allocation57_spill] sm:$0xff] %v5305_v20  ;;  %v1731_v28 = vsel %vm1713_vm7, %v1729_v22, %v8543_v8  ;;  %v1314_v22 = vmul.f32 %v5037_v61, %v5251_v10  ;;  %v1070_v16 = vmul.f32 %v840_v36, %v4672_v42  ;;  %v850_v8 = vsel %vm5308_vm3, %v5227_v15, %v846_v2 }
 0x17a   : > { %1228 = vst.msk [vmem:[#allocation2 + $0x69] sm:$0xff] %vm381_vm0, %v5305_v20  ;;  %v1484_v55 = vsel %vm1471_vm6, %v1482_v1, %v1483_v40  ;;  %v1071_v25 = vmul.f32 %v850_v8, %v4667_v7  ;;  %3987 = vrsqrt.f32 %v5312_v13  ;;  %v689_v54 = vmul.f32 %v619_v48, %v4598_v58 }
 0x17b   : > { %v2025_v59 = vrot.slane %v1927_v32, 1  ;;  %v2026_v20 = vrot.slane %v1928_v6, 1  ;;  %v1106_v26 = vmul.f32 %v4974_v29, %v1070_v16  ;;  %v690_v45 = vmul.f32 %v622_v18, %v4598_v58 }
 0x17c   : > { %v1724_v23 = vrot.slane %v1623_v27, 2  ;;  %v1725_v42 = vrot.slane %v5327_v39, 2  ;;  %v1862_v15 = vmul.f32 %v5054_v34, %v5256_v38  ;;  %v1107_v1 = vmul.f32 %v4974_v29, %v1071_v25 }
 0x17d   : > { %v2168_v7 = vmul.f32 %v5060_v35, %v5251_v10  ;;  %v2169_v17 = vmul.f32 %v5060_v35, %v5256_v38  ;;  %v8544_v32 = vrot.slane %v5236_v37, 2  ;;  %v8545_v6 = vrot.slane %v5225_v44, 2 }
 0x17e   : > { %v5362_v2 = vadd.f32 %v4981_v62, %v1106_v26  ;;  %v1588_v48 = vadd.f32 %v1484_v55, %v1314_v22  ;;  %v1893_v27 = vadd.f32 %v1861_v30, %v5146_v12  ;;  %v5366_v25 = vadd.f32 %v4981_v62, %v1107_v1 }
 0x17f   : > { %v5359_v18 = vsel %vm1713_vm7, %v8545_v6, %v8544_v32  ;;  %v5368_v39 = vadd.f32 1e-06, %v689_v54  ;;  %v2813_v36 = vrot.slane %v5291_v19, 2  ;;  %v2814_v16 = vrot.slane %v5301_v24, 2  ;;  %v616_v19 = vpop.xlane.xlu1 %615 }
 0x180   : > { %8546 = vst [vmem:[#allocation58_spill] sm:$0xff] %v5362_v2  ;;  %v2027_v44 = vsel %vm1471_vm6, %v2025_v59, %v2026_v20  ;;  %v5375_v8 = vadd.f32 1e-06, %v690_v45  ;;  %v5377_v26 = vpop.eup %3987  ;;  %v2574_v12 = vsel %vm1471_vm6, %v2572_v50, %v2573_v49  ;;  %v1726_v55 = vsel %vm1713_vm7, %v1724_v23, %v1725_v42 }
 0x181   : > { %8547 = vst [vmem:[#allocation59_spill] sm:$0xff] %v5366_v25  ;;  %v1894_v22 = vadd.f32 %v1862_v15, %v5158_v5  ;;  %v5383_v30 = vadd.f32 %v1731_v28, %v5241_v31  ;;  %v2266_v24 = vrot.slane %v2168_v7, 2  ;;  %v2267_v54 = vrot.slane %v2169_v17, 2 }
 0x182   : > { %1230 = vst.msk [vmem:[#allocation2 + $0x81] sm:$0xff] %vm381_vm0, %v5362_v2  ;;  %v2471_v45 = vmul.f32 %v5079_v47, %v5251_v10  ;;  %v2472_v59 = vmul.f32 %v5079_v47, %v5256_v38  ;;  %v1830_v50 = vadd.f32 %v1726_v55, %v1588_v48  ;;  %v8548_v23 = vrot.slane %v5106_v43, 1 }
 0x183   : > { %1231 = vst.msk [vmem:[#allocation2 + $0x91] sm:$0xff] %vm381_vm0, %v5366_v25  ;;  %v2134_v15 = vadd.f32 %v2027_v44, %v1893_v27  ;;  %3989 = vrsqrt.f32 %v5368_v39  ;;  %v8549_v31 = vrot.slane %v5099_v0, 1  ;;  %v822_v1 = vmul.f32 %v5377_v26, %v5312_v13 }
 0x184   : > { %v2029_v5 = vsel %vm1471_vm6, %v2026_v20, %v8548_v23  ;;  %3991 = vrsqrt.f32 %v5375_v8  ;;  %v688_v7 = vmul.f32 %v616_v19, %v4598_v58  ;;  %v8550_v17 = vrot.slane %v5178_v57, 1 }
 0x185   : > { %v1486_v28 = vsel %vm1471_vm6, %v1483_v40, %v8549_v31  ;;  %v1315_v20 = vmul.f32 %v5037_v61, %v5256_v38  ;;  %v2406_v0 = vmul.f32 %v5087_v46, %v5251_v10  ;;  %v2407_v40 = vmul.f32 %v5087_v46, %v5256_v38 }
 0x186   : > { %v5405_v43 = vsel %vm1471_vm6, %v2573_v49, %v8550_v17  ;;  %v2135_v32 = vadd.f32 %v2029_v5, %v1894_v22  ;;  %v2268_v6 = vsel %vm1713_vm7, %v2266_v24, %v2267_v54  ;;  %v2567_v48 = vrot.slane %v2471_v45, 1 }
 0x187   : > { %8551 = vst [vmem:[#allocation60_spill] sm:$0xff] %v5405_v43  ;;  %v2568_v27 = vrot.slane %v2472_v59, 1  ;;  %v1589_v44 = vadd.f32 %v1486_v28, %v1315_v20  ;;  %v1895_v57 = vadd.f32 %v5221_v9, %v1830_v50  ;;  %v2375_v55 = vadd.f32 %v2268_v6, %v2134_v15 }
 0x188   : > { %v2712_v49 = vmul.f32 %v5092_v51, %v5251_v10  ;;  %v5418_v19 = vsel %vm1713_vm7, %v2813_v36, %v2814_v16  ;;  %v2713_v23 = vmul.f32 %v5092_v51, %v5256_v38  ;;  %v823_v31 = vmul.f32 %v5377_v26, %v822_v1 }
 0x189   : > { %8552 = vst [vmem:[#allocation61_spill] sm:$0xff] %v5418_v19  ;;  %v5423_v22 = vadd.f32 1e-06, %v688_v7  ;;  %v5425_v24 = vpop.eup %3989  ;;  %v8553_v45 = vrot.slane %v5181_v41, 2  ;;  %v8555_v59 = vrot.slane %v5110_v56, 2  ;;  %v2438_v36 = vadd.f32 %v2406_v0, %v5175_v63  ;;  %v1265_v56 = vld [vmem:[#allocation2 + $0x60] sm:$0xff] }
 0x18a   : > { %v2439_v50 = vadd.f32 %v2407_v40, %v5184_v52  ;;  %v5437_v38 = vpop.eup %3991  ;;  %v8556_v5 = vrot.slane %v5103_v4, 2  ;;  %v2569_v41 = vsel %vm1471_vm6, %v2567_v48, %v2568_v27  ;;  %v2808_v63 = vrot.slane %v2712_v49, 2 }
 0x18b   : > { %v5430_v9 = vsel %vm1713_vm7, %v2814_v16, %v8553_v45  ;;  %v2270_v10 = vsel %vm1713_vm7, %v2267_v54, %v8555_v59  ;;  %v8557_v16 = vrot.slane %v5113_v11, 1  ;;  %v2440_v54 = vadd.f32 %v5245_v3, %v2375_v55  ;;  %v8560_v55 = vld [vmem:[#allocation47_spill] sm:$0xff] }
 0x18c   : > { %8554 = vst [vmem:[#allocation62_spill] sm:$0xff] %v5430_v9  ;;  %v1728_v15 = vsel %vm1713_vm7, %v1725_v42, %v8556_v5  ;;  %v2376_v28 = vadd.f32 %v2270_v10, %v2135_v32  ;;  %v2136_v52 = vadd.f32 %v5265_v33, %v1895_v57  ;;  %v2809_v17 = vrot.slane %v2713_v23, 2 }
 0x18d   : > { %v2571_v1 = vsel %vm1471_vm6, %v2568_v27, %v8557_v16  ;;  %v1831_v7 = vadd.f32 %v1728_v15, %v1589_v44  ;;  %v824_v20 = vmul.f32 0.5, %v823_v31  ;;  %v862_v4 = vmul.f32 %v5425_v24, %v5368_v39 }
 0x18e   : > { %3993 = vrsqrt.f32 %v5423_v22  ;;  %v2679_v42 = vadd.f32 %v2569_v41, %v2438_v36  ;;  %v2680_v0 = vadd.f32 %v2571_v1, %v2439_v50  ;;  %v5452_v11 = vmul.f32 %v5028_v21, %v1265_v56 }
 0x18f   : > { %v872_v40 = vmul.f32 %v5437_v38, %v5375_v8  ;;  %v5457_v3 = vadd.f32 %v5249_v60, %v2376_v28  ;;  %v5460_v33 = vmul.f32 %v5037_v61, %v1265_v56  ;;  %v5463_v32 = vmul.f32 %v5033_v14, %v1265_v56 }
 0x190   : > { %v5466_v6 = vmul.f32 %v5057_v53, %v1265_v56  ;;  %v5468_v48 = vadd.f32 %v2574_v12, %v2440_v54  ;;  %v2377_v27 = vadd.f32 %v5359_v18, %v2136_v52  ;;  %v1865_v44 = vmul.f32 %v5054_v34, %v1265_v56  ;;  %v8564_v54 = vld [vmem:[#allocation49_spill] sm:$0xff]  ;;  %v8566_v52 = vld [vmem:[#allocation48_spill] sm:$0xff] }
 0x191   : > { %8558 = vst [vmem:[#allocation63_spill] sm:$0xff] %v5457_v3  ;;  %v5473_v57 = vmul.f32 %v5060_v35, %v1265_v56  ;;  %v2810_v60 = vsel %vm1713_vm7, %v2808_v63, %v2809_v17  ;;  %v8561_v49 = vrot.slane %v8560_v55, 2  ;;  %v825_v31 = vsub.f32 1.5, %v824_v20  ;;  %v8568_v55 = vld [vmem:[#allocation12_spill] sm:$0xff] }
 0x192   : > { %8559 = vst [vmem:[#allocation64_spill] sm:$0xff] %v5468_v48  ;;  %v863_v45 = vmul.f32 %v5425_v24, %v862_v4  ;;  %v5480_v59 = vadd.f32 %v2810_v60, %v2679_v42  ;;  %v1492_v18 = vrot.slane %v5452_v11, 1  ;;  %v873_v10 = vmul.f32 %v5437_v38, %v872_v40  ;;  %v5509_v42 = vld [vmem:[#allocation2 + $0x68] sm:$0xff]  ;;  %v5520_v60 = vld [vmem:[#allocation2 + $0x70] sm:$0x3] }
 0x193   : > { %v2812_v23 = vsel %vm1713_vm7, %v2809_v17, %v8561_v49  ;;  %v1734_v50 = vrot.slane %v5463_v32, 2  ;;  %v5490_v5 = vadd.f32 %v1865_v44, %v5383_v30  ;;  %v2035_v15 = vrot.slane %v5466_v6, 1 }
 0x194   : > { %8562 = vst [vmem:[#allocation47_spill] sm:$0xff] %v5480_v59  ;;  %v5482_v12 = vadd.f32 %v2812_v23, %v2680_v0  ;;  %v5486_v36 = vpop.eup %3993  ;;  %vm828_vm5 = vweird.f32 %v5377_v26  ;;  %v2276_v28 = vrot.slane %v5473_v57, 2  ;;  %v2410_v41 = vmul.f32 %v5087_v46, %v1265_v56 }
 0x195   : > { %v5497_v16 = vmul.f32 %v5079_v47, %v1265_v56  ;;  %v5500_v1 = vmul.f32 %v5092_v51, %v1265_v56  ;;  %v8565_v63 = vrot.slane %v8564_v54, 1  ;;  %v8567_v17 = vrot.slane %v8566_v52, 1  ;;  %v8572_v52 = vld [vmem:[#allocation54_spill] sm:$0xff] }
 0x196   : > { %8563 = vst [vmem:[#allocation65_spill] sm:$0xff] %v5482_v12  ;;  %v826_v20 = vmul.f32 %v5377_v26, %v825_v31  ;;  %vm827_vm8 = vweird.f32 %v5312_v13  ;;  %v864_v4 = vmul.f32 0.5, %v863_v45  ;;  %v874_v0 = vmul.f32 0.5, %v873_v10  ;;  %v8569_v10 = vld [vmem:[#allocation55_spill] sm:$0xff] }
 0x197   : > { %v1491_v30 = vsel %vm1471_vm6, %v8567_v17, %v8565_v63  ;;  %vm829_vm9 = vmor %vm827_vm8, %vm828_vm5  ;;  %vm877_vm10 = vweird.f32 %v5375_v8  ;;  %vm878_vm11 = vweird.f32 %v5437_v38  ;;  %v852_v56 = vmul.f32 %v5486_v36, %v5423_v22 }
 0x198   : > { %v830_v40 = vsel %vm829_vm9, %v5377_v26, %v826_v20  ;;  %v865_v44 = vsub.f32 1.5, %v864_v4  ;;  %vm867_vm12 = vweird.f32 %v5368_v39  ;;  %vm868_vm13 = vweird.f32 %v5425_v24  ;;  %v8570_v26 = vld [vmem:[#allocation50_spill] sm:$0xff]  ;;  %vm5537_vm14 = vmor %vm877_vm10, %vm878_vm11  ;;  %v8576_v20 = vld [vmem:[#allocation56_spill] sm:$0xff] }
 0x199   : > { %v5518_v13 = vadd.f32 %v2410_v41, %v2377_v27  ;;  %v1069_v49 = vmul.f32 %v830_v40, %v8568_v55  ;;  %v875_v23 = vsub.f32 1.5, %v874_v0  ;;  %v853_v31 = vmul.f32 %v5486_v36, %v852_v56  ;;  %vm869_vm15 = vmor %vm867_vm12, %vm868_vm13 }
 0x19a   : > { %v1388_v45 = vmul.f32 %v5028_v21, %v5509_v42  ;;  %v1591_v54 = vadd.f32 %v1491_v30, %v8569_v10  ;;  %v8571_v63 = vrot.slane %v8570_v26, 2  ;;  %v8573_v39 = vrot.slane %v8572_v52, 2  ;;  %v8578_v10 = vld [vmem:[#allocation14_spill] sm:$0xff]  ;;  %v8579_v52 = vld [vmem:[#allocation13_spill] sm:$0xff] }
 0x19b   : > { %v866_v27 = vmul.f32 %v5425_v24, %v865_v44  ;;  %v1896_v4 = vadd.f32 %v8576_v20, %v1831_v7  ;;  %v1105_v30 = vmul.f32 %v4974_v29, %v1069_v49  ;;  %v876_v0 = vmul.f32 %v5437_v38, %v875_v23  ;;  %v8582_v20 = vld [vmem:[#allocation53_spill] sm:$0xff] }
 0x19c   : > { %v1733_v17 = vsel %vm1713_vm7, %v8573_v39, %v8571_v63  ;;  %v854_v56 = vmul.f32 0.5, %v853_v31  ;;  %v1389_v44 = vmul.f32 %v5028_v21, %v5520_v60  ;;  %vm858_vm1 = vweird.f32 %v5486_v36  ;;  %v8580_v39 = vld [vmem:[#allocation51_spill] sm:$0xff] }
 0x19d   : > { %v870_v55 = vsel %vm869_vm15, %v5425_v24, %v866_v27  ;;  %v5550_v8 = vadd.f32 %v4981_v62, %v1105_v30  ;;  %v880_v49 = vsel %vm5537_vm14, %v5437_v38, %v876_v0  ;;  %v2818_v31 = vrot.slane %v5500_v1, 2 }
 0x19e   : > { %v1073_v7 = vmul.f32 %v870_v55, %v8578_v10  ;;  %v855_v23 = vsub.f32 1.5, %v854_v56  ;;  %v1493_v26 = vrot.slane %v1388_v45, 1  ;;  %v1934_v63 = vmul.f32 %v5057_v53, %v5509_v42 }
 0x19f   : > { %8577 = vst [vmem:[#allocation49_spill] sm:$0xff] %v5550_v8  ;;  %v1074_v24 = vmul.f32 %v880_v49, %v8579_v52  ;;  %v8581_v27 = vrot.slane %v8580_v39, 1  ;;  %v8583_v30 = vrot.slane %v8582_v20, 1  ;;  %vm857_vm2 = vweird.f32 %v5423_v22 }
 0x1a0   : > { %1229 = vst.msk [vmem:[#allocation2 + $0x79] sm:$0xff] %vm381_vm0, %v5550_v8  ;;  %v1109_v38 = vmul.f32 %v4974_v29, %v1073_v7  ;;  %v856_v41 = vmul.f32 %v5486_v36, %v855_v23  ;;  %v1495_v45 = vrot.slane %v1389_v44, 1  ;;  %v1630_v0 = vmul.f32 %v5033_v14, %v5509_v42  ;;  %vm859_vm3 = vmor %vm857_vm2, %vm858_vm1 }
 0x1a1   : > { %v2034_v40 = vsel %vm1471_vm6, %v8583_v30, %v8581_v27  ;;  %v1935_v56 = vmul.f32 %v5057_v53, %v5520_v60  ;;  %v1110_v55 = vmul.f32 %v4974_v29, %v1074_v24  ;;  %v1631_v10 = vmul.f32 %v5033_v14, %v5520_v60  ;;  %v8586_v24 = vld [vmem:[#allocation15_spill] sm:$0xff] }
 0x1a2   : > { %v1833_v7 = vadd.f32 %v1733_v17, %v1591_v54  ;;  %v5580_v49 = vadd.f32 %v4981_v62, %v1109_v38  ;;  %v860_v22 = vsel %vm859_vm3, %v5486_v36, %v856_v41  ;;  %v1494_v44 = vsel %vm1471_vm6, %v1492_v18, %v1493_v26  ;;  %v8587_v17 = vld [vmem:[#allocation52_spill] sm:$0xff] }
 0x1a3   : > { %v2036_v23 = vrot.slane %v1934_v63, 1  ;;  %v5587_v52 = vadd.f32 %v4981_v62, %v1110_v55  ;;  %v1072_v39 = vmul.f32 %v860_v22, %v8586_v24  ;;  %v1866_v27 = vmul.f32 %v5054_v34, %v5509_v42  ;;  %v628_v22 = vpop.xlane.xlu2 %627 }
 0x1a4   : > { %8584 = vst [vmem:[#allocation48_spill] sm:$0xff] %v5580_v49  ;;  %v2137_v20 = vadd.f32 %v2034_v40, %v1896_v4  ;;  %v2175_v54 = vmul.f32 %v5060_v35, %v5509_v42  ;;  %v8588_v30 = vrot.slane %v8587_v17, 2  ;;  %v8589_v36 = vrot.slane %v5236_v37, 2 }
 0x1a5   : > { %8585 = vst [vmem:[#allocation12_spill] sm:$0xff] %v5587_v52  ;;  %v1496_v18 = vsel %vm1471_vm6, %v1493_v26, %v1495_v45  ;;  %v1735_v63 = vrot.slane %v1630_v0, 2  ;;  %v2038_v38 = vrot.slane %v1935_v56, 1  ;;  %v1108_v4 = vmul.f32 %v4974_v29, %v1072_v39 }
 0x1a6   : > { %v2275_v11 = vsel %vm1713_vm7, %v8589_v36, %v8588_v30  ;;  %1233 = vst.msk [vmem:[#allocation2 + $0xa9] sm:$0xff] %vm381_vm0, %v5580_v49  ;;  %v1319_v40 = vmul.f32 %v5037_v61, %v5509_v42  ;;  %v1592_v41 = vadd.f32 %v1494_v44, %v5460_v33  ;;  %v1737_v37 = vrot.slane %v1631_v10, 2 }
 0x1a7   : > { %1234 = vst.msk [vmem:[#allocation2 + $0xb1] sm:$0xff] %vm381_vm0, %v5587_v52  ;;  %v2176_v55 = vmul.f32 %v5060_v35, %v5520_v60  ;;  %v2037_v26 = vsel %vm1471_vm6, %v2035_v15, %v2036_v23  ;;  %v2478_v45 = vmul.f32 %v5079_v47, %v5509_v42  ;;  %v2479_v29 = vmul.f32 %v5079_v47, %v5520_v60 }
 0x1a8   : > { %v5618_v0 = vadd.f32 %v4981_v62, %v1108_v4  ;;  %v1593_v56 = vadd.f32 %v1496_v18, %v1319_v40  ;;  %v1898_v33 = vadd.f32 %v1866_v27, %v1833_v7  ;;  %v2277_v10 = vrot.slane %v2175_v54, 2  ;;  %v631_v27 = vpop.xlane.xlu0 %630 }
 0x1a9   : > { %v2378_v44 = vadd.f32 %v2275_v11, %v2137_v20  ;;  %v1736_v24 = vsel %vm1713_vm7, %v1734_v50, %v1735_v63  ;;  %v2039_v6 = vsel %vm1471_vm6, %v2036_v23, %v2038_v38  ;;  %v2719_v15 = vmul.f32 %v5092_v51, %v5509_v42  ;;  %v1270_v50 = vld [vmem:[#allocation2 + $0x88] sm:$0x3] }
 0x1aa   : > { %8590 = vst [vmem:[#allocation55_spill] sm:$0xff] %v5618_v0  ;;  %v692_v39 = vmul.f32 %v628_v22, %v4598_v58  ;;  %v2138_v62 = vadd.f32 %v2037_v26, %v5490_v5  ;;  %v2279_v17 = vrot.slane %v2176_v55, 2  ;;  %v2411_v7 = vmul.f32 %v5087_v46, %v5509_v42 }
 0x1ab   : > { %1232 = vst.msk [vmem:[#allocation2 + $0x99] sm:$0xff] %vm381_vm0, %v5618_v0  ;;  %v2720_v32 = vmul.f32 %v5092_v51, %v5520_v60  ;;  %v1738_v23 = vsel %vm1713_vm7, %v1735_v63, %v1737_v37  ;;  %v5635_v20 = vadd.f32 %v1736_v24, %v1592_v41  ;;  %v2578_v54 = vrot.slane %v2478_v45, 1  ;;  %v5664_v45 = vld [vmem:[#allocation2 + $0x78] sm:$0xff] }
 0x1ac   : > { %v2580_v30 = vrot.slane %v2479_v29, 1  ;;  %v5637_v36 = vadd.f32 %v1738_v23, %v1593_v56  ;;  %v2139_v11 = vadd.f32 %v2039_v6, %v1898_v33  ;;  %v2278_v5 = vsel %vm1713_vm7, %v2276_v28, %v2277_v10  ;;  %v5666_v29 = vld [vmem:[#allocation2 + $0x80] sm:$0xff] }
 0x1ad   : > { %v2443_v18 = vadd.f32 %v2411_v7, %v2378_v44  ;;  %v2819_v42 = vrot.slane %v2719_v15, 2  ;;  %v5643_v38 = vmul.f32 %v5028_v21, %v1270_v50  ;;  %v5645_v60 = vadd.f32 1e-06, %v692_v39  ;;  %v1271_v44 = vld [vmem:[#allocation2 + $0x90] sm:$0xff] }
 0x1ae   : > { %v693_v63 = vmul.f32 %v631_v27, %v4598_v58  ;;  %v2280_v4 = vsel %vm1713_vm7, %v2277_v10, %v2279_v17  ;;  %v5649_v40 = vadd.f32 %v2278_v5, %v2138_v62  ;;  %v2821_v41 = vrot.slane %v2720_v32, 2  ;;  %v625_v27 = vpop.xlane.xlu1 %624 }
 0x1af   : > { %v5652_v37 = vmul.f32 %v5033_v14, %v1270_v50  ;;  %v8591_v57 = vrot.slane %v5497_v16, 1  ;;  %v2581_v55 = vsel %vm1471_vm6, %v2578_v54, %v2580_v30  ;;  %v5659_v22 = vmul.f32 %v5057_v53, %v1270_v50 }
 0x1b0   : > { %v5662_v26 = vmul.f32 %v5060_v35, %v1270_v50  ;;  %v5668_v56 = vadd.f32 %v2280_v4, %v2139_v11  ;;  %v2684_v10 = vadd.f32 %v2581_v55, %v2443_v18  ;;  %v5672_v16 = vmul.f32 %v5079_v47, %v1270_v50 }
 0x1b1   : > { %v2579_v28 = vsel %vm1471_vm6, %v8591_v57, %v2578_v54  ;;  %v2820_v24 = vsel %vm1713_vm7, %v2818_v31, %v2819_v42  ;;  %3995 = vrsqrt.f32 %v5645_v60  ;;  %v5679_v15 = vadd.f32 1e-06, %v693_v63  ;;  %v637_v57 = vpop.xlane.xlu2 %636 }
 0x1b2   : > { %v2683_v33 = vadd.f32 %v2579_v28, %v5518_v13  ;;  %8592 = vst [vmem:[#allocation50_spill] sm:$0xff] %v5672_v16  ;;  %v2822_v39 = vsel %vm1713_vm7, %v2819_v42, %v2821_v41  ;;  %v1390_v13 = vmul.f32 %v5028_v21, %v5664_v45  ;;  %v5687_v17 = vmul.f32 %v5028_v21, %v5666_v29 }
 0x1b3   : > { %v5692_v7 = vmul.f32 %v5092_v51, %v1270_v50  ;;  %v5695_v32 = vmul.f32 %v5028_v21, %v1271_v44  ;;  %v5699_v54 = vadd.f32 %v2822_v39, %v2684_v10  ;;  %v5703_v11 = vmul.f32 %v5037_v61, %v1271_v44 }
 0x1b4   : > { %v5697_v23 = vadd.f32 %v2820_v24, %v2683_v33  ;;  %v5706_v5 = vmul.f32 %v5033_v14, %v1271_v44  ;;  %v5709_v18 = vmul.f32 %v5054_v34, %v1271_v44  ;;  %v5712_v50 = vmul.f32 %v5057_v53, %v1271_v44 }
 0x1b5   : > { %8593 = vst [vmem:[#allocation54_spill] sm:$0xff] %v5692_v7  ;;  %3997 = vrsqrt.f32 %v5679_v15  ;;  %v5716_v42 = vmul.f32 %v5060_v35, %v1271_v44  ;;  %v1497_v63 = vrot.slane %v1390_v13, 1  ;;  %v8318_v4 = vrot.slane %v5687_v17, 1 }
 0x1b6   : > { %8594 = vst [vmem:[#allocation56_spill] sm:$0xff] %v5697_v23  ;;  %v691_v41 = vmul.f32 %v625_v27, %v4598_v58  ;;  %v5725_v10 = vmul.f32 %v5087_v46, %v1271_v44  ;;  %v5728_v24 = vmul.f32 %v5079_v47, %v1271_v44  ;;  %v1632_v39 = vmul.f32 %v5033_v14, %v5664_v45 }
 0x1b7   : > { %8595 = vst [vmem:[#allocation14_spill] sm:$0xff] %v5699_v54  ;;  %v5720_v28 = vpop.eup %3995  ;;  %v5734_v13 = vmul.f32 %v5033_v14, %v5666_v29  ;;  %v1936_v27 = vmul.f32 %v5057_v53, %v5664_v45  ;;  %v5740_v55 = vmul.f32 %v5057_v53, %v5666_v29  ;;  %v5745_v31 = vmul.f32 %v5092_v51, %v1271_v44 }
 0x1b8   : > { %8596 = vst [vmem:[#allocation13_spill] sm:$0xff] %v5703_v11  ;;  %v695_v1 = vmul.f32 %v637_v57, %v4598_v58  ;;  %v1499_v6 = vsel %vm1471_vm6, %v1497_v63, %v8318_v4  ;;  %v892_v0 = vmul.f32 %v5720_v28, %v5645_v60  ;;  %v5754_v25 = vadd.f32 1e-06, %v691_v41  ;;  %v1274_v41 = vld [vmem:[#allocation2 + $0xa8] sm:$0xff]  ;;  %v640_v63 = vpop.xlane.xlu0 %639 }
 0x1b9   : > { %8597 = vst [vmem:[#allocation51_spill] sm:$0xff] %v5706_v5  ;;  %v1320_v44 = vmul.f32 %v5037_v61, %v5664_v45  ;;  %v1867_v57 = vmul.f32 %v5054_v34, %v5664_v45  ;;  %v1868_v62 = vmul.f32 %v5054_v34, %v5666_v29  ;;  %v1739_v30 = vrot.slane %v1632_v39, 2 }
 0x1ba   : > { %8598 = vst [vmem:[#allocation53_spill] sm:$0xff] %v5709_v18  ;;  %v2040_v4 = vrot.slane %v1936_v27, 1  ;;  %v5770_v33 = vmul.f32 %v5060_v35, %v5664_v45  ;;  %v5772_v8 = vadd.f32 1e-06, %v695_v1  ;;  %v5776_v54 = vmul.f32 %v5037_v61, %v5666_v29 }
 0x1bb   : > { %8599 = vst [vmem:[#allocation15_spill] sm:$0xff] %v5712_v50  ;;  %v5756_v52 = vpop.eup %3997  ;;  %v1594_v49 = vadd.f32 %v1499_v6, %v1320_v44  ;;  %v893_v39 = vmul.f32 %v5720_v28, %v892_v0  ;;  %3999 = vrsqrt.f32 %v5754_v25  ;;  %v1899_v2 = vadd.f32 %v1867_v57, %v5635_v20 }
 0x1bc   : > { %8600 = vst [vmem:[#allocation52_spill] sm:$0xff] %v5716_v42  ;;  %v902_v27 = vmul.f32 %v5756_v52, %v5679_v15  ;;  %v5785_v6 = vmul.f32 %v5060_v35, %v5666_v29  ;;  %v2412_v1 = vmul.f32 %v5087_v46, %v5664_v45  ;;  %v2413_v44 = vmul.f32 %v5087_v46, %v5666_v29 }
 0x1bd   : > { %8601 = vst [vmem:[#allocation66_spill] sm:$0xff] %v5725_v10  ;;  %v8606_v0 = vrot.slane %v5734_v13, 2  ;;  %v5795_v12 = vadd.f32 %v1868_v62, %v5637_v36  ;;  %v8607_v20 = vrot.slane %v5740_v55, 1  ;;  %v5802_v59 = vmul.f32 %v5079_v47, %v5664_v45 }
 0x1be   : > { %8602 = vst [vmem:[#allocation67_spill] sm:$0xff] %v5728_v24  ;;  %v5809_v48 = vmul.f32 %v5079_v47, %v5666_v29  ;;  %v5813_v36 = vmul.f32 %v5092_v51, %v5664_v45  ;;  %vm897_vm4 = vweird.f32 %v5645_v60  ;;  %vm898_vm5 = vweird.f32 %v5720_v28  ;;  %v634_v45 = vpop.xlane.xlu1 %633 }
 0x1bf   : > { %8603 = vst [vmem:[#allocation68_spill] sm:$0xff] %v5745_v31  ;;  %v1741_v23 = vsel %vm1713_vm7, %v1739_v30, %v8606_v0  ;;  %v2042_v57 = vsel %vm1471_vm6, %v2040_v4, %v8607_v20  ;;  %v5819_v62 = vmul.f32 %v5092_v51, %v5666_v29  ;;  %v5828_v30 = vmul.f32 %v5057_v53, %v1274_v41  ;;  %v5830_v4 = vld [vmem:[#allocation2 + $0xb0] sm:$0xff]  ;;  %vm899_vm11 = vmor %vm897_vm4, %vm898_vm5 }
 0x1c0   : > { %8604 = vst [vmem:[#allocation69_spill] sm:$0xff] %v5770_v33  ;;  %v5804_v9 = vadd.f32 %v1741_v23, %v1594_v49  ;;  %v5822_v49 = vmul.f32 %v5028_v21, %v1274_v41  ;;  %v5825_v23 = vmul.f32 %v5033_v14, %v1274_v41  ;;  %v5832_v0 = vadd.f32 %v2042_v57, %v1899_v2  ;;  %v5853_v57 = vld [vmem:[#allocation2 + $0xb8] sm:$0x3]  ;;  %v649_v16 = vpop.xlane.xlu0 %648 }
 0x1c1   : > { %8605 = vst [vmem:[#allocation70_spill] sm:$0xff] %v5785_v6  ;;  %v5836_v19 = vadd.f32 %v2412_v1, %v5649_v40  ;;  %v5839_v51 = vadd.f32 %v2413_v44, %v5668_v56  ;;  %v5841_v29 = vpop.eup %3999  ;;  %v5845_v7 = vmul.f32 %v5037_v61, %v1274_v41  ;;  %v5848_v43 = vmul.f32 %v5060_v35, %v1274_v41 }
 0x1c2   : > { %8608 = vst [vmem:[#allocation71_spill] sm:$0xff] %v5802_v59  ;;  %v5851_v2 = vmul.f32 %v5079_v47, %v1274_v41  ;;  %v5858_v1 = vmul.f32 %v5054_v34, %v1274_v41  ;;  %v5862_v44 = vmul.f32 %v5028_v21, %v5830_v4  ;;  %v5870_v40 = vmul.f32 %v5037_v61, %v5830_v4 }
 0x1c3   : > { %8609 = vst [vmem:[#allocation72_spill] sm:$0xff] %v5804_v9  ;;  %v5874_v41 = vmul.f32 %v5028_v21, %v5853_v57  ;;  %v5878_v56 = vmul.f32 %v5033_v14, %v5830_v4  ;;  %v5890_v24 = vmul.f32 %v5057_v53, %v5830_v4  ;;  %vm907_vm8 = vweird.f32 %v5679_v15 }
 0x1c4   : > { %8610 = vst [vmem:[#allocation73_spill] sm:$0xff] %v5809_v48  ;;  %vm908_vm9 = vweird.f32 %v5756_v52  ;;  %vm887_vm10 = vweird.f32 %v5754_v25  ;;  %4001 = vrsqrt.f32 %v5772_v8  ;;  %vm888_vm12 = vweird.f32 %v5841_v29 }
 0x1c5   : > { %8611 = vst [vmem:[#allocation74_spill] sm:$0xff] %v5813_v36  ;;  %v894_v36 = vmul.f32 0.5, %v893_v39  ;;  %v5894_v39 = vmul.f32 %v5057_v53, %v5853_v57  ;;  %v1510_v3 = vrot.slane %v5874_v41, 1  ;;  %v696_v48 = vmul.f32 %v640_v63, %v4598_v58  ;;  %vm5915_vm13 = vmor %vm907_vm8, %vm908_vm9 }
 0x1c6   : > { %8612 = vst [vmem:[#allocation75_spill] sm:$0xff] %v5819_v62  ;;  %v646_v62 = vpop.xlane.xlu2 %645  ;;  %v643_v10 = vpop.xlane.xlu1 %642  ;;  %vm889_vm14 = vmor %vm887_vm10, %vm888_vm12  ;;  %vm927_vm15 = vweird.f32 %v5772_v8 }
 0x1c7   : > { %8613 = vst [vmem:[#allocation76_spill] sm:$0xff] %v5822_v49  ;;  %v895_v31 = vsub.f32 1.5, %v894_v36  ;;  %v698_v60 = vmul.f32 %v646_v62, %v4598_v58  ;;  %v5924_v42 = vadd.f32 1e-06, %v696_v48  ;;  %v697_v33 = vmul.f32 %v643_v10, %v4598_v58  ;;  %v5936_v62 = vld [vmem:[%s8269_s1] ss:$0 sm:$0xff] }
 0x1c8   : > { %8614 = vst [vmem:[#allocation77_spill] sm:$0xff] %v5825_v23  ;;  %v5948_v10 = vmul.f32 %v5060_v35, %v5830_v4 }
 0x1c9   : > { %8615 = vst [vmem:[#allocation78_spill] sm:$0xff] %v5828_v30  ;;  %v896_v59 = vmul.f32 %v5720_v28, %v895_v31  ;;  %v5928_v15 = vadd.f32 1e-06, %v698_v60  ;;  %4003 = vrsqrt.f32 %v5924_v42  ;;  %vm937_vm2 = vweird.f32 %v5924_v42 }
 0x1ca   : > { %8616 = vst [vmem:[#allocation79_spill] sm:$0xff] %v5832_v0 }
 0x1cb   : > { %8617 = vst [vmem:[#allocation80_spill] sm:$0xff] %v5836_v19  ;;  %v5884_v19 = vmul.f32 %v5033_v14, %v5853_v57  ;;  %v900_v41 = vsel %vm899_vm11, %v5720_v28, %v896_v59  ;;  %vm957_vm9 = vweird.f32 %v5928_v15 }
 0x1cc   : > { %8618 = vst [vmem:[#allocation81_spill] sm:$0xff] %v5839_v51  ;;  %v903_v51 = vmul.f32 %v5756_v52, %v902_v27  ;;  %v882_v27 = vmul.f32 %v5841_v29, %v5754_v25 }
 0x1cd   : > { %8619 = vst [vmem:[#allocation82_spill] sm:$0xff] %v5845_v7 }
 0x1ce   : > { %8620 = vst [vmem:[#allocation83_spill] sm:$0xff] %v5848_v43  ;;  %v904_v20 = vmul.f32 0.5, %v903_v51  ;;  %v883_v51 = vmul.f32 %v5841_v29, %v882_v27  ;;  %v8628_v27 = vld [vmem:[#allocation17_spill] sm:$0xff]  ;;  %v655_v60 = vpop.xlane.xlu2 %654 }
 0x1cf   : > { %8621 = vst [vmem:[#allocation84_spill] sm:$0xff] %v5851_v2  ;;  %v694_v2 = vmul.f32 %v634_v45, %v4598_v58  ;;  %v1076_v0 = vmul.f32 %v900_v41, %v8628_v27  ;;  %v5967_v27 = vmul.f32 %v5060_v35, %v5853_v57  ;;  %v701_v30 = vmul.f32 %v655_v60, %v4598_v58 }
 0x1d0   : > { %8622 = vst [vmem:[#allocation85_spill] sm:$0xff] %v5858_v1  ;;  %v905_v36 = vsub.f32 1.5, %v904_v20  ;;  %v699_v20 = vmul.f32 %v649_v16, %v4598_v58  ;;  %v884_v63 = vmul.f32 0.5, %v883_v51  ;;  %v8630_v51 = vld [vmem:[#allocation16_spill] sm:$0xff] }
 0x1d1   : > { %8623 = vst [vmem:[#allocation86_spill] sm:$0xff] %v5862_v44  ;;  %v5926_v59 = vadd.f32 1e-06, %v694_v2  ;;  %v1112_v16 = vmul.f32 %v5936_v62, %v1076_v0  ;;  %v5943_v2 = vpop.eup %4001  ;;  %v8634_v0 = vld [vmem:[#allocation18_spill] sm:$0xff] }
 0x1d2   : > { %8624 = vst [vmem:[#allocation87_spill] sm:$0xff] %v5878_v56  ;;  %v906_v43 = vmul.f32 %v5756_v52, %v905_v36  ;;  %v5930_v28 = vadd.f32 1e-06, %v699_v20  ;;  %v885_v45 = vsub.f32 1.5, %v884_v63  ;;  %v1752_v36 = vrot.slane %v5884_v19, 2 }
 0x1d3   : > { %8625 = vst [vmem:[#allocation88_spill] sm:$0xff] %v5890_v24  ;;  %4005 = vrsqrt.f32 %v5926_v59  ;;  %v922_v31 = vmul.f32 %v5943_v2, %v5772_v8  ;;  %vm928_vm1 = vweird.f32 %v5943_v2  ;;  %vm917_vm8 = vweird.f32 %v5926_v59 }
 0x1d4   : > { %v910_v48 = vsel %vm5915_vm13, %v5756_v52, %v906_v43  ;;  %8629 = vst [vmem:[#allocation17_spill] sm:$0xff] %v5948_v10  ;;  %v5956_v43 = vld [vmem:[%s8270_s2] ss:$0 sm:$0xff]  ;;  %v886_v19 = vmul.f32 %v5841_v29, %v885_v45  ;;  %4007 = vrsqrt.f32 %v5928_v15  ;;  %vm929_vm4 = vmor %vm927_vm15, %vm928_vm1  ;;  %vm967_vm11 = vweird.f32 %v5930_v28 }
 0x1d5   : > { %v1077_v41 = vmul.f32 %v910_v48, %v8630_v51  ;;  %v5959_v52 = vadd.f32 %v5956_v43, %v1112_v16  ;;  %v658_v16 = vpop.xlane.xlu0 %657  ;;  %v923_v45 = vmul.f32 %v5943_v2, %v922_v31  ;;  %4009 = vrsqrt.f32 %v5930_v28 }
 0x1d6   : > { %v890_v48 = vsel %vm889_vm14, %v5841_v29, %v886_v19  ;;  %v5980_v51 = vadd.f32 1e-06, %v697_v33  ;;  %v8635_v29 = vrot.slane %v5862_v44, 1  ;;  %v8636_v33 = vrot.slane %v5878_v56, 2 }
 0x1d7   : > { %8631 = vst [vmem:[#allocation16_spill] sm:$0xff] %v5959_v52  ;;  %v1113_v63 = vmul.f32 %v5936_v62, %v1077_v41  ;;  %v5984_v41 = vmul.f32 %v5079_v47, %v5830_v4  ;;  %v1075_v20 = vmul.f32 %v890_v48, %v8634_v0  ;;  %v924_v50 = vmul.f32 0.5, %v923_v45 }
 0x1d8   : > { %1236 = vst.msk [vmem:[#allocation2 + $0xc9] sm:$0xff] %vm381_vm0, %v5959_v52  ;;  %v5991_v52 = vpop.eup %4003  ;;  %v1511_v19 = vsel %vm1471_vm6, %v8635_v29, %v1510_v3  ;;  %v5999_v31 = vsel %vm1713_vm7, %v8636_v33, %v1752_v36  ;;  %v702_v1 = vmul.f32 %v658_v16, %v4598_v58  ;;  %4011 = vrsqrt.f32 %v5980_v51  ;;  %v6033_v36 = vld [vmem:[#allocation2 + $0x98] sm:$0xff] }
 0x1d9   : > { %8632 = vst [vmem:[#allocation89_spill] sm:$0xff] %v5984_v41  ;;  %v5987_v25 = vadd.f32 %v5956_v43, %v1113_v63  ;;  %v6002_v63 = vpop.eup %4005  ;;  %v1111_v0 = vmul.f32 %v5936_v62, %v1075_v20  ;;  %v932_v60 = vmul.f32 %v5991_v52, %v5924_v42  ;;  %v6010_v3 = vadd.f32 1e-06, %v701_v30 }
 0x1da   : > { %v925_v48 = vsub.f32 1.5, %v924_v50  ;;  %v912_v16 = vmul.f32 %v6002_v63, %v5926_v59  ;;  %v6016_v45 = vpop.eup %4007  ;;  %v6027_v50 = vadd.f32 %v1511_v19, %v5870_v40  ;;  %v6031_v33 = vmul.f32 %v5079_v47, %v5853_v57 }
 0x1db   : > { %8633 = vst [vmem:[#allocation90_spill] sm:$0xff] %v5987_v25  ;;  %v6019_v29 = vadd.f32 %v5956_v43, %v1111_v0  ;;  %v933_v20 = vmul.f32 %v5991_v52, %v932_v60  ;;  %4013 = vrsqrt.f32 %v6010_v3  ;;  %v6024_v30 = vpop.eup %4009  ;;  %v6038_v18 = vadd.f32 1e-06, %v702_v1 }
 0x1dc   : > { %1237 = vst.msk [vmem:[#allocation2 + $0xd9] sm:$0xff] %vm381_vm0, %v5987_v25  ;;  %v6035_v25 = vld [vmem:[#allocation2 + $0xa0] sm:$0x3]  ;;  %v926_v0 = vmul.f32 %v5943_v2, %v925_v48  ;;  %vm938_vm3 = vweird.f32 %v5991_v52  ;;  %v913_v1 = vmul.f32 %v6002_v63, %v912_v16  ;;  %v952_v19 = vmul.f32 %v6016_v45, %v5928_v15 }
 0x1dd   : > { %8637 = vst [vmem:[#allocation18_spill] sm:$0xff] %v6019_v29  ;;  %v934_v9 = vmul.f32 0.5, %v933_v20  ;;  %v962_v48 = vmul.f32 %v6024_v30, %v5930_v28  ;;  %v6059_v42 = vmul.f32 %v5028_v21, %v6033_v36  ;;  %v6063_v40 = vmul.f32 %v5028_v21, %v6035_v25  ;;  %vm6073_vm5 = vmor %vm937_vm2, %vm938_vm3  ;;  %v8648_v28 = vld [vmem:[#allocation21_spill] sm:$0xff]  ;;  %v667_v15 = vpop.xlane.xlu0 %666 }
 0x1de   : > { %1235 = vst.msk [vmem:[#allocation2 + $0xc1] sm:$0xff] %vm381_vm0, %v6019_v29  ;;  %v6055_v20 = vpop.eup %4011  ;;  %v930_v8 = vsel %vm929_vm4, %v5943_v2, %v926_v0  ;;  %v8638_v16 = vrot.slane %v5643_v38, 1  ;;  %v8639_v29 = vrot.slane %v5687_v17, 1  ;;  %4015 = vrsqrt.f32 %v6038_v18  ;;  %v652_v17 = vpop.xlane.xlu1 %651 }
 0x1df   : > { %v935_v60 = vsub.f32 1.5, %v934_v9  ;;  %v8642_v9 = vld [vmem:[#allocation20_spill] sm:$0xff]  ;;  %vm918_vm10 = vweird.f32 %v6002_v63  ;;  %v953_v0 = vmul.f32 %v6016_v45, %v952_v19  ;;  %v942_v7 = vmul.f32 %v6055_v20, %v5980_v51 }
 0x1e0   : > { %v6071_v23 = vsel %vm1471_vm6, %v8639_v29, %v8638_v16  ;;  %v1079_v2 = vmul.f32 %v930_v8, %v8642_v9  ;;  %v914_v29 = vmul.f32 0.5, %v913_v1  ;;  %v963_v16 = vmul.f32 %v6024_v30, %v962_v48  ;;  %v8643_v1 = vld [vmem:[#allocation19_spill] sm:$0xff]  ;;  %vm919_vm15 = vmor %vm917_vm8, %vm918_vm10 }
 0x1e1   : > { %v6080_v5 = vpop.eup %4013  ;;  %v936_v38 = vmul.f32 %v5991_v52, %v935_v60  ;;  %vm968_vm12 = vweird.f32 %v6024_v30  ;;  %vm947_vm13 = vweird.f32 %v5980_v51  ;;  %v954_v48 = vmul.f32 0.5, %v953_v0  ;;  %v664_v0 = vpop.xlane.xlu2 %663  ;;  %v8652_v51 = vld [vmem:[#allocation24_spill] sm:$0xff] }
 0x1e2   : > { %v1115_v11 = vmul.f32 %v5936_v62, %v1079_v2  ;;  %v982_v60 = vmul.f32 %v6080_v5, %v6010_v3  ;;  %v915_v9 = vsub.f32 1.5, %v914_v29  ;;  %v964_v49 = vmul.f32 0.5, %v963_v16  ;;  %vm6119_vm1 = vmor %vm967_vm11, %vm968_vm12 }
 0x1e3   : > { %v940_v8 = vsel %vm6073_vm5, %v5991_v52, %v936_v38  ;;  %vm958_vm14 = vweird.f32 %v6016_v45  ;;  %v943_v56 = vmul.f32 %v6055_v20, %v942_v7  ;;  %v955_v29 = vsub.f32 1.5, %v954_v48 }
 0x1e4   : > { %v1080_v19 = vmul.f32 %v940_v8, %v8643_v1  ;;  %v6100_v44 = vadd.f32 %v5956_v43, %v1115_v11  ;;  %v983_v52 = vmul.f32 %v6080_v5, %v982_v60  ;;  %v6105_v2 = vpop.eup %4015  ;;  %v916_v21 = vmul.f32 %v6002_v63, %v915_v9  ;;  %vm959_vm3 = vmor %vm957_vm9, %vm958_vm14 }
 0x1e5   : > { %v965_v11 = vsub.f32 1.5, %v964_v49  ;;  %v944_v16 = vmul.f32 0.5, %v943_v56  ;;  %vm948_vm2 = vweird.f32 %v6055_v20  ;;  %v700_v59 = vmul.f32 %v652_v17, %v4598_v58 }
 0x1e6   : > { %8644 = vst [vmem:[#allocation20_spill] sm:$0xff] %v6100_v44  ;;  %v1116_v38 = vmul.f32 %v5936_v62, %v1080_v19  ;;  %v984_v8 = vmul.f32 0.5, %v983_v52  ;;  %v920_v60 = vsel %vm919_vm15, %v6002_v63, %v916_v21  ;;  %v956_v1 = vmul.f32 %v6016_v45, %v955_v29  ;;  %vm949_vm8 = vmor %vm947_vm13, %vm948_vm2 }
 0x1e7   : > { %1239 = vst.msk [vmem:[#allocation2 + $0xf1] sm:$0xff] %vm381_vm0, %v6100_v44  ;;  %v966_v19 = vmul.f32 %v6024_v30, %v965_v11  ;;  %v1078_v9 = vmul.f32 %v920_v60, %v8648_v28  ;;  %v945_v48 = vsub.f32 1.5, %v944_v16  ;;  %v992_v17 = vmul.f32 %v6105_v2, %v6038_v18  ;;  %v8650_v11 = vld [vmem:[#allocation22_spill] sm:$0xff]  ;;  %v661_v60 = vpop.xlane.xlu1 %660 }
 0x1e8   : > { %v6126_v49 = vadd.f32 %v5956_v43, %v1116_v38  ;;  %v985_v56 = vsub.f32 1.5, %v984_v8  ;;  %v960_v21 = vsel %vm959_vm3, %v6016_v45, %v956_v1  ;;  %vm987_vm4 = vweird.f32 %v6010_v3  ;;  %v8649_v38 = vld [vmem:[#allocation23_spill] sm:$0xff]  ;;  %v8655_v3 = vld [vmem:[#allocation25_spill] sm:$0xff] }
 0x1e9   : > { %v970_v63 = vsel %vm6119_vm1, %v6024_v30, %v966_v19  ;;  %vm988_vm5 = vweird.f32 %v6080_v5  ;;  %v1114_v52 = vmul.f32 %v5936_v62, %v1078_v9  ;;  %v1082_v29 = vmul.f32 %v960_v21, %v8649_v38 }
 0x1ea   : > { %8647 = vst [vmem:[#allocation19_spill] sm:$0xff] %v6126_v49  ;;  %v1083_v16 = vmul.f32 %v970_v63, %v8650_v11  ;;  %v946_v8 = vmul.f32 %v6055_v20, %v945_v48  ;;  %v986_v45 = vmul.f32 %v6080_v5, %v985_v56  ;;  %v993_v30 = vmul.f32 %v6105_v2, %v992_v17  ;;  %vm989_vm9 = vmor %vm987_vm4, %vm988_vm5  ;;  %v673_v11 = vpop.xlane.xlu2 %672 }
 0x1eb   : > { %1240 = vst.msk [vmem:[#allocation2 + $0xf9] sm:$0xff] %vm381_vm0, %v6126_v49  ;;  %v6156_v7 = vadd.f32 1e-06, %v700_v59  ;;  %v704_v1 = vmul.f32 %v664_v0, %v4598_v58  ;;  %v6160_v19 = vadd.f32 %v5956_v43, %v1114_v52  ;;  %v1118_v28 = vmul.f32 %v5936_v62, %v1082_v29 }
 0x1ec   : > { %v1119_v9 = vmul.f32 %v5936_v62, %v1083_v16  ;;  %v950_v48 = vsel %vm949_vm8, %v6055_v20, %v946_v8  ;;  %v990_v59 = vsel %vm989_vm9, %v6080_v5, %v986_v45  ;;  %v994_v17 = vmul.f32 0.5, %v993_v30 }
 0x1ed   : > { %8651 = vst [vmem:[#allocation21_spill] sm:$0xff] %v6160_v19  ;;  %v1081_v56 = vmul.f32 %v950_v48, %v8652_v51  ;;  %4017 = vrsqrt.f32 %v6156_v7  ;;  %v6176_v21 = vadd.f32 %v5956_v43, %v1118_v28  ;;  %v1085_v63 = vmul.f32 %v990_v59, %v8655_v3  ;;  %v676_v3 = vpop.xlane.xlu0 %675 }
 0x1ee   : > { %1238 = vst.msk [vmem:[#allocation2 + $0xe1] sm:$0xff] %vm381_vm0, %v6160_v19  ;;  %v6179_v20 = vadd.f32 %v5956_v43, %v1119_v9  ;;  %v995_v38 = vsub.f32 1.5, %v994_v17  ;;  %v6183_v5 = vadd.f32 1e-06, %v704_v1  ;;  %v705_v29 = vmul.f32 %v667_v15, %v4598_v58 }
 0x1ef   : > { %8653 = vst [vmem:[#allocation23_spill] sm:$0xff] %v6176_v21  ;;  %v1117_v52 = vmul.f32 %v5936_v62, %v1081_v56  ;;  %v1595_v16 = vadd.f32 %v6071_v23, %v5776_v54  ;;  %v1121_v8 = vmul.f32 %v5936_v62, %v1085_v63  ;;  %vm997_vm10 = vweird.f32 %v6038_v18  ;;  %v6233_v18 = vld [vmem:[#allocation6 + $0x8] ss:$0 sm:$0xff] }
 0x1f0   : > { %8654 = vst [vmem:[#allocation22_spill] sm:$0xff] %v6179_v20  ;;  %vm998_vm11 = vweird.f32 %v6105_v2  ;;  %v8352_v45 = vrot.slane %v6059_v42, 1  ;;  %v1505_v30 = vrot.slane %v6063_v40, 1  ;;  %v6197_v15 = vmul.f32 %v5033_v14, %v6033_v36 }
 0x1f1   : > { %1242 = vst.msk [vmem:[#allocation2 + $0x111] sm:$0xff] %vm381_vm0, %v6176_v21  ;;  %v6202_v54 = vadd.f32 %v5956_v43, %v1117_v52  ;;  %v6205_v23 = vadd.f32 %v5956_v43, %v1121_v8  ;;  %v996_v1 = vmul.f32 %v6105_v2, %v995_v38  ;;  %4019 = vrsqrt.f32 %v6183_v5  ;;  %vm999_vm12 = vmor %vm997_vm10, %vm998_vm11  ;;  %v670_v38 = vpop.xlane.xlu1 %669 }
 0x1f2   : > { %8656 = vst [vmem:[#allocation24_spill] sm:$0xff] %v6197_v15  ;;  %v707_v28 = vmul.f32 %v673_v11, %v4598_v58  ;;  %v1637_v9 = vmul.f32 %v5033_v14, %v6035_v25  ;;  %v8659_v48 = vrot.slane %v5652_v37, 2  ;;  %v8660_v51 = vrot.slane %v5734_v13, 2  ;;  %v8662_v11 = vld [vmem:[#allocation26_spill] sm:$0xff] }
 0x1f3   : > { %1243 = vst.msk [vmem:[#allocation2 + $0x121] sm:$0xff] %vm381_vm0, %v6179_v20  ;;  %v6210_v40 = vpop.eup %4017  ;;  %v6223_v59 = vadd.f32 1e-06, %v705_v29  ;;  %v703_v17 = vmul.f32 %v661_v60, %v4598_v58  ;;  %v1870_v52 = vmul.f32 %v5054_v34, %v6033_v36  ;;  %v1000_v37 = vsel %vm999_vm12, %v6105_v2, %v996_v1 }
 0x1f4   : > { %8657 = vst [vmem:[#allocation25_spill] sm:$0xff] %v6202_v54  ;;  %v1743_v56 = vsel %vm1713_vm7, %v8660_v51, %v8659_v48  ;;  %v972_v13 = vmul.f32 %v6210_v40, %v6156_v7  ;;  %v6237_v29 = vmul.f32 %v6233_v18, %v5853_v57  ;;  %v1506_v60 = vsel %vm1471_vm6, %v8352_v45, %v1505_v30 }
 0x1f5   : > { %8658 = vst [vmem:[#allocation91_spill] sm:$0xff] %v6205_v23  ;;  %v1837_v63 = vadd.f32 %v1743_v56, %v1595_v16  ;;  %v1086_v16 = vmul.f32 %v1000_v37, %v8662_v11  ;;  %4021 = vrsqrt.f32 %v6223_v59  ;;  %v1323_v2 = vmul.f32 %v5037_v61, %v6033_v36 }
 0x1f6   : > { %1241 = vst.msk [vmem:[#allocation2 + $0x109] sm:$0xff] %vm381_vm0, %v6202_v54  ;;  %v8353_v8 = vrot.slane %v6197_v15, 2  ;;  %v6247_v1 = vadd.f32 1e-06, %v707_v28  ;;  %v708_v48 = vmul.f32 %v676_v3, %v4598_v58  ;;  %v973_v51 = vmul.f32 %v6210_v40, %v972_v13 }
 0x1f7   : > { %1245 = vst.msk [vmem:[#allocation2 + $0x139] sm:$0xff] %vm381_vm0, %v6205_v23  ;;  %v1122_v57 = vmul.f32 %v5936_v62, %v1086_v16  ;;  %v6252_v56 = vadd.f32 1e-06, %v703_v17  ;;  %v706_v30 = vmul.f32 %v670_v38, %v4598_v58  ;;  %v4020_v37 = vpop.eup %4019  ;;  %v6255_v11 = vadd.f32 %v1506_v60, %v1323_v2 }
 0x1f8   : > { %8661 = vst [vmem:[#allocation92_spill] sm:$0xff] %v6237_v29  ;;  %v1747_v45 = vrot.slane %v1637_v9, 2  ;;  %v6257_v0 = vadd.f32 %v1870_v52, %v1837_v63  ;;  %v6261_v28 = vmul.f32 %v5057_v53, %v6033_v36  ;;  %v6265_v3 = vmul.f32 %v5057_v53, %v6035_v25  ;;  %v6604_v23 = vld [vmem:[#allocation2 + $0x118] sm:$0x3] }
 0x1f9   : > { %v6268_v13 = vadd.f32 %v5956_v43, %v1122_v57  ;;  %v974_v17 = vmul.f32 0.5, %v973_v51  ;;  %v1012_v58 = vmul.f32 %v4020_v37, %v6183_v5  ;;  %v8665_v38 = vrot.slane %v5659_v22, 1  ;;  %8735 = vst [vmem:[#allocation128_spill] sm:$0xff] %v6604_v23 }
 0x1fa   : > { %8663 = vst [vmem:[#allocation26_spill] sm:$0xff] %v6261_v28  ;;  %v8666_v9 = vrot.slane %v5740_v55, 1  ;;  %vm978_vm13 = vweird.f32 %v6210_v40  ;;  %4023 = vrsqrt.f32 %v6247_v1  ;;  %v6278_v52 = vadd.f32 1e-06, %v708_v48 }
 0x1fb   : > { %8664 = vst [vmem:[#allocation93_spill] sm:$0xff] %v6268_v13  ;;  %v4022_v60 = vpop.eup %4021  ;;  %v975_v16 = vsub.f32 1.5, %v974_v17  ;;  %v1013_v2 = vmul.f32 %v4020_v37, %v1012_v58  ;;  %4025 = vrsqrt.f32 %v6252_v56  ;;  %v6283_v57 = vadd.f32 1e-06, %v706_v30  ;;  %v3811_v30 = vld [vmem:[%s8272_s4] sm:$0xff] }
 0x1fc   : > { %v2044_v63 = vsel %vm1471_vm6, %v8666_v9, %v8665_v38  ;;  %1246 = vst.msk [vmem:[#allocation2 + $0x141] sm:$0xff] %vm381_vm0, %v6268_v13  ;;  %v6288_v22 = vsel %vm1713_vm7, %v8353_v8, %v1747_v45  ;;  %v1022_v48 = vmul.f32 %v4022_v60, %v6223_v59  ;;  %4027 = vrsqrt.f32 %v6278_v52  ;;  %3336 = vmatpush.bf16.msra.mxu1 %v3811_v30  ;;  %v8668_v8 = vld [vmem:[#allocation28_spill] sm:$0xff]  ;;  %v8675_v13 = vld [vmem:[#allocation29_spill] sm:$0xff] }
 0x1fd   : > { %v976_v51 = vmul.f32 %v6210_v40, %v975_v16  ;;  %vm977_vm14 = vweird.f32 %v6156_v7  ;;  %v1014_v17 = vmul.f32 0.5, %v1013_v2  ;;  %4029 = vrsqrt.f32 %v6283_v57 }
 0x1fe   : > { %v6301_v58 = vadd.f32 %v2044_v63, %v5795_v12  ;;  %v6305_v38 = vmul.f32 %v5060_v35, %v6033_v36  ;;  %vm979_vm15 = vmor %vm977_vm14, %vm978_vm13  ;;  %v1023_v7 = vmul.f32 %v4022_v60, %v1022_v48  ;;  %vm1017_vm1 = vweird.f32 %v6183_v5 }
 0x1ff   : > { %v980_v9 = vsel %vm979_vm15, %v6210_v40, %v976_v51  ;;  %v1015_v16 = vsub.f32 1.5, %v1014_v17  ;;  %vm1018_vm2 = vweird.f32 %v4020_v37  ;;  %vm1027_vm3 = vweird.f32 %v6223_v59 }
 0x200   : > { %8667 = vst [vmem:[#allocation94_spill] sm:$0xff] %v6305_v38  ;;  %v4024_v2 = vpop.eup %4023  ;;  %v1084_v55 = vmul.f32 %v980_v9, %v8668_v8  ;;  %v1024_v12 = vmul.f32 0.5, %v1023_v7  ;;  %vm1028_vm4 = vweird.f32 %v4022_v60  ;;  %v6315_v45 = vmul.f32 %v5060_v35, %v6035_v25  ;;  %vm1019_vm5 = vmor %vm1017_vm1, %vm1018_vm2 }
 0x201   : > { %v4026_v63 = vpop.eup %4025  ;;  %v8669_v48 = vrot.slane %v5662_v26, 2  ;;  %v8670_v40 = vrot.slane %v5785_v6, 2  ;;  %v1016_v17 = vmul.f32 %v4020_v37, %v1015_v16  ;;  %v1042_v30 = vmul.f32 %v4024_v2, %v6247_v1  ;;  %vm6332_vm9 = vmor %vm1027_vm3, %vm1028_vm4 }
 0x202   : > { %v4028_v21 = vpop.eup %4027  ;;  %v1120_v8 = vmul.f32 %v5936_v62, %v1084_v55  ;;  %v1025_v7 = vsub.f32 1.5, %v1024_v12  ;;  %vm1047_vm8 = vweird.f32 %v6247_v1  ;;  %v1002_v9 = vmul.f32 %v4026_v63, %v6252_v56  ;;  %v8674_v12 = vld [vmem:[#allocation27_spill] sm:$0xff] }
 0x203   : > { %v2285_v51 = vsel %vm1713_vm7, %v8670_v40, %v8669_v48  ;;  %v6328_v54 = vpop.eup %4029  ;;  %v1020_v26 = vsel %vm1019_vm5, %v4020_v37, %v1016_v17  ;;  %v1043_v48 = vmul.f32 %v4024_v2, %v1042_v30  ;;  %v1052_v55 = vmul.f32 %v4028_v21, %v6278_v52 }
 0x204   : > { %vm1057_vm10 = vweird.f32 %v6278_v52  ;;  %v6339_v5 = vadd.f32 %v5956_v43, %v1120_v8  ;;  %v1088_v40 = vmul.f32 %v1020_v26, %v8674_v12  ;;  %v1026_v49 = vmul.f32 %v4022_v60, %v1025_v7 }
 0x205   : > { %v1003_v44 = vmul.f32 %v4026_v63, %v1002_v9  ;;  %v1044_v19 = vmul.f32 0.5, %v1043_v48  ;;  %vm1048_vm11 = vweird.f32 %v4024_v2  ;;  %v1053_v37 = vmul.f32 %v4028_v21, %v1052_v55 }
 0x206   : > { %8673 = vst [vmem:[#allocation28_spill] sm:$0xff] %v6339_v5  ;;  %v1032_v59 = vmul.f32 %v6328_v54, %v6283_v57  ;;  %v1124_v17 = vmul.f32 %v5936_v62, %v1088_v40  ;;  %v1030_v30 = vsel %vm6332_vm9, %v4022_v60, %v1026_v49  ;;  %vm1058_vm12 = vweird.f32 %v4028_v21  ;;  %vm6360_vm13 = vmor %vm1047_vm8, %vm1048_vm11 }
 0x207   : > { %1244 = vst.msk [vmem:[#allocation2 + $0x129] sm:$0xff] %vm381_vm0, %v6339_v5  ;;  %v1004_v8 = vmul.f32 0.5, %v1003_v44  ;;  %v1089_v26 = vmul.f32 %v1030_v30, %v8675_v13  ;;  %v1045_v7 = vsub.f32 1.5, %v1044_v19  ;;  %v1054_v9 = vmul.f32 0.5, %v1053_v37  ;;  %vm6373_vm1 = vmor %vm1057_vm10, %vm1058_vm12 }
 0x208   : > { %v1033_v48 = vmul.f32 %v6328_v54, %v1032_v59  ;;  %v6353_v55 = vmul.f32 %v5079_v47, %v6033_v36  ;;  %v6356_v12 = vadd.f32 %v5956_v43, %v1124_v17  ;;  %vm1008_vm14 = vweird.f32 %v4026_v63 }
 0x209   : > { %v1005_v44 = vsub.f32 1.5, %v1004_v8  ;;  %v1125_v49 = vmul.f32 %v5936_v62, %v1089_v26  ;;  %v1046_v19 = vmul.f32 %v4024_v2, %v1045_v7  ;;  %v1055_v13 = vsub.f32 1.5, %v1054_v9  ;;  %v8683_v26 = vld [vmem:[#allocation31_spill] sm:$0xff] }
 0x20a   : > { %8676 = vst [vmem:[#allocation27_spill] sm:$0xff] %v6353_v55  ;;  %v1034_v60 = vmul.f32 0.5, %v1033_v48  ;;  %v2485_v40 = vmul.f32 %v5079_v47, %v6035_v25  ;;  %vm1007_vm15 = vweird.f32 %v6252_v56  ;;  %vm1038_vm2 = vweird.f32 %v6328_v54  ;;  %v8684_v48 = vld [vmem:[#allocation30_spill] sm:$0xff] }
 0x20b   : > { %8677 = vst [vmem:[#allocation29_spill] sm:$0xff] %v6356_v12  ;;  %v1006_v37 = vmul.f32 %v4026_v63, %v1005_v44  ;;  %v6379_v59 = vadd.f32 %v5956_v43, %v1125_v49  ;;  %v1050_v17 = vsel %vm6360_vm13, %v4024_v2, %v1046_v19  ;;  %vm1009_vm3 = vmor %vm1007_vm15, %vm1008_vm14  ;;  %v1056_v30 = vmul.f32 %v4028_v21, %v1055_v13  ;;  %v8685_v19 = vld [vmem:[#allocation32_spill] sm:$0xff] }
 0x20c   : > { %1248 = vst.msk [vmem:[#allocation2 + $0x159] sm:$0xff] %vm381_vm0, %v6356_v12  ;;  %v1035_v8 = vsub.f32 1.5, %v1034_v60  ;;  %v2382_v56 = vadd.f32 %v2285_v51, %v6301_v58  ;;  %v2415_v52 = vmul.f32 %v5087_v46, %v6033_v36  ;;  %v1091_v7 = vmul.f32 %v1050_v17, %v8683_v26  ;;  %v8688_v17 = vld [vmem:[#allocation33_spill] sm:$0xff]  ;;  %v6576_v12 = vld [vmem:[#allocation2 + $0x138] sm:$0xff] }
 0x20d   : > { %8682 = vst [vmem:[#allocation95_spill] sm:$0xff] %v6379_v59  ;;  %v1010_v9 = vsel %vm1009_vm3, %v4026_v63, %v1006_v37  ;;  %v1060_v16 = vsel %vm6373_vm1, %v4028_v21, %v1056_v30  ;;  %vm1037_vm4 = vweird.f32 %v6283_v57  ;;  %v8361_v58 = vrot.slane %v6353_v55, 1 }
 0x20e   : > { %1249 = vst.msk [vmem:[#allocation2 + $0x169] sm:$0xff] %vm381_vm0, %v6379_v59  ;;  %v1087_v44 = vmul.f32 %v1010_v9, %v8684_v48  ;;  %v1036_v2 = vmul.f32 %v6328_v54, %v1035_v8  ;;  %v2590_v51 = vrot.slane %v2485_v40, 1  ;;  %v1127_v49 = vmul.f32 %v5936_v62, %v1091_v7  ;;  %vm1039_vm5 = vmor %vm1037_vm4, %vm1038_vm2  ;;  %v6622_v29 = vld [vmem:[#allocation2 + $0x130] sm:$0x3] }
 0x20f   : > { %v1092_v13 = vmul.f32 %v1060_v16, %v8685_v19  ;;  %v1839_v63 = vadd.f32 %v6288_v22, %v6255_v11  ;;  %v6403_v21 = vmul.f32 %v6233_v18, %v6033_v36  ;;  %v2726_v40 = vmul.f32 %v6233_v18, %v6035_v25  ;;  %8732 = vst [vmem:[#allocation125_spill] sm:$0xff] %v6576_v12 }
 0x210   : > { %v1123_v60 = vmul.f32 %v5936_v62, %v1087_v44  ;;  %v1040_v57 = vsel %vm1039_vm5, %v6328_v54, %v1036_v2  ;;  %v6410_v37 = vadd.f32 %v5956_v43, %v1127_v49  ;;  %v8689_v11 = vrot.slane %v6265_v3, 1  ;;  %8736 = vst [vmem:[#allocation129_spill] sm:$0xff] %v6622_v29 }
 0x211   : > { %8686 = vst [vmem:[#allocation31_spill] sm:$0xff] %v6403_v21  ;;  %v1128_v1 = vmul.f32 %v5936_v62, %v1092_v13  ;;  %v1090_v30 = vmul.f32 %v1040_v57, %v8688_v17  ;;  %v8690_v22 = vrot.slane %v6261_v28, 1  ;;  %v8362_v8 = vrot.slane %v6305_v38, 2 }
 0x212   : > { %8687 = vst [vmem:[#allocation30_spill] sm:$0xff] %v6410_v37  ;;  %v2447_v26 = vadd.f32 %v2415_v52, %v2382_v56  ;;  %v6421_v54 = vadd.f32 %v5956_v43, %v1123_v60  ;;  %v2289_v25 = vrot.slane %v6315_v45, 2  ;;  %v2591_v7 = vsel %vm1471_vm6, %v8361_v58, %v2590_v51  ;;  %v1279_v51 = vld [vmem:[#allocation2 + $0xd0] sm:$0x3]  ;;  %v6549_v58 = vld [vmem:[#allocation2 + $0xf8] sm:$0xff] }
 0x213   : > { %v2049_v36 = vsel %vm1471_vm6, %v8690_v22, %v8689_v11  ;;  %1251 = vst.msk [vmem:[#allocation2 + $0x181] sm:$0xff] %vm381_vm0, %v6410_v37  ;;  %v6430_v3 = vadd.f32 %v5956_v43, %v1128_v1  ;;  %v1126_v9 = vmul.f32 %v5936_v62, %v1090_v30  ;;  %v6435_v56 = vadd.f32 %v5999_v31, %v6027_v50  ;;  %v6477_v1 = vld [vmem:[#allocation2 + $0xc0] sm:$0xff]  ;;  %v8709_v30 = vld [vmem:[#allocation39_spill] sm:$0xff]  ;;  %v6572_v37 = vld [vmem:[#allocation2 + $0x110] sm:$0xff] }
 0x214   : > { %8691 = vst [vmem:[#allocation32_spill] sm:$0xff] %v6421_v54  ;;  %v8694_v52 = vrot.slane %v5894_v39, 1  ;;  %v8695_v45 = vrot.slane %v5890_v24, 1  ;;  %v8697_v44 = vrot.slane %v5967_v27, 2  ;;  %v8698_v16 = vrot.slane %v5948_v10, 2  ;;  %v8742_v24 = vld [vmem:[#allocation76_spill] sm:$0xff] }
 0x215   : > { %8692 = vst [vmem:[#allocation33_spill] sm:$0xff] %v6430_v3  ;;  %v1872_v62 = vmul.f32 %v5054_v34, %v5830_v4  ;;  %v2143_v39 = vadd.f32 %v2049_v36, %v6257_v0  ;;  %v8360_v31 = vrot.slane %v6403_v21, 2  ;;  %v2831_v50 = vrot.slane %v2726_v40, 2  ;;  %v6656_v38 = vld [vmem:[#allocation2 + $0x168] sm:$0xff] }
 0x216   : > { %8693 = vst [vmem:[#allocation96_spill] sm:$0xff] %v6435_v56  ;;  %v6442_v48 = vsel %vm1471_vm6, %v8695_v45, %v8694_v52  ;;  %v6449_v2 = vsel %vm1713_vm7, %v8698_v16, %v8697_v44  ;;  %v6460_v27 = vadd.f32 %v5956_v43, %v1126_v9  ;;  %v8701_v49 = vrot.slane %v6031_v33, 1  ;;  %v6479_v43 = vld [vmem:[#allocation2 + $0x100] sm:$0x3] }
 0x217   : > { %8696 = vst [vmem:[#allocation97_spill] sm:$0xff] %v6442_v48  ;;  %v8702_v19 = vrot.slane %v5984_v41, 1  ;;  %v8704_v0 = vrot.slane %v6059_v42, 1  ;;  %v8705_v60 = vrot.slane %v5695_v32, 1  ;;  %v2688_v40 = vadd.f32 %v2591_v7, %v2447_v26  ;;  %v1282_v32 = vld [vmem:[#allocation2 + $0xe8] sm:$0x3] }
 0x218   : > { %8699 = vst [vmem:[#allocation98_spill] sm:$0xff] %v6449_v2  ;;  %v6481_v33 = vadd.f32 %v1872_v62, %v1839_v63  ;;  %v2290_v17 = vsel %vm1713_vm7, %v8362_v8, %v2289_v25  ;;  %v6487_v11 = vmul.f32 %v8709_v30, %v1279_v51  ;;  %v6490_v42 = vmul.f32 %v5033_v14, %v1279_v51  ;;  %v6568_v8 = vld [vmem:[#allocation2 + $0x120] sm:$0xff] }
 0x219   : > { %1247 = vst.msk [vmem:[#allocation2 + $0x151] sm:$0xff] %vm381_vm0, %v6421_v54  ;;  %v6467_v4 = vsel %vm1471_vm6, %v8702_v19, %v8701_v49  ;;  %v6475_v57 = vsel %vm1471_vm6, %v8705_v60, %v8704_v0  ;;  %v6495_v22 = vmul.f32 %v5057_v53, %v1279_v51  ;;  %v6498_v63 = vmul.f32 %v5060_v35, %v1279_v51  ;;  %v6578_v0 = vld [vmem:[#allocation2 + $0x140] sm:$0xff] }
 0x21a   : > { %1252 = vst.msk [vmem:[#allocation2 + $0x189] sm:$0xff] %vm381_vm0, %v6430_v3  ;;  %v6501_v36 = vmul.f32 %v5079_v47, %v1279_v51  ;;  %v6504_v26 = vmul.f32 %v6233_v18, %v1279_v51  ;;  %v6506_v25 = vadd.f32 %v2290_v17, %v2143_v39  ;;  %v2832_v7 = vsel %vm1713_vm7, %v8360_v31, %v2831_v50  ;;  %v6542_v17 = vld [vmem:[#allocation2 + $0xd8] sm:$0xff]  ;;  %v6547_v31 = vld [vmem:[#allocation2 + $0xf0] sm:$0xff]  ;;  %v6570_v3 = vld [vmem:[#allocation2 + $0x108] sm:$0xff] }
 0x21b   : > { %8700 = vst [vmem:[#allocation99_spill] sm:$0xff] %v6460_v27  ;;  %v6513_v9 = vmul.f32 %v8709_v30, %v6477_v1  ;;  %v6517_v52 = vmul.f32 %v8709_v30, %v6479_v43  ;;  %v6519_v45 = vadd.f32 %v2832_v7, %v2688_v40  ;;  %v6522_v44 = vmul.f32 %v8709_v30, %v1282_v32  ;;  %v6544_v7 = vld [vmem:[#allocation2 + $0xc8] sm:$0xff]  ;;  %v6560_v40 = vld [vmem:[#allocation2 + $0xe0] sm:$0xff] }
 0x21c   : > { %8703 = vst [vmem:[#allocation100_spill] sm:$0xff] %v6467_v4  ;;  %v6525_v16 = vmul.f32 %v5033_v14, %v1282_v32  ;;  %v6528_v62 = vmul.f32 %v5057_v53, %v1282_v32  ;;  %v6533_v50 = vmul.f32 %v5060_v35, %v1282_v32  ;;  %v6536_v49 = vmul.f32 %v5079_v47, %v1282_v32  ;;  %v6638_v41 = vld [vmem:[#allocation2 + $0x160] sm:$0x3] }
 0x21d   : > { %8706 = vst [vmem:[#allocation101_spill] sm:$0xff] %v6477_v1  ;;  %v6554_v19 = vmul.f32 %v5033_v14, %v6479_v43  ;;  %v6558_v60 = vmul.f32 %v5057_v53, %v6479_v43  ;;  %v6566_v13 = vmul.f32 %v6233_v18, %v1282_v32  ;;  %v6582_v51 = vmul.f32 %v5037_v61, %v6477_v1  ;;  %v6588_v32 = vld [vmem:[#allocation2 + $0x128] sm:$0xff] }
 0x21e   : > { %8707 = vst [vmem:[#allocation102_spill] sm:$0xff] %v6479_v43  ;;  %v6586_v18 = vmul.f32 %v5037_v61, %v6544_v7  ;;  %v6592_v39 = vmul.f32 %v5037_v61, %v6542_v17  ;;  %v6596_v59 = vmul.f32 %v5037_v61, %v6560_v40  ;;  %v1400_v54 = vmul.f32 %v8709_v30, %v6544_v7 }
 0x21f   : > { %8708 = vst [vmem:[#allocation103_spill] sm:$0xff] %v6481_v33  ;;  %v6608_v5 = vmul.f32 %v5037_v61, %v6549_v58  ;;  %v6612_v20 = vmul.f32 %v5037_v61, %v6570_v3  ;;  %v6626_v21 = vmul.f32 %v5037_v61, %v6576_v12  ;;  %v1402_v4 = vmul.f32 %v8709_v30, %v6542_v17 }
 0x220   : > { %8710 = vst [vmem:[#allocation39_spill] sm:$0xff] %v6490_v42  ;;  %v6642_v55 = vmul.f32 %v5037_v61, %v6588_v32  ;;  %v1405_v47 = vmul.f32 %v8709_v30, %v6547_v31  ;;  %v1408_v46 = vmul.f32 %v8709_v30, %v6570_v3  ;;  %v1409_v2 = vmul.f32 %v8709_v30, %v6572_v37  ;;  %v6675_v56 = vld [vmem:[#allocation2 + $0x150] sm:$0xff]  ;;  %v6677_v34 = vld [vmem:[#allocation2 + $0x158] sm:$0xff] }
 0x221   : > { %1250 = vst.msk [vmem:[#allocation2 + $0x171] sm:$0xff] %vm381_vm0, %v6460_v27  ;;  %v6600_v27 = vmul.f32 %v5037_v61, %v6547_v31  ;;  %v1513_v10 = vrot.slane %v1400_v54, 1  ;;  %v1412_v6 = vmul.f32 %v8709_v30, %v6588_v32  ;;  %v1413_v43 = vmul.f32 %v8709_v30, %v6622_v29 }
 0x222   : > { %8711 = vst [vmem:[#allocation104_spill] sm:$0xff] %v6495_v22  ;;  %v1414_v35 = vmul.f32 %v8709_v30, %v6576_v12  ;;  %v1415_v48 = vmul.f32 %v8709_v30, %v6578_v0  ;;  %v1419_v54 = vmul.f32 %v8709_v30, %v6638_v41  ;;  %v8743_v28 = vrot.slane %v8742_v24, 1 }
 0x223   : > { %8712 = vst [vmem:[#allocation105_spill] sm:$0xff] %v6498_v63  ;;  %v1411_v63 = vmul.f32 %v8709_v30, %v6568_v8  ;;  %v1517_v53 = vrot.slane %v1402_v4, 1  ;;  %v1522_v42 = vrot.slane %v1405_v47, 1  ;;  %v1527_v15 = vrot.slane %v1408_v46, 1 }
 0x224   : > { %8713 = vst [vmem:[#allocation106_spill] sm:$0xff] %v6501_v36  ;;  %v6636_v36 = vld [vmem:[#allocation2 + $0x148] sm:$0x3]  ;;  %v1420_v24 = vmul.f32 %v8709_v30, %v6656_v38  ;;  %v1417_v12 = vmul.f32 %v8709_v30, %v6675_v56  ;;  %v1418_v29 = vmul.f32 %v8709_v30, %v6677_v34  ;;  %vm3353_vm8 = vcmask 64512  }
 0x225   : > { %8714 = vst [vmem:[#allocation107_spill] sm:$0xff] %v6504_v26  ;;  %v6620_v26 = vmul.f32 %v5037_v61, %v6568_v8  ;;  %v1416_v33 = vmul.f32 %v8709_v30, %v6636_v36  ;;  %vm3636_vm9 = vcmask 125952  }
 0x226   : > { %8715 = vst [vmem:[#allocation108_spill] sm:$0xff] %v6506_v25  ;;  %v1406_v25 = vmul.f32 %v8709_v30, %v6549_v58 }
 0x227   : > { %8716 = vst [vmem:[#allocation109_spill] sm:$0xff] %v6519_v45  ;;  %v6616_v45 = vmul.f32 %v5037_v61, %v6572_v37 }
 0x228   : > { %8717 = vst [vmem:[#allocation110_spill] sm:$0xff] %v6525_v16 }
 0x229   : > { %8718 = vst [vmem:[#allocation111_spill] sm:$0xff] %v6528_v62  ;;  %v8740_v62 = vld [vmem:[#allocation86_spill] sm:$0xff] }
 0x22a   : > { %8719 = vst [vmem:[#allocation112_spill] sm:$0xff] %v6533_v50  ;;  %v1410_v50 = vmul.f32 %v8709_v30, %v6604_v23  ;;  %v8741_v22 = vrot.slane %v8740_v62, 1  ;;  %v1340_v62 = vmul.f32 %v5037_v61, %v6656_v38 }
 0x22b   : > { %8720 = vst [vmem:[#allocation113_spill] sm:$0xff] %v6536_v49  ;;  %v1403_v49 = vmul.f32 %v8709_v30, %v6560_v40 }
 0x22c   : > { %8721 = vst [vmem:[#allocation114_spill] sm:$0xff] %v6542_v17  ;;  %v1530_v46 = vrot.slane %v1410_v50, 1 }
 0x22d   : > { %8722 = vst [vmem:[#allocation115_spill] sm:$0xff] %v6544_v7  ;;  %v1518_v16 = vrot.slane %v1403_v49, 1  ;;  %v1533_v49 = vrot.slane %v1412_v6, 1  ;;  %v8750_v6 = vrot.slane %v6522_v44, 1  ;;  %v1542_v44 = vrot.slane %v1417_v12, 1 }
 0x22e   : > { %8723 = vst [vmem:[#allocation116_spill] sm:$0xff] %v6547_v31 }
 0x22f   : > { %8724 = vst [vmem:[#allocation117_spill] sm:$0xff] %v6549_v58 }
 0x230   : > { %8725 = vst [vmem:[#allocation118_spill] sm:$0xff] %v6554_v19  ;;  %v1523_v19 = vrot.slane %v1406_v25, 1  ;;  %v1528_v25 = vrot.slane %v1409_v2, 1  ;;  %v1519_v2 = vsel %vm1471_vm6, %v1517_v53, %v1518_v16 }
 0x231   : > { %8726 = vst [vmem:[#allocation119_spill] sm:$0xff] %v6558_v60  ;;  %v1509_v60 = vsel %vm1471_vm6, %v8743_v28, %v8741_v22  ;;  %v8748_v28 = vrot.slane %v6513_v9, 1  ;;  %v8749_v22 = vrot.slane %v6487_v11, 1  ;;  %v6733_v12 = vadd.f32 %v1519_v2, %v6592_v39 }
 0x232   : > { %8727 = vst [vmem:[#allocation120_spill] sm:$0xff] %v6560_v40  ;;  %v1524_v50 = vsel %vm1471_vm6, %v1522_v42, %v1523_v19  ;;  %v1547_v42 = vrot.slane %v1420_v24, 1 }
 0x233   : > { %8728 = vst [vmem:[#allocation121_spill] sm:$0xff] %v6566_v13  ;;  %v6630_v13 = vmul.f32 %v5037_v61, %v6578_v0  ;;  %v1514_v4 = vsel %vm1471_vm6, %v8748_v28, %v1513_v10  ;;  %v1516_v47 = vsel %vm1471_vm6, %v1513_v10, %v8749_v22  ;;  %v1532_v28 = vrot.slane %v1411_v63, 1 }
 0x234   : > { %8729 = vst [vmem:[#allocation122_spill] sm:$0xff] %v6568_v8  ;;  %v1540_v10 = vrot.slane %v1416_v33, 1  ;;  %v8751_v22 = vrot.slane %v6517_v52, 1  ;;  %v1531_v8 = vsel %vm1471_vm6, %v1528_v25, %v1530_v46  ;;  %v1545_v63 = vrot.slane %v1419_v54, 1 }
 0x235   : > { %8730 = vst [vmem:[#allocation123_spill] sm:$0xff] %v6570_v3 }
 0x236   : > { %8731 = vst [vmem:[#allocation124_spill] sm:$0xff] %v6572_v37 }
 0x237   : > { %8733 = vst [vmem:[#allocation126_spill] sm:$0xff] %v6578_v0  ;;  %v6679_v0 = vld [vmem:[#allocation2 + $0x170] sm:$0xff] }
 0x238   : > { %8734 = vst [vmem:[#allocation127_spill] sm:$0xff] %v6588_v32  ;;  %v1537_v32 = vrot.slane %v1414_v35, 1  ;;  %v1421_v9 = vmul.f32 %v8709_v30, %v6679_v0  ;;  %v1526_v35 = vsel %vm1471_vm6, %v1523_v19, %v8751_v22  ;;  %v1338_v19 = vmul.f32 %v5037_v61, %v6675_v56 }
 0x239   : > { %8737 = vst [vmem:[#allocation130_spill] sm:$0xff] %v6636_v36  ;;  %v6681_v36 = vld [vmem:[#allocation2 + $0x178] sm:$0x3]  ;;  %v1341_v24 = vmul.f32 %v5037_v61, %v6679_v0  ;;  %v6748_v39 = vadd.f32 %v1526_v35, %v6608_v5  ;;  %v8756_v35 = vld [vmem:[#allocation129_spill] sm:$0xff] }
 0x23a   : > { %8738 = vst [vmem:[#allocation131_spill] sm:$0xff] %v6638_v41  ;;  %v1535_v41 = vrot.slane %v1413_v43, 1  ;;  %v1422_v11 = vmul.f32 %v8709_v30, %v6681_v36  ;;  %v1521_v43 = vsel %vm1471_vm6, %v1518_v16, %v8750_v6  ;;  %v1534_v30 = vsel %vm1471_vm6, %v1532_v28, %v1533_v49 }
 0x23b   : > { %8739 = vst [vmem:[#allocation132_spill] sm:$0xff] %v6656_v38  ;;  %v1538_v38 = vrot.slane %v1415_v48, 1  ;;  %v1529_v48 = vsel %vm1471_vm6, %v1527_v15, %v1528_v25  ;;  %v1548_v6 = vrot.slane %v1421_v9, 1  ;;  %v1339_v15 = vmul.f32 %v5037_v61, %v6677_v34  ;;  %v8752_v25 = vld [vmem:[#allocation13_spill] sm:$0xff]  ;;  %v8754_v2 = vld [vmem:[#allocation122_spill] sm:$0xff] }
 0x23c   : > { %8744 = vst [vmem:[#allocation86_spill] sm:$0xff] %v6675_v56  ;;  %v1536_v33 = vsel %vm1471_vm6, %v1533_v49, %v1535_v41  ;;  %v1550_v52 = vrot.slane %v1422_v11, 1  ;;  %v6721_v54 = vadd.f32 %v6475_v57, %v8752_v25  ;;  %v8753_v41 = vld [vmem:[#allocation82_spill] sm:$0xff]  ;;  %v6743_v49 = vadd.f32 %v1524_v50, %v6600_v27 }
 0x23d   : > { %8745 = vst [vmem:[#allocation76_spill] sm:$0xff] %v6677_v34  ;;  %v1539_v53 = vsel %vm1471_vm6, %v1537_v32, %v1538_v38  ;;  %v1541_v16 = vsel %vm1471_vm6, %v1538_v38, %v1540_v10  ;;  %v6724_v46 = vadd.f32 %v1509_v60, %v8753_v41  ;;  %v6730_v38 = vadd.f32 %v1516_v47, %v6586_v18 }
 0x23e   : > { %8746 = vst [vmem:[#allocation133_spill] sm:$0xff] %v6679_v0  ;;  %v6736_v32 = vadd.f32 %v1521_v43, %v6596_v59  ;;  %v1551_v18 = vsel %vm1471_vm6, %v1548_v6, %v1550_v52  ;;  %v6751_v59 = vadd.f32 %v1529_v48, %v6612_v20  ;;  %v6757_v61 = vadd.f32 %v1534_v30, %v6620_v26  ;;  %v8757_v30 = vld [vmem:[#allocation125_spill] sm:$0xff] }
 0x23f   : > { %8747 = vst [vmem:[#allocation134_spill] sm:$0xff] %v6681_v36  ;;  %v1543_v36 = vrot.slane %v1418_v29, 1  ;;  %v6727_v29 = vadd.f32 %v1514_v4, %v6582_v51  ;;  %v1549_v51 = vsel %vm1471_vm6, %v1547_v42, %v1548_v6  ;;  %v6754_v4 = vadd.f32 %v1531_v8, %v6616_v45  ;;  %v8755_v50 = vld [vmem:[#allocation127_spill] sm:$0xff] }
 0x240   : > { %v6763_v27 = vadd.f32 %v1539_v53, %v6626_v21  ;;  %v6766_v47 = vadd.f32 %v1541_v16, %v6630_v13  ;;  %v1641_v20 = vmul.f32 %v5033_v14, %v6477_v1  ;;  %v6774_v8 = vadd.f32 %v1549_v51, %v1340_v62 }
 0x241   : > { %v1544_v57 = vsel %vm1471_vm6, %v1542_v44, %v1543_v36  ;;  %v1546_v60 = vsel %vm1471_vm6, %v1543_v36, %v1545_v63  ;;  %v6760_v36 = vadd.f32 %v1536_v33, %v6642_v55  ;;  %v6776_v26 = vadd.f32 %v1551_v18, %v1341_v24  ;;  %v8758_v33 = vld [vmem:[#allocation126_spill] sm:$0xff]  ;;  %v8760_v25 = vld [vmem:[#allocation131_spill] sm:$0xff] }
 0x242   : > { %v6768_v5 = vadd.f32 %v1544_v57, %v1338_v19  ;;  %v6770_v9 = vadd.f32 %v1546_v60, %v1339_v15  ;;  %v1642_v55 = vmul.f32 %v5033_v14, %v6544_v7  ;;  %v1645_v21 = vmul.f32 %v5033_v14, %v6560_v40  ;;  %v8759_v44 = vld [vmem:[#allocation130_spill] sm:$0xff]  ;;  %v8761_v24 = vld [vmem:[#allocation132_spill] sm:$0xff] }
 0x243   : > { %v1644_v13 = vmul.f32 %v5033_v14, %v6542_v17  ;;  %v1647_v45 = vmul.f32 %v5033_v14, %v6547_v31  ;;  %v1648_v11 = vmul.f32 %v5033_v14, %v6549_v58  ;;  %v1650_v62 = vmul.f32 %v5033_v14, %v6570_v3 }
 0x244   : > { %v1651_v28 = vmul.f32 %v5033_v14, %v6572_v37  ;;  %v1652_v10 = vmul.f32 %v5033_v14, %v6604_v23  ;;  %v1653_v43 = vmul.f32 %v5033_v14, %v8754_v2  ;;  %v1654_v22 = vmul.f32 %v5033_v14, %v8755_v50  ;;  %v8767_v23 = vld [vmem:[#allocation87_spill] sm:$0xff]  ;;  %v8771_v2 = vld [vmem:[#allocation118_spill] sm:$0xff] }
 0x245   : > { %v1655_v48 = vmul.f32 %v5033_v14, %v8756_v35  ;;  %v1656_v63 = vmul.f32 %v5033_v14, %v8757_v30  ;;  %v1657_v53 = vmul.f32 %v5033_v14, %v8758_v33  ;;  %v1658_v16 = vmul.f32 %v5033_v14, %v8759_v44  ;;  %v8763_v44 = vld [vmem:[#allocation24_spill] sm:$0xff] }
 0x246   : > { %v1659_v42 = vmul.f32 %v5033_v14, %v6675_v56  ;;  %v1754_v6 = vrot.slane %v1641_v20, 2  ;;  %v1755_v52 = vrot.slane %v1642_v55, 2  ;;  %v1760_v19 = vrot.slane %v1645_v21, 2  ;;  %v8762_v51 = vld [vmem:[#allocation134_spill] sm:$0xff]  ;;  %v8765_v20 = vld [vmem:[#allocation51_spill] sm:$0xff]  ;;  %v8769_v56 = vld [vmem:[#allocation77_spill] sm:$0xff] }
 0x247   : > { %v1660_v15 = vmul.f32 %v5033_v14, %v6677_v34  ;;  %v1661_v41 = vmul.f32 %v5033_v14, %v8760_v25  ;;  %v1662_v57 = vmul.f32 %v5033_v14, %v8761_v24  ;;  %v1663_v60 = vmul.f32 %v5033_v14, %v6679_v0 }
 0x248   : > { %v1664_v18 = vmul.f32 %v5033_v14, %v8762_v51  ;;  %v8764_v35 = vrot.slane %v8763_v44, 2  ;;  %v8766_v55 = vrot.slane %v8765_v20, 2  ;;  %v8768_v34 = vrot.slane %v8767_v23, 2  ;;  %v8772_v51 = vld [vmem:[#allocation39_spill] sm:$0xff] }
 0x249   : > { %v8770_v33 = vrot.slane %v8769_v56, 2  ;;  %v1759_v30 = vrot.slane %v1644_v13, 2  ;;  %v1764_v24 = vrot.slane %v1647_v45, 2  ;;  %v1765_v50 = vrot.slane %v1648_v11, 2 }
 0x24a   : > { %v1746_v21 = vsel %vm1713_vm7, %v8766_v55, %v8764_v35  ;;  %v1767_v0 = vrot.slane %v8771_v2, 2  ;;  %v1769_v37 = vrot.slane %v1650_v62, 2  ;;  %v1756_v14 = vsel %vm1713_vm7, %v1754_v6, %v1755_v52 }
 0x24b   : > { %v1751_v25 = vsel %vm1713_vm7, %v8770_v33, %v8768_v34  ;;  %v8773_v44 = vrot.slane %v8772_v51, 2  ;;  %v1761_v35 = vsel %vm1713_vm7, %v1759_v30, %v1760_v19  ;;  %v1770_v55 = vrot.slane %v1651_v28, 2  ;;  %v8774_v33 = vld [vmem:[#allocation110_spill] sm:$0xff] }
 0x24c   : > { %v1775_v23 = vrot.slane %v1654_v22, 2  ;;  %v1777_v3 = vrot.slane %v1655_v48, 2  ;;  %v1779_v56 = vrot.slane %v1656_v63, 2  ;;  %v1780_v58 = vrot.slane %v1657_v53, 2 }
 0x24d   : > { %v1758_v20 = vsel %vm1713_vm7, %v1755_v52, %v8773_v44  ;;  %v1772_v34 = vrot.slane %v1652_v10, 2  ;;  %v1782_v13 = vrot.slane %v1658_v16, 2  ;;  %v1784_v45 = vrot.slane %v1659_v42, 2 }
 0x24e   : > { %v1785_v11 = vrot.slane %v1660_v15, 2  ;;  %v8775_v2 = vrot.slane %v8774_v33, 2  ;;  %v1766_v6 = vsel %vm1713_vm7, %v1764_v24, %v1765_v50  ;;  %v1768_v51 = vsel %vm1713_vm7, %v1765_v50, %v1767_v0 }
 0x24f   : > { %v1774_v52 = vrot.slane %v1653_v43, 2  ;;  %v1771_v30 = vsel %vm1713_vm7, %v1769_v37, %v1770_v55  ;;  %v1773_v28 = vsel %vm1713_vm7, %v1770_v55, %v1772_v34  ;;  %v1790_v22 = vrot.slane %v1663_v60, 2  ;;  %v8782_v55 = vld [vmem:[#allocation122_spill] sm:$0xff] }
 0x250   : > { %v1763_v62 = vsel %vm1713_vm7, %v1760_v19, %v8775_v2  ;;  %v1792_v48 = vrot.slane %v1664_v18, 2  ;;  %v1778_v63 = vsel %vm1713_vm7, %v1775_v23, %v1777_v3  ;;  %v1781_v53 = vsel %vm1713_vm7, %v1779_v56, %v1780_v58  ;;  %v8783_v56 = vld [vmem:[#allocation127_spill] sm:$0xff]  ;;  %v8786_v2 = vld [vmem:[#allocation86_spill] sm:$0xff] }
 0x251   : > { %v1776_v10 = vsel %vm1713_vm7, %v1774_v52, %v1775_v23  ;;  %v1787_v16 = vrot.slane %v1661_v41, 2  ;;  %v1783_v42 = vsel %vm1713_vm7, %v1780_v58, %v1782_v13  ;;  %v1786_v19 = vsel %vm1713_vm7, %v1784_v45, %v1785_v11  ;;  %v8784_v13 = vld [vmem:[#allocation125_spill] sm:$0xff]  ;;  %v8788_v52 = vld [vmem:[#allocation132_spill] sm:$0xff] }
 0x252   : > { %v1789_v15 = vrot.slane %v1662_v57, 2  ;;  %v1838_v0 = vadd.f32 %v1746_v21, %v6721_v54  ;;  %v1840_v43 = vadd.f32 %v1751_v25, %v6724_v46  ;;  %v1842_v50 = vadd.f32 %v1756_v14, %v6727_v29 }
 0x253   : > { %v1788_v37 = vsel %vm1713_vm7, %v1785_v11, %v1787_v16  ;;  %v1843_v24 = vadd.f32 %v1758_v20, %v6730_v38  ;;  %v1793_v60 = vsel %vm1713_vm7, %v1790_v22, %v1792_v48  ;;  %v1844_v41 = vadd.f32 %v1761_v35, %v6733_v12  ;;  %v8781_v20 = vld [vmem:[#allocation124_spill] sm:$0xff]  ;;  %v8785_v11 = vld [vmem:[#allocation126_spill] sm:$0xff] }
 0x254   : > { %v1791_v3 = vsel %vm1713_vm7, %v1789_v15, %v1790_v22  ;;  %v1845_v58 = vadd.f32 %v1763_v62, %v6736_v32  ;;  %v1846_v57 = vadd.f32 %v1766_v6, %v6743_v49  ;;  %v1847_v54 = vadd.f32 %v1768_v51, %v6748_v39  ;;  %v8787_v6 = vld [vmem:[#allocation76_spill] sm:$0xff] }
 0x255   : > { %v1848_v18 = vadd.f32 %v1771_v30, %v6751_v59  ;;  %v1849_v46 = vadd.f32 %v1773_v28, %v6754_v4  ;;  %v1850_v29 = vadd.f32 %v1776_v10, %v6757_v61  ;;  %v1851_v38 = vadd.f32 %v1778_v63, %v6760_v36  ;;  %v8776_v59 = vld [vmem:[#allocation41_spill] sm:$0xff]  ;;  %v8790_v63 = vld [vmem:[#allocation72_spill] sm:$0xff] }
 0x256   : > { %v1852_v25 = vadd.f32 %v1781_v53, %v6763_v27  ;;  %v1853_v21 = vadd.f32 %v1783_v42, %v6766_v47  ;;  %v1854_v12 = vadd.f32 %v1786_v19, %v6768_v5  ;;  %v1855_v32 = vadd.f32 %v1788_v37, %v6770_v9  ;;  %v6875_v27 = vld [vmem:[#allocation2 + $0x180] sm:$0xff]  ;;  %v6877_v47 = vld [vmem:[#allocation2 + $0x188] sm:$0xff] }
 0x257   : > { %v1856_v49 = vadd.f32 %v1791_v3, %v6774_v8  ;;  %v1857_v39 = vadd.f32 %v1793_v60, %v6776_v26  ;;  %v1873_v14 = vmul.f32 %v8776_v59, %v6477_v1  ;;  %v1874_v4 = vmul.f32 %v8776_v59, %v6544_v7  ;;  %8777 = vst [vmem:[#allocation13_spill] sm:$0xff] %v6875_v27  ;;  %v8779_v9 = vld [vmem:[#allocation117_spill] sm:$0xff]  ;;  %v8780_v26 = vld [vmem:[#allocation123_spill] sm:$0xff]  ;;  %v8793_v37 = vld [vmem:[#allocation96_spill] sm:$0xff] }
 0x258   : > { %v1875_v61 = vmul.f32 %v8776_v59, %v6542_v17  ;;  %v1876_v36 = vmul.f32 %v8776_v59, %v6560_v40  ;;  %8778 = vst [vmem:[#allocation82_spill] sm:$0xff] %v6877_v47  ;;  %v1877_v5 = vmul.f32 %v8776_v59, %v6547_v31  ;;  %v1878_v8 = vmul.f32 %v8776_v59, %v8779_v9  ;;  %v8789_v28 = vld [vmem:[#allocation133_spill] sm:$0xff] }
 0x259   : > { %v1879_v44 = vmul.f32 %v8776_v59, %v8780_v26  ;;  %v1880_v35 = vmul.f32 %v8776_v59, %v8781_v20  ;;  %v1881_v23 = vmul.f32 %v8776_v59, %v8782_v55  ;;  %v1882_v34 = vmul.f32 %v8776_v59, %v8783_v56  ;;  %v8791_v53 = vld [vmem:[#allocation53_spill] sm:$0xff] }
 0x25a   : > { %v1883_v45 = vmul.f32 %v8776_v59, %v8784_v13  ;;  %v1884_v33 = vmul.f32 %v8776_v59, %v8785_v11  ;;  %v1885_v62 = vmul.f32 %v8776_v59, %v8786_v2  ;;  %v1886_v51 = vmul.f32 %v8776_v59, %v8787_v6  ;;  %v8792_v42 = vld [vmem:[#allocation85_spill] sm:$0xff] }
 0x25b   : > { %v1887_v30 = vmul.f32 %v8776_v59, %v8788_v52  ;;  %v1888_v22 = vmul.f32 %v8776_v59, %v8789_v28  ;;  %v1889_v48 = vmul.f32 %v8776_v59, %v6875_v27  ;;  %v1890_v10 = vmul.f32 %v8776_v59, %v6877_v47 }
 0x25c   : > { %v6909_v16 = vadd.f32 %v8791_v53, %v8790_v63  ;;  %v6912_v19 = vadd.f32 %v8792_v42, %v1838_v0  ;;  %v6914_v15 = vadd.f32 %v1873_v14, %v1840_v43  ;;  %v6917_v3 = vadd.f32 %v1874_v4, %v8793_v37 }
 0x25d   : > { %v6919_v60 = vadd.f32 %v1875_v61, %v1842_v50  ;;  %v6921_v28 = vadd.f32 %v1876_v36, %v1843_v24  ;;  %v6923_v27 = vadd.f32 %v1877_v5, %v1844_v41  ;;  %v6925_v52 = vadd.f32 %v1878_v8, %v1845_v58  ;;  %v8797_v5 = vld [vmem:[#allocation129_spill] sm:$0xff] }
 0x25e   : > { %v6927_v59 = vadd.f32 %v1879_v44, %v1846_v57  ;;  %v6929_v63 = vadd.f32 %v1880_v35, %v1847_v54  ;;  %v6931_v53 = vadd.f32 %v1881_v23, %v1848_v18  ;;  %v6933_v0 = vadd.f32 %v1882_v34, %v1849_v46  ;;  %v8795_v18 = vld [vmem:[#allocation42_spill] sm:$0xff] }
 0x25f   : > { %v6935_v43 = vadd.f32 %v1883_v45, %v1850_v29  ;;  %v6937_v14 = vadd.f32 %v1884_v33, %v1851_v38  ;;  %v6939_v50 = vadd.f32 %v1885_v62, %v1852_v25  ;;  %v6941_v24 = vadd.f32 %v1886_v51, %v1853_v21  ;;  %v8798_v23 = vld [vmem:[#allocation130_spill] sm:$0xff]  ;;  %v8799_v62 = vld [vmem:[#allocation131_spill] sm:$0xff] }
 0x260   : > { %v6943_v41 = vadd.f32 %v1887_v30, %v1854_v12  ;;  %v6945_v58 = vadd.f32 %v1888_v22, %v1855_v32  ;;  %v6947_v57 = vadd.f32 %v1889_v48, %v1856_v49  ;;  %v6949_v54 = vadd.f32 %v1890_v10, %v1857_v39  ;;  %v8796_v39 = vld [vmem:[#allocation128_spill] sm:$0xff]  ;;  %v6987_v30 = vld [vmem:[#allocation2 + $0x190] sm:$0x3] }
 0x261   : > { %v1945_v46 = vmul.f32 %v8795_v18, %v6477_v1  ;;  %v1946_v29 = vmul.f32 %v8795_v18, %v6544_v7  ;;  %v1948_v38 = vmul.f32 %v8795_v18, %v6542_v17  ;;  %v1949_v25 = vmul.f32 %v8795_v18, %v6560_v40  ;;  %8800 = vst [vmem:[#allocation51_spill] sm:$0xff] %v6987_v30  ;;  %v8801_v22 = vld [vmem:[#allocation132_spill] sm:$0xff] }
 0x262   : > { %8794 = vst [vmem:[#allocation24_spill] sm:$0xff] %v6949_v54  ;;  %v1951_v21 = vmul.f32 %v8795_v18, %v6547_v31  ;;  %v1952_v12 = vmul.f32 %v8795_v18, %v8779_v9  ;;  %v1954_v32 = vmul.f32 %v8795_v18, %v8780_v26  ;;  %v1955_v49 = vmul.f32 %v8795_v18, %v8781_v20  ;;  %v8812_v9 = vld [vmem:[#allocation78_spill] sm:$0xff] }
 0x263   : > { %v1956_v4 = vmul.f32 %v8795_v18, %v8796_v39  ;;  %v1957_v61 = vmul.f32 %v8795_v18, %v8782_v55  ;;  %v1958_v36 = vmul.f32 %v8795_v18, %v8783_v56  ;;  %v1959_v8 = vmul.f32 %v8795_v18, %v8797_v5  ;;  %v8804_v55 = vld [vmem:[#allocation134_spill] sm:$0xff]  ;;  %v8805_v39 = vld [vmem:[#allocation13_spill] sm:$0xff] }
 0x264   : > { %v1960_v44 = vmul.f32 %v8795_v18, %v8784_v13  ;;  %v1961_v35 = vmul.f32 %v8795_v18, %v8785_v11  ;;  %v1962_v34 = vmul.f32 %v8795_v18, %v8798_v23  ;;  %v1963_v45 = vmul.f32 %v8795_v18, %v8786_v2  ;;  %v8802_v11 = vld [vmem:[#allocation133_spill] sm:$0xff]  ;;  %v8803_v2 = vld [vmem:[#allocation119_spill] sm:$0xff] }
 0x265   : > { %v1964_v33 = vmul.f32 %v8795_v18, %v8787_v6  ;;  %v1965_v51 = vmul.f32 %v8795_v18, %v8799_v62  ;;  %v1966_v48 = vmul.f32 %v8795_v18, %v8801_v22  ;;  %v2055_v10 = vrot.slane %v1945_v46, 1 }
 0x266   : > { %v2056_v42 = vrot.slane %v1946_v29, 1  ;;  %v2061_v37 = vrot.slane %v1949_v25, 1  ;;  %v1967_v23 = vmul.f32 %v8795_v18, %v8802_v11  ;;  %v2065_v13 = vrot.slane %v1951_v21, 1  ;;  %v8806_v29 = vld [vmem:[#allocation26_spill] sm:$0xff]  ;;  %v8808_v11 = vld [vmem:[#allocation15_spill] sm:$0xff] }
 0x267   : > { %v2066_v5 = vrot.slane %v1952_v12, 1  ;;  %v2068_v56 = vrot.slane %v8803_v2, 1  ;;  %v1968_v6 = vmul.f32 %v8795_v18, %v8804_v55  ;;  %v1969_v62 = vmul.f32 %v8795_v18, %v8805_v39  ;;  %v8810_v2 = vld [vmem:[#allocation88_spill] sm:$0xff] }
 0x268   : > { %v1970_v20 = vmul.f32 %v8795_v18, %v6877_v47  ;;  %v2060_v22 = vrot.slane %v1948_v38, 1  ;;  %v1971_v46 = vmul.f32 %v8795_v18, %v6987_v30  ;;  %v8807_v25 = vrot.slane %v8806_v29, 1  ;;  %v8814_v47 = vld [vmem:[#allocation104_spill] sm:$0xff]  ;;  %v8816_v30 = vld [vmem:[#allocation111_spill] sm:$0xff] }
 0x269   : > { %v8809_v21 = vrot.slane %v8808_v11, 1  ;;  %v8811_v26 = vrot.slane %v8810_v2, 1  ;;  %v8813_v55 = vrot.slane %v8812_v9, 1  ;;  %v2070_v39 = vrot.slane %v1954_v32, 1 }
 0x26a   : > { %v2057_v40 = vsel %vm1471_vm6, %v2055_v10, %v2056_v42  ;;  %v8815_v38 = vrot.slane %v8814_v47, 1  ;;  %v2062_v18 = vsel %vm1471_vm6, %v2060_v22, %v2061_v37  ;;  %v2071_v29 = vrot.slane %v1955_v49, 1 }
 0x26b   : > { %v2047_v12 = vsel %vm1471_vm6, %v8809_v21, %v8807_v25  ;;  %v2052_v31 = vsel %vm1471_vm6, %v8813_v55, %v8811_v26  ;;  %v8817_v11 = vrot.slane %v8816_v30, 1  ;;  %v2067_v21 = vsel %vm1471_vm6, %v2065_v13, %v2066_v5 }
 0x26c   : > { %v2059_v17 = vsel %vm1471_vm6, %v2056_v42, %v8815_v38  ;;  %v2069_v9 = vsel %vm1471_vm6, %v2066_v5, %v2068_v56  ;;  %v2073_v2 = vrot.slane %v1956_v4, 1  ;;  %v2076_v26 = vrot.slane %v1958_v36, 1 }
 0x26d   : > { %v2064_v25 = vsel %vm1471_vm6, %v2061_v37, %v8817_v11  ;;  %v2078_v55 = vrot.slane %v1959_v8, 1  ;;  %v2080_v32 = vrot.slane %v1960_v44, 1  ;;  %v2081_v10 = vrot.slane %v1961_v35, 1  ;;  %v8818_v35 = vld [vmem:[#allocation103_spill] sm:$0xff] }
 0x26e   : > { %v2075_v7 = vrot.slane %v1957_v61, 1  ;;  %v2083_v47 = vrot.slane %v1962_v34, 1  ;;  %v2085_v1 = vrot.slane %v1963_v45, 1  ;;  %v2086_v42 = vrot.slane %v1964_v33, 1 }
 0x26f   : > { %v2072_v22 = vsel %vm1471_vm6, %v2070_v39, %v2071_v29  ;;  %v2074_v49 = vsel %vm1471_vm6, %v2071_v29, %v2073_v2  ;;  %v2091_v30 = vrot.slane %v1967_v23, 1  ;;  %v2093_v38 = vrot.slane %v1968_v6, 1  ;;  %v8819_v23 = vld [vmem:[#allocation97_spill] sm:$0xff]  ;;  %v8832_v2 = vld [vmem:[#allocation123_spill] sm:$0xff] }
 0x270   : > { %v2088_v37 = vrot.slane %v1965_v51, 1  ;;  %v2095_v11 = vrot.slane %v1969_v62, 1  ;;  %v2096_v13 = vrot.slane %v1970_v20, 1  ;;  %v2098_v54 = vrot.slane %v1971_v46, 1 }
 0x271   : > { %v2077_v56 = vsel %vm1471_vm6, %v2075_v7, %v2076_v26  ;;  %v2079_v4 = vsel %vm1471_vm6, %v2076_v26, %v2078_v55  ;;  %v2082_v36 = vsel %vm1471_vm6, %v2080_v32, %v2081_v10  ;;  %v2090_v61 = vrot.slane %v1966_v48, 1  ;;  %v8833_v55 = vld [vmem:[#allocation124_spill] sm:$0xff] }
 0x272   : > { %v2084_v5 = vsel %vm1471_vm6, %v2081_v10, %v2083_v47  ;;  %v2087_v8 = vsel %vm1471_vm6, %v2085_v1, %v2086_v42  ;;  %v2089_v39 = vsel %vm1471_vm6, %v2086_v42, %v2088_v37  ;;  %v7031_v44 = vadd.f32 %v2047_v12, %v6909_v16  ;;  %v8834_v10 = vld [vmem:[#allocation128_spill] sm:$0xff]  ;;  %v8835_v42 = vld [vmem:[#allocation122_spill] sm:$0xff] }
 0x273   : > { %v2092_v6 = vsel %vm1471_vm6, %v2090_v61, %v2091_v30  ;;  %v2094_v20 = vsel %vm1471_vm6, %v2091_v30, %v2093_v38  ;;  %v7036_v7 = vadd.f32 %v2052_v31, %v6912_v19  ;;  %v7040_v34 = vadd.f32 %v8819_v23, %v8818_v35  ;;  %v8837_v38 = vld [vmem:[#allocation129_spill] sm:$0xff]  ;;  %v8844_v23 = vld [vmem:[#allocation132_spill] sm:$0xff] }
 0x274   : > { %v2097_v45 = vsel %vm1471_vm6, %v2095_v11, %v2096_v13  ;;  %v2099_v1 = vsel %vm1471_vm6, %v2096_v13, %v2098_v54  ;;  %v7045_v33 = vadd.f32 %v2057_v40, %v6914_v15  ;;  %v7048_v16 = vadd.f32 %v2059_v17, %v6917_v3  ;;  %v8838_v11 = vld [vmem:[#allocation125_spill] sm:$0xff] }
 0x275   : > { %v7051_v62 = vadd.f32 %v2062_v18, %v6919_v60  ;;  %v7054_v31 = vadd.f32 %v2064_v25, %v6921_v28  ;;  %v7057_v19 = vadd.f32 %v2067_v21, %v6923_v27  ;;  %v7060_v51 = vadd.f32 %v2069_v9, %v6925_v52  ;;  %v8831_v21 = vld [vmem:[#allocation102_spill] sm:$0xff] }
 0x276   : > { %v7063_v54 = vadd.f32 %v2072_v22, %v6927_v59  ;;  %v7066_v40 = vadd.f32 %v2074_v49, %v6929_v63  ;;  %v7069_v17 = vadd.f32 %v2077_v56, %v6931_v53  ;;  %v7072_v15 = vadd.f32 %v2079_v4, %v6933_v0  ;;  %v8822_v53 = vld [vmem:[#allocation24_spill] sm:$0xff]  ;;  %v8836_v49 = vld [vmem:[#allocation127_spill] sm:$0xff]  ;;  %v8839_v56 = vld [vmem:[#allocation126_spill] sm:$0xff] }
 0x277   : > { %v7075_v28 = vadd.f32 %v2082_v36, %v6935_v43  ;;  %v7078_v27 = vadd.f32 %v2084_v5, %v6937_v14  ;;  %v7081_v52 = vadd.f32 %v2087_v8, %v6939_v50  ;;  %v7084_v3 = vadd.f32 %v2089_v39, %v6941_v24  ;;  %v8824_v43 = vld [vmem:[#allocation101_spill] sm:$0xff]  ;;  %v8825_v14 = vld [vmem:[#allocation43_spill] sm:$0xff]  ;;  %v8827_v24 = vld [vmem:[#allocation114_spill] sm:$0xff] }
 0x278   : > { %v7087_v60 = vadd.f32 %v2092_v6, %v6943_v41  ;;  %v7090_v59 = vadd.f32 %v2094_v20, %v6945_v58  ;;  %v7093_v63 = vadd.f32 %v2097_v45, %v6947_v57  ;;  %v7096_v0 = vadd.f32 %v2099_v1, %v8822_v53  ;;  %v8826_v50 = vld [vmem:[#allocation115_spill] sm:$0xff]  ;;  %v8828_v41 = vld [vmem:[#allocation120_spill] sm:$0xff]  ;;  %v8830_v57 = vld [vmem:[#allocation117_spill] sm:$0xff] }
 0x279   : > { %v2186_v48 = vmul.f32 %v8825_v14, %v8824_v43  ;;  %v2187_v46 = vmul.f32 %v8825_v14, %v8826_v50  ;;  %v2189_v12 = vmul.f32 %v8825_v14, %v8827_v24  ;;  %v2190_v18 = vmul.f32 %v8825_v14, %v8828_v41  ;;  %v8829_v58 = vld [vmem:[#allocation116_spill] sm:$0xff]  ;;  %v8840_v36 = vld [vmem:[#allocation130_spill] sm:$0xff]  ;;  %v8843_v20 = vld [vmem:[#allocation131_spill] sm:$0xff] }
 0x27a   : > { %8820 = vst [vmem:[#allocation87_spill] sm:$0xff] %v7090_v59  ;;  %v2192_v29 = vmul.f32 %v8825_v14, %v8829_v58  ;;  %v2193_v25 = vmul.f32 %v8825_v14, %v8830_v57  ;;  %v2194_v9 = vmul.f32 %v8825_v14, %v8831_v21  ;;  %v2195_v26 = vmul.f32 %v8825_v14, %v8832_v2  ;;  %v8841_v5 = vld [vmem:[#allocation86_spill] sm:$0xff]  ;;  %v8842_v39 = vld [vmem:[#allocation76_spill] sm:$0xff]  ;;  %v8845_v1 = vld [vmem:[#allocation133_spill] sm:$0xff] }
 0x27b   : > { %8821 = vst [vmem:[#allocation77_spill] sm:$0xff] %v7093_v63  ;;  %v2196_v32 = vmul.f32 %v8825_v14, %v8833_v55  ;;  %v2197_v47 = vmul.f32 %v8825_v14, %v8834_v10  ;;  %v2198_v22 = vmul.f32 %v8825_v14, %v8835_v42  ;;  %v2199_v30 = vmul.f32 %v8825_v14, %v8836_v49  ;;  %v8847_v42 = vld [vmem:[#allocation13_spill] sm:$0xff]  ;;  %v8848_v55 = vld [vmem:[#allocation82_spill] sm:$0xff]  ;;  %v8849_v2 = vld [vmem:[#allocation51_spill] sm:$0xff] }
 0x27c   : > { %8823 = vst [vmem:[#allocation118_spill] sm:$0xff] %v7096_v0  ;;  %v2200_v37 = vmul.f32 %v8825_v14, %v8837_v38  ;;  %v2201_v13 = vmul.f32 %v8825_v14, %v8838_v11  ;;  %v2202_v4 = vmul.f32 %v8825_v14, %v8839_v56  ;;  %v2203_v61 = vmul.f32 %v8825_v14, %v8840_v36  ;;  %v8846_v56 = vld [vmem:[#allocation134_spill] sm:$0xff]  ;;  %v8860_v50 = vld [vmem:[#allocation83_spill] sm:$0xff] }
 0x27d   : > { %v2204_v8 = vmul.f32 %v8825_v14, %v8841_v5  ;;  %v2205_v6 = vmul.f32 %v8825_v14, %v8842_v39  ;;  %v2206_v35 = vmul.f32 %v8825_v14, %v8843_v20  ;;  %v2207_v45 = vmul.f32 %v8825_v14, %v8844_v23 }
 0x27e   : > { %v2208_v53 = vmul.f32 %v8825_v14, %v8845_v1  ;;  %v2296_v38 = vrot.slane %v2186_v48, 2  ;;  %v2297_v10 = vrot.slane %v2187_v46, 2  ;;  %v2302_v21 = vrot.slane %v2190_v18, 2  ;;  %v8850_v1 = vld [vmem:[#allocation70_spill] sm:$0xff]  ;;  %v8852_v46 = vld [vmem:[#allocation69_spill] sm:$0xff] }
 0x27f   : > { %v2209_v36 = vmul.f32 %v8825_v14, %v8846_v56  ;;  %v2306_v11 = vrot.slane %v2192_v29, 2  ;;  %v2307_v5 = vrot.slane %v2193_v25, 2  ;;  %v2309_v49 = vrot.slane %v2194_v9, 2  ;;  %v8854_v56 = vld [vmem:[#allocation94_spill] sm:$0xff]  ;;  %v8856_v25 = vld [vmem:[#allocation52_spill] sm:$0xff] }
 0x280   : > { %v2210_v39 = vmul.f32 %v8825_v14, %v8847_v42  ;;  %v2211_v20 = vmul.f32 %v8825_v14, %v8848_v55  ;;  %v2212_v23 = vmul.f32 %v8825_v14, %v8849_v2  ;;  %v2301_v57 = vrot.slane %v2189_v12, 2  ;;  %v8858_v42 = vld [vmem:[#allocation17_spill] sm:$0xff] }
 0x281   : > { %v8851_v48 = vrot.slane %v8850_v1, 2  ;;  %v8853_v18 = vrot.slane %v8852_v46, 2  ;;  %v8855_v29 = vrot.slane %v8854_v56, 2  ;;  %v8857_v9 = vrot.slane %v8856_v25, 2  ;;  %v8862_v1 = vld [vmem:[#allocation105_spill] sm:$0xff] }
 0x282   : > { %v8859_v24 = vrot.slane %v8858_v42, 2  ;;  %v8861_v55 = vrot.slane %v8860_v50, 2  ;;  %v2311_v14 = vrot.slane %v2195_v26, 2  ;;  %v2298_v12 = vsel %vm1713_vm7, %v2296_v38, %v2297_v10 }
 0x283   : > { %v2283_v58 = vsel %vm1713_vm7, %v8853_v18, %v8851_v48  ;;  %v2288_v41 = vsel %vm1713_vm7, %v8857_v9, %v8855_v29  ;;  %v8863_v2 = vrot.slane %v8862_v1, 2  ;;  %v2303_v48 = vsel %vm1713_vm7, %v2301_v57, %v2302_v21  ;;  %v8864_v18 = vld [vmem:[#allocation112_spill] sm:$0xff] }
 0x284   : > { %v2293_v43 = vsel %vm1713_vm7, %v8861_v55, %v8859_v24  ;;  %v2312_v56 = vrot.slane %v2196_v32, 2  ;;  %v8865_v25 = vrot.slane %v8864_v18, 2  ;;  %v2308_v42 = vsel %vm1713_vm7, %v2306_v11, %v2307_v5 }
 0x285   : > { %v2300_v46 = vsel %vm1713_vm7, %v2297_v10, %v8863_v2  ;;  %v2310_v50 = vsel %vm1713_vm7, %v2307_v5, %v2309_v49  ;;  %v2314_v9 = vrot.slane %v2197_v47, 2  ;;  %v2317_v24 = vrot.slane %v2199_v30, 2 }
 0x286   : > { %v2305_v29 = vsel %vm1713_vm7, %v2302_v21, %v8865_v25  ;;  %v2319_v26 = vrot.slane %v2200_v37, 2  ;;  %v2321_v55 = vrot.slane %v2201_v13, 2  ;;  %v2322_v38 = vrot.slane %v2202_v4, 2 }
 0x287   : > { %v2316_v0 = vrot.slane %v2198_v22, 2  ;;  %v2324_v1 = vrot.slane %v2203_v61, 2  ;;  %v2326_v63 = vrot.slane %v2204_v8, 2  ;;  %v2327_v2 = vrot.slane %v2205_v6, 2  ;;  %v8866_v61 = vld [vmem:[#allocation79_spill] sm:$0xff] }
 0x288   : > { %v2313_v57 = vsel %vm1713_vm7, %v2311_v14, %v2312_v56  ;;  %v2315_v32 = vsel %vm1713_vm7, %v2312_v56, %v2314_v9  ;;  %v2332_v10 = vrot.slane %v2208_v53, 2  ;;  %v2334_v18 = vrot.slane %v2209_v36, 2 }
 0x289   : > { %v2329_v21 = vrot.slane %v2206_v35, 2  ;;  %v2336_v25 = vrot.slane %v2210_v39, 2  ;;  %v2337_v11 = vrot.slane %v2211_v20, 2  ;;  %v2339_v59 = vrot.slane %v2212_v23, 2  ;;  %v8867_v35 = vld [vmem:[#allocation98_spill] sm:$0xff] }
 0x28a   : > { %v2318_v47 = vsel %vm1713_vm7, %v2316_v0, %v2317_v24  ;;  %v2320_v49 = vsel %vm1713_vm7, %v2317_v24, %v2319_v26  ;;  %v2323_v30 = vsel %vm1713_vm7, %v2321_v55, %v2322_v38  ;;  %v2331_v22 = vrot.slane %v2207_v45, 2  ;;  %v8878_v24 = vld [vmem:[#allocation116_spill] sm:$0xff]  ;;  %v7226_v55 = vld [vmem:[#allocation2 + $0x198] sm:$0xff] }
 0x28b   : > { %v2325_v37 = vsel %vm1713_vm7, %v2322_v38, %v2324_v1  ;;  %v2328_v13 = vsel %vm1713_vm7, %v2326_v63, %v2327_v2  ;;  %v2330_v4 = vsel %vm1713_vm7, %v2327_v2, %v2329_v21  ;;  %v2381_v5 = vadd.f32 %v2283_v58, %v8866_v61  ;;  %8879 = vst [vmem:[#allocation41_spill] sm:$0xff] %v7226_v55  ;;  %v7228_v38 = vld [vmem:[#allocation2 + $0x1a0] sm:$0xff]  ;;  %v8881_v1 = vld [vmem:[#allocation117_spill] sm:$0xff]  ;;  %v8884_v21 = vld [vmem:[#allocation122_spill] sm:$0xff] }
 0x28c   : > { %v2333_v36 = vsel %vm1713_vm7, %v2331_v22, %v2332_v10  ;;  %v2335_v8 = vsel %vm1713_vm7, %v2332_v10, %v2334_v18  ;;  %v2383_v39 = vadd.f32 %v2288_v41, %v7031_v44  ;;  %v2385_v0 = vadd.f32 %v2293_v43, %v7036_v7  ;;  %v8868_v41 = vld [vmem:[#allocation87_spill] sm:$0xff]  ;;  %8880 = vst [vmem:[#allocation72_spill] sm:$0xff] %v7228_v38  ;;  %v8883_v10 = vld [vmem:[#allocation124_spill] sm:$0xff]  ;;  %v8887_v22 = vld [vmem:[#allocation126_spill] sm:$0xff] }
 0x28d   : > { %v2338_v6 = vsel %vm1713_vm7, %v2336_v25, %v2337_v11  ;;  %v2340_v20 = vsel %vm1713_vm7, %v2337_v11, %v2339_v59  ;;  %v2386_v23 = vadd.f32 %v8867_v35, %v7040_v34  ;;  %v2387_v63 = vadd.f32 %v2298_v12, %v7045_v33  ;;  %v8869_v12 = vld [vmem:[#allocation77_spill] sm:$0xff]  ;;  %v8885_v11 = vld [vmem:[#allocation127_spill] sm:$0xff]  ;;  %v8889_v61 = vld [vmem:[#allocation76_spill] sm:$0xff] }
 0x28e   : > { %v2388_v45 = vadd.f32 %v2300_v46, %v7048_v16  ;;  %v2389_v58 = vadd.f32 %v2303_v48, %v7051_v62  ;;  %v2390_v53 = vadd.f32 %v2305_v29, %v7054_v31  ;;  %v2391_v14 = vadd.f32 %v2308_v42, %v7057_v19  ;;  %v8870_v46 = vld [vmem:[#allocation118_spill] sm:$0xff]  ;;  %v7208_v48 = vld [vmem:[#allocation2 + $0xa8] sm:$0xff] }
 0x28f   : > { %v2392_v44 = vadd.f32 %v2310_v50, %v7060_v51  ;;  %v2393_v7 = vadd.f32 %v2313_v57, %v7063_v54  ;;  %v2394_v43 = vadd.f32 %v2315_v32, %v7066_v40  ;;  %v2395_v59 = vadd.f32 %v2318_v47, %v7069_v17  ;;  %8871 = vst [vmem:[#allocation39_spill] sm:$0xff] %v7208_v48  ;;  %v8872_v17 = vld [vmem:[#allocation46_spill] sm:$0xff]  ;;  %v8877_v50 = vld [vmem:[#allocation120_spill] sm:$0xff]  ;;  %v8882_v57 = vld [vmem:[#allocation123_spill] sm:$0xff] }
 0x290   : > { %v2396_v34 = vadd.f32 %v2320_v49, %v7072_v15  ;;  %v2397_v33 = vadd.f32 %v2323_v30, %v7075_v28  ;;  %v2398_v16 = vadd.f32 %v2325_v37, %v7078_v27  ;;  %v2399_v62 = vadd.f32 %v2328_v13, %v7081_v52  ;;  %v7212_v28 = vld [vmem:[#allocation2 + $0xb0] sm:$0xff]  ;;  %v8874_v52 = vld [vmem:[#allocation101_spill] sm:$0xff] }
 0x291   : > { %v2400_v31 = vadd.f32 %v2330_v4, %v7084_v3  ;;  %v2401_v19 = vadd.f32 %v2333_v36, %v7087_v60  ;;  %v2402_v51 = vadd.f32 %v2335_v8, %v8868_v41  ;;  %v2403_v54 = vadd.f32 %v2338_v6, %v8869_v12  ;;  %8873 = vst [vmem:[#allocation110_spill] sm:$0xff] %v7212_v28  ;;  %v8875_v60 = vld [vmem:[#allocation115_spill] sm:$0xff]  ;;  %v8876_v29 = vld [vmem:[#allocation114_spill] sm:$0xff]  ;;  %v8886_v49 = vld [vmem:[#allocation125_spill] sm:$0xff] }
 0x292   : > { %v2404_v40 = vadd.f32 %v2340_v20, %v8870_v46  ;;  %v2416_v15 = vmul.f32 %v7208_v48, %v8872_v17  ;;  %v2417_v27 = vmul.f32 %v7212_v28, %v8872_v17  ;;  %v2418_v3 = vmul.f32 %v8872_v17, %v8874_v52  ;;  %v8888_v13 = vld [vmem:[#allocation86_spill] sm:$0xff]  ;;  %v8890_v8 = vld [vmem:[#allocation132_spill] sm:$0xff]  ;;  %v8891_v20 = vld [vmem:[#allocation133_spill] sm:$0xff] }
 0x293   : > { %v2419_v56 = vmul.f32 %v8872_v17, %v8875_v60  ;;  %v2420_v42 = vmul.f32 %v8872_v17, %v8876_v29  ;;  %v2421_v9 = vmul.f32 %v8872_v17, %v8877_v50  ;;  %v2422_v26 = vmul.f32 %v8872_v17, %v8878_v24  ;;  %v8892_v41 = vld [vmem:[#allocation13_spill] sm:$0xff]  ;;  %v8893_v46 = vld [vmem:[#allocation82_spill] sm:$0xff] }
 0x294   : > { %v2423_v2 = vmul.f32 %v8872_v17, %v8881_v1  ;;  %v2424_v32 = vmul.f32 %v8872_v17, %v8882_v57  ;;  %v2425_v18 = vmul.f32 %v8872_v17, %v8883_v10  ;;  %v2426_v25 = vmul.f32 %v8872_v17, %v8884_v21 }
 0x295   : > { %v2427_v47 = vmul.f32 %v8872_v17, %v8885_v11  ;;  %v2428_v30 = vmul.f32 %v8872_v17, %v8886_v49  ;;  %v2429_v37 = vmul.f32 %v8872_v17, %v8887_v22  ;;  %v2430_v4 = vmul.f32 %v8872_v17, %v8888_v13  ;;  %v8894_v22 = vld [vmem:[#allocation66_spill] sm:$0xff] }
 0x296   : > { %v2431_v36 = vmul.f32 %v8872_v17, %v8889_v61  ;;  %v2432_v6 = vmul.f32 %v8872_v17, %v8890_v8  ;;  %v2433_v35 = vmul.f32 %v8872_v17, %v8891_v20  ;;  %v2434_v12 = vmul.f32 %v8872_v17, %v8892_v41  ;;  %v8895_v8 = vld [vmem:[#allocation108_spill] sm:$0xff] }
 0x297   : > { %v2435_v28 = vmul.f32 %v8872_v17, %v8893_v46  ;;  %v2436_v48 = vmul.f32 %v8872_v17, %v7226_v55  ;;  %v2437_v13 = vmul.f32 %v8872_v17, %v7228_v38  ;;  %v7261_v61 = vadd.f32 %v8894_v22, %v2381_v5  ;;  %v8917_v22 = vld [vmem:[#allocation131_spill] sm:$0xff] }
 0x298   : > { %v7263_v49 = vadd.f32 %v2416_v15, %v2383_v39  ;;  %v7266_v11 = vadd.f32 %v2417_v27, %v8895_v8  ;;  %v7268_v20 = vadd.f32 %v2418_v3, %v2385_v0  ;;  %v7270_v41 = vadd.f32 %v2419_v56, %v2386_v23  ;;  %v8907_v27 = vld [vmem:[#allocation128_spill] sm:$0xff]  ;;  %v8908_v3 = vld [vmem:[#allocation122_spill] sm:$0xff]  ;;  %v8909_v56 = vld [vmem:[#allocation127_spill] sm:$0xff] }
 0x299   : > { %v7272_v21 = vadd.f32 %v2420_v42, %v2387_v63  ;;  %v7274_v46 = vadd.f32 %v2421_v9, %v2388_v45  ;;  %v7276_v55 = vadd.f32 %v2422_v26, %v2389_v58  ;;  %v7278_v10 = vadd.f32 %v2423_v2, %v2390_v53  ;;  %v8910_v42 = vld [vmem:[#allocation129_spill] sm:$0xff]  ;;  %v8912_v26 = vld [vmem:[#allocation126_spill] sm:$0xff] }
 0x29a   : > { %v7280_v17 = vadd.f32 %v2424_v32, %v2391_v14  ;;  %v7282_v5 = vadd.f32 %v2425_v18, %v2392_v44  ;;  %v7284_v39 = vadd.f32 %v2426_v25, %v2393_v7  ;;  %v7286_v15 = vadd.f32 %v2427_v47, %v2394_v43  ;;  %v8911_v9 = vld [vmem:[#allocation125_spill] sm:$0xff]  ;;  %v8913_v2 = vld [vmem:[#allocation130_spill] sm:$0xff]  ;;  %v8915_v25 = vld [vmem:[#allocation76_spill] sm:$0xff] }
 0x29b   : > { %v7288_v0 = vadd.f32 %v2428_v30, %v2395_v59  ;;  %v7290_v23 = vadd.f32 %v2429_v37, %v2396_v34  ;;  %v7292_v63 = vadd.f32 %v2430_v4, %v2397_v33  ;;  %v7294_v45 = vadd.f32 %v2431_v36, %v2398_v16  ;;  %v8904_v59 = vld [vmem:[#allocation44_spill] sm:$0xff]  ;;  %v8914_v32 = vld [vmem:[#allocation86_spill] sm:$0xff]  ;;  %v7344_v30 = vld [vmem:[#allocation2 + $0x1a8] sm:$0x3] }
 0x29c   : > { %v7296_v58 = vadd.f32 %v2432_v6, %v2399_v62  ;;  %v7298_v53 = vadd.f32 %v2433_v35, %v2400_v31  ;;  %v7300_v14 = vadd.f32 %v2434_v12, %v2401_v19  ;;  %v7302_v44 = vadd.f32 %v2435_v28, %v2402_v51  ;;  %v8905_v51 = vld [vmem:[#allocation102_spill] sm:$0xff]  ;;  %8916 = vst [vmem:[#allocation78_spill] sm:$0xff] %v7344_v30  ;;  %v8919_v36 = vld [vmem:[#allocation133_spill] sm:$0xff] }
 0x29d   : > { %8896 = vst [vmem:[#allocation53_spill] sm:$0xff] %v7292_v63  ;;  %v7304_v7 = vadd.f32 %v2436_v48, %v2403_v54  ;;  %v7306_v43 = vadd.f32 %v2437_v13, %v2404_v40  ;;  %v2489_v34 = vmul.f32 %v8904_v59, %v8874_v52  ;;  %v2490_v33 = vmul.f32 %v8904_v59, %v8875_v60  ;;  %v8906_v48 = vld [vmem:[#allocation124_spill] sm:$0xff]  ;;  %v8920_v6 = vld [vmem:[#allocation134_spill] sm:$0xff]  ;;  %v8921_v12 = vld [vmem:[#allocation13_spill] sm:$0xff] }
 0x29e   : > { %8897 = vst [vmem:[#allocation85_spill] sm:$0xff] %v7294_v45  ;;  %v2492_v16 = vmul.f32 %v8904_v59, %v8876_v29  ;;  %v2493_v62 = vmul.f32 %v8904_v59, %v8877_v50  ;;  %v2495_v31 = vmul.f32 %v8904_v59, %v8878_v24  ;;  %v2496_v19 = vmul.f32 %v8904_v59, %v8881_v1  ;;  %v8918_v13 = vld [vmem:[#allocation132_spill] sm:$0xff] }
 0x29f   : > { %8898 = vst [vmem:[#allocation96_spill] sm:$0xff] %v7296_v58  ;;  %v2497_v54 = vmul.f32 %v8904_v59, %v8905_v51  ;;  %v2498_v40 = vmul.f32 %v8904_v59, %v8882_v57  ;;  %v2499_v28 = vmul.f32 %v8904_v59, %v8906_v48  ;;  %v2500_v52 = vmul.f32 %v8904_v59, %v8907_v27  ;;  %v8922_v48 = vld [vmem:[#allocation82_spill] sm:$0xff] }
 0x2a0   : > { %8899 = vst [vmem:[#allocation42_spill] sm:$0xff] %v7298_v53  ;;  %v2501_v60 = vmul.f32 %v8904_v59, %v8908_v3  ;;  %v2502_v29 = vmul.f32 %v8904_v59, %v8909_v56  ;;  %v2503_v50 = vmul.f32 %v8904_v59, %v8910_v42  ;;  %v2504_v24 = vmul.f32 %v8904_v59, %v8911_v9  ;;  %v8923_v42 = vld [vmem:[#allocation51_spill] sm:$0xff] }
 0x2a1   : > { %8900 = vst [vmem:[#allocation119_spill] sm:$0xff] %v7300_v14  ;;  %v2505_v1 = vmul.f32 %v8904_v59, %v8912_v26  ;;  %v2506_v57 = vmul.f32 %v8904_v59, %v8913_v2  ;;  %v2507_v18 = vmul.f32 %v8904_v59, %v8914_v32  ;;  %v2508_v47 = vmul.f32 %v8904_v59, %v8915_v25  ;;  %v8924_v25 = vld [vmem:[#allocation41_spill] sm:$0xff]  ;;  %v8934_v53 = vld [vmem:[#allocation67_spill] sm:$0xff] }
 0x2a2   : > { %8901 = vst [vmem:[#allocation26_spill] sm:$0xff] %v7302_v44  ;;  %v2509_v37 = vmul.f32 %v8904_v59, %v8917_v22  ;;  %v2510_v4 = vmul.f32 %v8904_v59, %v8918_v13  ;;  %v2511_v8 = vmul.f32 %v8904_v59, %v8919_v36  ;;  %v2512_v35 = vmul.f32 %v8904_v59, %v8920_v6 }
 0x2a3   : > { %8902 = vst [vmem:[#allocation15_spill] sm:$0xff] %v7304_v7  ;;  %v2513_v51 = vmul.f32 %v8904_v59, %v8921_v12  ;;  %v2514_v27 = vmul.f32 %v8904_v59, %v8922_v48  ;;  %v2597_v3 = vrot.slane %v2489_v34, 1  ;;  %v2598_v56 = vrot.slane %v2490_v33, 1  ;;  %v8925_v12 = vld [vmem:[#allocation73_spill] sm:$0xff]  ;;  %v8927_v34 = vld [vmem:[#allocation71_spill] sm:$0xff] }
 0x2a4   : > { %8903 = vst [vmem:[#allocation88_spill] sm:$0xff] %v7306_v43  ;;  %v2515_v9 = vmul.f32 %v8904_v59, %v8923_v42  ;;  %v2603_v26 = vrot.slane %v2493_v62, 1  ;;  %v2607_v2 = vrot.slane %v2495_v31, 1  ;;  %v2608_v32 = vrot.slane %v2496_v19, 1  ;;  %v8929_v19 = vld [vmem:[#allocation50_spill] sm:$0xff] }
 0x2a5   : > { %v2516_v22 = vmul.f32 %v8904_v59, %v8924_v25  ;;  %v2517_v13 = vmul.f32 %v8904_v59, %v7228_v38  ;;  %v2518_v36 = vmul.f32 %v8904_v59, %v7344_v30  ;;  %v2610_v6 = vrot.slane %v2497_v54, 1  ;;  %v8932_v38 = vld [vmem:[#allocation27_spill] sm:$0xff]  ;;  %v8936_v30 = vld [vmem:[#allocation89_spill] sm:$0xff] }
 0x2a6   : > { %v8926_v48 = vrot.slane %v8925_v12, 1  ;;  %v8928_v33 = vrot.slane %v8927_v34, 1  ;;  %v2602_v42 = vrot.slane %v2492_v16, 1  ;;  %v2612_v62 = vrot.slane %v2498_v40, 1  ;;  %v8938_v34 = vld [vmem:[#allocation84_spill] sm:$0xff] }
 0x2a7   : > { %v2613_v31 = vrot.slane %v2499_v28, 1  ;;  %v8930_v7 = vrot.slane %v8929_v19, 1  ;;  %v8933_v14 = vrot.slane %v8932_v38, 1  ;;  %v8935_v59 = vrot.slane %v8934_v53, 1  ;;  %v8940_v28 = vld [vmem:[#allocation106_spill] sm:$0xff] }
 0x2a8   : > { %v2584_v43 = vsel %vm1471_vm6, %v8928_v33, %v8926_v48  ;;  %v8931_v25 = vmov %v8926_v48  ;;  %v8937_v58 = vrot.slane %v8936_v30, 1  ;;  %v8939_v45 = vrot.slane %v8938_v34, 1 }
 0x2a9   : > { %v2586_v44 = vsel %vm1471_vm6, %v8931_v25, %v8930_v7  ;;  %v2589_v54 = vsel %vm1471_vm6, %v8935_v59, %v8933_v14  ;;  %v2599_v40 = vsel %vm1471_vm6, %v2597_v3, %v2598_v56  ;;  %v8941_v48 = vrot.slane %v8940_v28, 1  ;;  %v8942_v25 = vld [vmem:[#allocation113_spill] sm:$0xff] }
 0x2aa   : > { %v2594_v16 = vsel %vm1471_vm6, %v8939_v45, %v8937_v58  ;;  %v2604_v7 = vsel %vm1471_vm6, %v2602_v42, %v2603_v26  ;;  %v8943_v38 = vrot.slane %v8942_v25, 1  ;;  %v2609_v14 = vsel %vm1471_vm6, %v2607_v2, %v2608_v32 }
 0x2ab   : > { %v2601_v12 = vsel %vm1471_vm6, %v2598_v56, %v8941_v48  ;;  %v2611_v30 = vsel %vm1471_vm6, %v2608_v32, %v2610_v6  ;;  %v2615_v33 = vrot.slane %v2500_v52, 1  ;;  %v2618_v19 = vrot.slane %v2502_v29, 1 }
 0x2ac   : > { %v2606_v53 = vsel %vm1471_vm6, %v2603_v26, %v8943_v38  ;;  %v2620_v59 = vrot.slane %v2503_v50, 1  ;;  %v2614_v45 = vsel %vm1471_vm6, %v2612_v62, %v2613_v31  ;;  %v2617_v58 = vrot.slane %v2501_v60, 1 }
 0x2ad   : > { %v2622_v3 = vrot.slane %v2504_v24, 1  ;;  %v2623_v34 = vrot.slane %v2505_v1, 1  ;;  %v2616_v56 = vsel %vm1471_vm6, %v2613_v31, %v2615_v33  ;;  %v2625_v28 = vrot.slane %v2506_v57, 1 }
 0x2ae   : > { %v2627_v42 = vrot.slane %v2507_v18, 1  ;;  %v2628_v48 = vrot.slane %v2508_v47, 1  ;;  %v2633_v25 = vrot.slane %v2511_v8, 1  ;;  %v2635_v63 = vrot.slane %v2512_v35, 1 }
 0x2af   : > { %v2637_v26 = vrot.slane %v2513_v51, 1  ;;  %v2638_v38 = vrot.slane %v2514_v27, 1  ;;  %v2619_v2 = vsel %vm1471_vm6, %v2617_v58, %v2618_v19  ;;  %v2621_v52 = vsel %vm1471_vm6, %v2618_v19, %v2620_v59  ;;  %v8945_v27 = vld [vmem:[#allocation60_spill] sm:$0xff] }
 0x2b0   : > { %v2630_v29 = vrot.slane %v2509_v37, 1  ;;  %v2640_v50 = vrot.slane %v2515_v9, 1  ;;  %v2632_v32 = vrot.slane %v2510_v4, 1  ;;  %v2642_v6 = vrot.slane %v2516_v22, 1  ;;  %v8944_v37 = vld [vmem:[#allocation63_spill] sm:$0xff]  ;;  %v8946_v22 = vld [vmem:[#allocation80_spill] sm:$0xff] }
 0x2b1   : > { %v2643_v60 = vrot.slane %v2517_v13, 1  ;;  %v2645_v24 = vrot.slane %v2518_v36, 1  ;;  %v2624_v1 = vsel %vm1471_vm6, %v2622_v3, %v2623_v34  ;;  %v2626_v57 = vsel %vm1471_vm6, %v2623_v34, %v2625_v28  ;;  %v8947_v36 = vld [vmem:[#allocation81_spill] sm:$0xff]  ;;  %v8948_v59 = vld [vmem:[#allocation100_spill] sm:$0xff]  ;;  %v8966_v28 = vld [vmem:[#allocation39_spill] sm:$0xff] }
 0x2b2   : > { %v2629_v18 = vsel %vm1471_vm6, %v2627_v42, %v2628_v48  ;;  %v2631_v47 = vsel %vm1471_vm6, %v2628_v48, %v2630_v29  ;;  %v2634_v8 = vsel %vm1471_vm6, %v2632_v32, %v2633_v25  ;;  %v2636_v35 = vsel %vm1471_vm6, %v2633_v25, %v2635_v63  ;;  %v8967_v48 = vld [vmem:[#allocation110_spill] sm:$0xff]  ;;  %v4109_v29 = vld [vmem:[#allocation2 + $0xd8] sm:$0xff]  ;;  %v4110_v32 = vld [vmem:[#allocation2 + $0xe0] sm:$0xff] }
 0x2b3   : > { %v2639_v51 = vsel %vm1471_vm6, %v2637_v26, %v2638_v38  ;;  %v7409_v4 = vadd.f32 %v8945_v27, %v8944_v37  ;;  %v2641_v9 = vsel %vm1471_vm6, %v2638_v38, %v2640_v50  ;;  %v7413_v13 = vadd.f32 %v2584_v43, %v8946_v22  ;;  %v4107_v26 = vld [vmem:[#allocation2 + $0xc0] sm:$0xff]  ;;  %v4116_v27 = vld [vmem:[#allocation2 + $0x118] sm:$0x3] }
 0x2b4   : > { %v7416_v62 = vadd.f32 %v2586_v44, %v8947_v36  ;;  %v7419_v31 = vadd.f32 %v2589_v54, %v7261_v61  ;;  %v2644_v33 = vsel %vm1471_vm6, %v2642_v6, %v2643_v60  ;;  %v2646_v63 = vsel %vm1471_vm6, %v2643_v60, %v2645_v24  ;;  %v4111_v60 = vld [vmem:[#allocation2 + $0xf0] sm:$0xff]  ;;  %v4117_v22 = vld [vmem:[#allocation2 + $0x120] sm:$0xff] }
 0x2b5   : > { %v7424_v19 = vadd.f32 %v2594_v16, %v7263_v49  ;;  %v7428_v58 = vadd.f32 %v8948_v59, %v7266_v11  ;;  %v7431_v43 = vadd.f32 %v2599_v40, %v7268_v20  ;;  %v7434_v44 = vadd.f32 %v2601_v12, %v7270_v41  ;;  %v4119_v59 = vld [vmem:[#allocation2 + $0x130] sm:$0x3] }
 0x2b6   : > { %v7437_v61 = vadd.f32 %v2604_v7, %v7272_v21  ;;  %v7440_v54 = vadd.f32 %v2606_v53, %v7274_v46  ;;  %v7443_v3 = vadd.f32 %v2609_v14, %v7276_v55  ;;  %v7446_v49 = vadd.f32 %v2611_v30, %v7278_v10  ;;  %v8950_v10 = vld [vmem:[#allocation53_spill] sm:$0xff] }
 0x2b7   : > { %v7449_v11 = vadd.f32 %v2614_v45, %v7280_v17  ;;  %v7452_v20 = vadd.f32 %v2616_v56, %v7282_v5  ;;  %v7455_v41 = vadd.f32 %v2619_v2, %v7284_v39  ;;  %v7458_v21 = vadd.f32 %v2621_v52, %v7286_v15  ;;  %v8952_v17 = vld [vmem:[#allocation85_spill] sm:$0xff]  ;;  %v8954_v5 = vld [vmem:[#allocation96_spill] sm:$0xff]  ;;  %v8956_v39 = vld [vmem:[#allocation42_spill] sm:$0xff] }
 0x2b8   : > { %v7461_v46 = vadd.f32 %v2624_v1, %v7288_v0  ;;  %v7464_v55 = vadd.f32 %v2626_v57, %v7290_v23  ;;  %v7467_v16 = vadd.f32 %v2629_v18, %v8950_v10  ;;  %v7470_v40 = vadd.f32 %v2631_v47, %v8952_v17  ;;  %v8958_v15 = vld [vmem:[#allocation119_spill] sm:$0xff]  ;;  %v8960_v0 = vld [vmem:[#allocation26_spill] sm:$0xff]  ;;  %v8964_v45 = vld [vmem:[#allocation88_spill] sm:$0xff] }
 0x2b9   : > { %v7473_v12 = vadd.f32 %v2634_v8, %v8954_v5  ;;  %v7476_v7 = vadd.f32 %v2636_v35, %v8956_v39  ;;  %v7479_v53 = vadd.f32 %v2639_v51, %v8958_v15  ;;  %v7482_v14 = vadd.f32 %v2641_v9, %v8960_v0  ;;  %v8962_v23 = vld [vmem:[#allocation15_spill] sm:$0xff]  ;;  %v4108_v2 = vld [vmem:[#allocation2 + $0xc8] sm:$0xff]  ;;  %v4113_v18 = vld [vmem:[#allocation2 + $0x100] sm:$0x3] }
 0x2ba   : > { %8949 = vst [vmem:[#allocation104_spill] sm:$0xff] %v7464_v55  ;;  %v7485_v30 = vadd.f32 %v2644_v33, %v8962_v23  ;;  %v7488_v34 = vadd.f32 %v2646_v63, %v8964_v45  ;;  %v4106_v56 = vld [vmem:[#allocation6 + $0x8] ss:$0 sm:$0xff]  ;;  %v4114_v8 = vld [vmem:[#allocation2 + $0x108] sm:$0xff]  ;;  %v4115_v51 = vld [vmem:[#allocation2 + $0x110] sm:$0xff] }
 0x2bb   : > { %8951 = vst [vmem:[#allocation111_spill] sm:$0xff] %v7467_v16  ;;  %v7491_v42 = vmul.f32 %v4106_v56, %v8966_v28  ;;  %v7494_v25 = vmul.f32 %v4106_v56, %v8967_v48  ;;  %v7496_v38 = vmul.f32 %v4107_v26, %v4106_v56  ;;  %v7498_v52 = vmul.f32 %v4108_v2, %v4106_v56  ;;  %v4112_v1 = vld [vmem:[#allocation2 + $0xf8] sm:$0xff]  ;;  %v4118_v33 = vld [vmem:[#allocation2 + $0x128] sm:$0xff]  ;;  %v4121_v39 = vld [vmem:[#allocation2 + $0x140] sm:$0xff] }
 0x2bc   : > { %8953 = vst [vmem:[#allocation103_spill] sm:$0xff] %v7470_v40  ;;  %v7500_v50 = vmul.f32 %v4109_v29, %v4106_v56  ;;  %v7502_v6 = vmul.f32 %v4110_v32, %v4106_v56  ;;  %v7504_v24 = vmul.f32 %v4111_v60, %v4106_v56  ;;  %v7506_v57 = vmul.f32 %v4112_v1, %v4106_v56  ;;  %v4120_v17 = vld [vmem:[#allocation2 + $0x138] sm:$0xff]  ;;  %v4122_v0 = vld [vmem:[#allocation2 + $0x148] sm:$0x3]  ;;  %v4123_v45 = vld [vmem:[#allocation2 + $0x150] sm:$0xff] }
 0x2bd   : > { %8955 = vst [vmem:[#allocation97_spill] sm:$0xff] %v7473_v12  ;;  %v7508_v47 = vmul.f32 %v4113_v18, %v4106_v56  ;;  %v7510_v35 = vmul.f32 %v4114_v8, %v4106_v56  ;;  %v7512_v37 = vmul.f32 %v4115_v51, %v4106_v56  ;;  %v7514_v9 = vmul.f32 %v4116_v27, %v4106_v56  ;;  %v4124_v48 = vld [vmem:[#allocation2 + $0x158] sm:$0xff]  ;;  %v4125_v2 = vld [vmem:[#allocation2 + $0x160] sm:$0x3]  ;;  %v4126_v32 = vld [vmem:[#allocation2 + $0x168] sm:$0xff] }
 0x2be   : > { %8957 = vst [vmem:[#allocation24_spill] sm:$0xff] %v7476_v7  ;;  %v7516_v36 = vmul.f32 %v4117_v22, %v4106_v56  ;;  %v7518_v63 = vmul.f32 %v4118_v33, %v4106_v56  ;;  %v7520_v10 = vmul.f32 %v4119_v59, %v4106_v56  ;;  %v7522_v5 = vmul.f32 %v4120_v17, %v4106_v56  ;;  %v4127_v1 = vld [vmem:[#allocation2 + $0x170] sm:$0xff]  ;;  %v4128_v8 = vld [vmem:[#allocation2 + $0x178] sm:$0x3]  ;;  %v8968_v27 = vld [vmem:[#allocation13_spill] sm:$0xff] }
 0x2bf   : > { %8959 = vst [vmem:[#allocation43_spill] sm:$0xff] %v7479_v53  ;;  %v7524_v15 = vmul.f32 %v4121_v39, %v4106_v56  ;;  %v7526_v23 = vmul.f32 %v4122_v0, %v4106_v56  ;;  %v7528_v28 = vmul.f32 %v4123_v45, %v4106_v56  ;;  %v7530_v26 = vmul.f32 %v4124_v48, %v4106_v56  ;;  %v8969_v33 = vld [vmem:[#allocation82_spill] sm:$0xff]  ;;  %v8970_v17 = vld [vmem:[#allocation51_spill] sm:$0xff]  ;;  %v8971_v0 = vld [vmem:[#allocation41_spill] sm:$0xff] }
 0x2c0   : > { %8961 = vst [vmem:[#allocation70_spill] sm:$0xff] %v7482_v14  ;;  %v7532_v29 = vmul.f32 %v4125_v2, %v4106_v56  ;;  %v7534_v60 = vmul.f32 %v4126_v32, %v4106_v56  ;;  %v2752_v18 = vmul.f32 %v4127_v1, %v4106_v56  ;;  %v2753_v51 = vmul.f32 %v4128_v8, %v4106_v56  ;;  %v8972_v8 = vld [vmem:[#allocation121_spill] sm:$0xff]  ;;  %v8975_v7 = vld [vmem:[#allocation75_spill] sm:$0xff]  ;;  %v8977_v12 = vld [vmem:[#allocation74_spill] sm:$0xff] }
 0x2c1   : > { %8963 = vst [vmem:[#allocation69_spill] sm:$0xff] %v7485_v30  ;;  %v2754_v22 = vmul.f32 %v4106_v56, %v8968_v27  ;;  %v2755_v59 = vmul.f32 %v4106_v56, %v8969_v33  ;;  %v2756_v39 = vmul.f32 %v4106_v56, %v8970_v17  ;;  %v7540_v45 = vmul.f32 %v4106_v56, %v8971_v0  ;;  %v8973_v17 = vld [vmem:[#allocation72_spill] sm:$0xff]  ;;  %v8974_v0 = vld [vmem:[#allocation78_spill] sm:$0xff] }
 0x2c2   : > { %8965 = vst [vmem:[#allocation94_spill] sm:$0xff] %v7488_v34  ;;  %v2833_v48 = vrot.slane %v7491_v42, 2  ;;  %v2834_v2 = vrot.slane %v7494_v25, 2  ;;  %v2838_v32 = vrot.slane %v7496_v38, 2  ;;  %v2839_v34 = vrot.slane %v7498_v52, 2  ;;  %v8979_v40 = vld [vmem:[#allocation54_spill] sm:$0xff] }
 0x2c3   : > { %v2844_v1 = vrot.slane %v7502_v6, 2  ;;  %v2846_v30 = vrot.slane %v8972_v8, 2  ;;  %v2848_v27 = vrot.slane %v7504_v24, 2  ;;  %v2849_v33 = vrot.slane %v7506_v57, 2  ;;  %v8984_v55 = vld [vmem:[#allocation68_spill] sm:$0xff] }
 0x2c4   : > { %v2758_v14 = vmul.f32 %v4106_v56, %v8973_v17  ;;  %v2759_v53 = vmul.f32 %v4106_v56, %v8974_v0  ;;  %v8976_v42 = vrot.slane %v8975_v7, 2  ;;  %v8978_v25 = vrot.slane %v8977_v12, 2  ;;  %v8982_v0 = vld [vmem:[#allocation31_spill] sm:$0xff] }
 0x2c5   : > { %v8980_v52 = vrot.slane %v8979_v40, 2  ;;  %v2843_v24 = vrot.slane %v7500_v50, 2  ;;  %v2851_v57 = vrot.slane %v7508_v47, 2  ;;  %v2853_v17 = vrot.slane %v7510_v35, 2 }
 0x2c6   : > { %v2825_v38 = vsel %vm1713_vm7, %v8978_v25, %v8976_v42  ;;  %v8981_v6 = vmov %v8976_v42  ;;  %v2854_v56 = vrot.slane %v7512_v37, 2  ;;  %v8983_v16 = vrot.slane %v8982_v0, 2  ;;  %v8986_v25 = vld [vmem:[#allocation92_spill] sm:$0xff] }
 0x2c7   : > { %v2827_v8 = vsel %vm1713_vm7, %v8981_v6, %v8980_v52  ;;  %v8985_v12 = vrot.slane %v8984_v55, 2  ;;  %v2835_v40 = vsel %vm1713_vm7, %v2833_v48, %v2834_v2  ;;  %v8987_v7 = vrot.slane %v8986_v25, 2  ;;  %v8988_v6 = vld [vmem:[#allocation107_spill] sm:$0xff] }
 0x2c8   : > { %v2840_v50 = vsel %vm1713_vm7, %v2838_v32, %v2839_v34  ;;  %v8989_v47 = vrot.slane %v8988_v6, 2  ;;  %v2845_v37 = vsel %vm1713_vm7, %v2843_v24, %v2844_v1  ;;  %v2847_v0 = vsel %vm1713_vm7, %v2844_v1, %v2846_v30 }
 0x2c9   : > { %v2830_v42 = vsel %vm1713_vm7, %v8985_v12, %v8983_v16  ;;  %v2837_v52 = vsel %vm1713_vm7, %v2834_v2, %v8987_v7  ;;  %v2850_v55 = vsel %vm1713_vm7, %v2848_v27, %v2849_v33  ;;  %v2856_v16 = vrot.slane %v7514_v9, 2 }
 0x2ca   : > { %v2842_v35 = vsel %vm1713_vm7, %v2839_v34, %v8989_v47  ;;  %v2858_v48 = vrot.slane %v7516_v36, 2  ;;  %v2859_v12 = vrot.slane %v7518_v63, 2  ;;  %v2861_v2 = vrot.slane %v7520_v10, 2 }
 0x2cb   : > { %v2852_v32 = vsel %vm1713_vm7, %v2849_v33, %v2851_v57  ;;  %v2855_v25 = vsel %vm1713_vm7, %v2853_v17, %v2854_v56  ;;  %v2863_v34 = vrot.slane %v7522_v5, 2  ;;  %v2864_v24 = vrot.slane %v7524_v15, 2 }
 0x2cc   : > { %v2857_v30 = vsel %vm1713_vm7, %v2854_v56, %v2856_v16  ;;  %v2866_v1 = vrot.slane %v7526_v23, 2  ;;  %v2868_v9 = vrot.slane %v7528_v28, 2  ;;  %v2869_v36 = vrot.slane %v7530_v26, 2 }
 0x2cd   : > { %v2874_v27 = vrot.slane %v2752_v18, 2  ;;  %v2876_v63 = vrot.slane %v2753_v51, 2  ;;  %v2878_v7 = vrot.slane %v2754_v22, 2  ;;  %v2879_v10 = vrot.slane %v2755_v59, 2 }
 0x2ce   : > { %v2860_v33 = vsel %vm1713_vm7, %v2858_v48, %v2859_v12  ;;  %v2862_v57 = vsel %vm1713_vm7, %v2859_v12, %v2861_v2  ;;  %v2871_v5 = vrot.slane %v7532_v29, 2  ;;  %v2881_v17 = vrot.slane %v2756_v39, 2  ;;  %v8990_v39 = vld [vmem:[#allocation64_spill] sm:$0xff] }
 0x2cf   : > { %v2873_v15 = vrot.slane %v7534_v60, 2  ;;  %v2883_v56 = vrot.slane %v7540_v45, 2  ;;  %v2884_v23 = vrot.slane %v2758_v14, 2  ;;  %v2886_v6 = vrot.slane %v2759_v53, 2  ;;  %v8991_v60 = vld [vmem:[#allocation61_spill] sm:$0xff]  ;;  %v8992_v14 = vld [vmem:[#allocation62_spill] sm:$0xff] }
 0x2d0   : > { %v2865_v28 = vsel %vm1713_vm7, %v2863_v34, %v2864_v24  ;;  %v2867_v26 = vsel %vm1713_vm7, %v2864_v24, %v2866_v1  ;;  %v2870_v18 = vsel %vm1713_vm7, %v2868_v9, %v2869_v36  ;;  %v2872_v51 = vsel %vm1713_vm7, %v2869_v36, %v2871_v5 }
 0x2d1   : > { %v2875_v22 = vsel %vm1713_vm7, %v2873_v15, %v2874_v27  ;;  %v2877_v59 = vsel %vm1713_vm7, %v2874_v27, %v2876_v63  ;;  %v2880_v29 = vsel %vm1713_vm7, %v2878_v7, %v2879_v10  ;;  %v7608_v47 = vadd.f32 %v8991_v60, %v8990_v39  ;;  %v9016_v63 = vld [vmem:[#allocation56_spill] sm:$0xff]  ;;  %v9023_v15 = vld [vmem:[#allocation109_spill] sm:$0xff] }
 0x2d2   : > { %v2882_v53 = vsel %vm1713_vm7, %v2879_v10, %v2881_v17  ;;  %v7613_v45 = vadd.f32 %v8992_v14, %v7409_v4  ;;  %v7616_v16 = vadd.f32 %v2825_v38, %v7413_v13  ;;  %v7619_v48 = vadd.f32 %v2827_v8, %v7416_v62  ;;  %v9018_v10 = vld [vmem:[#allocation14_spill] sm:$0xff] }
 0x2d3   : > { %v2885_v12 = vsel %vm1713_vm7, %v2883_v56, %v2884_v23  ;;  %v2887_v2 = vsel %vm1713_vm7, %v2884_v23, %v2886_v6  ;;  %v7624_v34 = vadd.f32 %v2830_v42, %v7419_v31  ;;  %v7627_v24 = vadd.f32 %v2835_v40, %v7424_v19 }
 0x2d4   : > { %v7630_v1 = vadd.f32 %v2837_v52, %v7428_v58  ;;  %v7633_v4 = vadd.f32 %v2840_v50, %v7431_v43  ;;  %v7636_v13 = vadd.f32 %v2842_v35, %v7434_v44  ;;  %v7639_v62 = vadd.f32 %v2845_v37, %v7437_v61 }
 0x2d5   : > { %v7642_v38 = vadd.f32 %v2847_v0, %v7440_v54  ;;  %v7645_v31 = vadd.f32 %v2850_v55, %v7443_v3  ;;  %v7648_v19 = vadd.f32 %v2852_v32, %v7446_v49  ;;  %v7651_v58 = vadd.f32 %v2855_v25, %v7449_v11  ;;  %v8994_v3 = vld [vmem:[#allocation104_spill] sm:$0xff]  ;;  %v8996_v49 = vld [vmem:[#allocation111_spill] sm:$0xff]  ;;  %v9008_v0 = vld [vmem:[#allocation69_spill] sm:$0xff] }
 0x2d6   : > { %v7654_v43 = vadd.f32 %v2857_v30, %v7452_v20  ;;  %v7657_v44 = vadd.f32 %v2860_v33, %v7455_v41  ;;  %v7660_v61 = vadd.f32 %v2862_v57, %v7458_v21  ;;  %v7663_v54 = vadd.f32 %v2865_v28, %v7461_v46  ;;  %v8998_v11 = vld [vmem:[#allocation103_spill] sm:$0xff]  ;;  %v9000_v20 = vld [vmem:[#allocation97_spill] sm:$0xff]  ;;  %v9002_v41 = vld [vmem:[#allocation24_spill] sm:$0xff] }
 0x2d7   : > { %v7666_v8 = vadd.f32 %v2867_v26, %v8994_v3  ;;  %v7669_v42 = vadd.f32 %v2870_v18, %v8996_v49  ;;  %v7672_v40 = vadd.f32 %v2872_v51, %v8998_v11  ;;  %v7675_v52 = vadd.f32 %v2875_v22, %v9000_v20  ;;  %v9004_v21 = vld [vmem:[#allocation43_spill] sm:$0xff]  ;;  %v9006_v46 = vld [vmem:[#allocation70_spill] sm:$0xff]  ;;  %v9012_v30 = vld [vmem:[#allocation65_spill] sm:$0xff] }
 0x2d8   : > { %8993 = vst [vmem:[#allocation52_spill] sm:$0xff] %v7663_v54  ;;  %v7678_v50 = vadd.f32 %v2877_v59, %v9002_v41  ;;  %v7681_v35 = vadd.f32 %v2880_v29, %v9004_v21  ;;  %v7684_v37 = vadd.f32 %v2882_v53, %v9006_v46  ;;  %v7687_v55 = vadd.f32 %v2885_v12, %v9008_v0  ;;  %v9010_v32 = vld [vmem:[#allocation47_spill] sm:$0xff]  ;;  %v9035_v3 = vld [vmem:[#allocation94_spill] sm:$0xff] }
 0x2d9   : > { %8995 = vst [vmem:[#allocation17_spill] sm:$0xff] %v7666_v8  ;;  %v7690_v25 = vmul.f32 0.5, %v9010_v32  ;;  %v7693_v9 = vmul.f32 0.5, %v9012_v30  ;;  %v7696_v36 = vmul.f32 0.5, %v7608_v47  ;;  %v7699_v27 = vmul.f32 0.5, %v7613_v45 }
 0x2da   : > { %8997 = vst [vmem:[#allocation83_spill] sm:$0xff] %v7669_v42  ;;  %v7702_v7 = vmul.f32 0.5, %v9016_v63  ;;  %v7705_v33 = vmul.f32 0.5, %v9018_v10  ;;  %v7708_v57 = vmul.f32 0.5, %v7616_v16  ;;  %v7711_v5 = vmul.f32 0.5, %v7619_v48 }
 0x2db   : > { %8999 = vst [vmem:[#allocation105_spill] sm:$0xff] %v7672_v40  ;;  %v7714_v17 = vmul.f32 0.5, %v7624_v34  ;;  %v7717_v56 = vmul.f32 0.5, %v9023_v15  ;;  %v7720_v23 = vmul.f32 0.5, %v7627_v24  ;;  %v7723_v6 = vmul.f32 0.5, %v7630_v1 }
 0x2dc   : > { %9001 = vst [vmem:[#allocation112_spill] sm:$0xff] %v7675_v52  ;;  %v7726_v28 = vmul.f32 0.5, %v7633_v4  ;;  %v7729_v26 = vmul.f32 0.5, %v7636_v13  ;;  %v7732_v18 = vmul.f32 0.5, %v7639_v62  ;;  %v2984_v51 = vmul.f32 0.044715, %v9010_v32 }
 0x2dd   : > { %9003 = vst [vmem:[#allocation79_spill] sm:$0xff] %v7678_v50  ;;  %v7736_v22 = vmul.f32 0.5, %v7642_v38  ;;  %v7739_v59 = vmul.f32 0.5, %v7645_v31  ;;  %v7742_v29 = vmul.f32 0.5, %v7648_v19  ;;  %v2985_v39 = vmul.f32 0.044715, %v9012_v30 }
 0x2de   : > { %9005 = vst [vmem:[#allocation98_spill] sm:$0xff] %v7681_v35  ;;  %v7746_v60 = vmul.f32 0.5, %v7651_v58  ;;  %v7749_v53 = vmul.f32 0.5, %v7654_v43  ;;  %v2986_v14 = vmul.f32 0.044715, %v7608_v47  ;;  %v7754_v49 = vadd.f32 %v2887_v2, %v9035_v3 }
 0x2df   : > { %9007 = vst [vmem:[#allocation87_spill] sm:$0xff] %v7684_v37  ;;  %v2987_v12 = vmul.f32 0.044715, %v7613_v45  ;;  %v2988_v11 = vmul.f32 0.044715, %v9016_v63  ;;  %v3017_v3 = vmul.f32 %v2985_v39, %v9012_v30  ;;  %vm3357_vm7 = vcmask 1043456  }
 0x2e0   : > { %9009 = vst [vmem:[#allocation77_spill] sm:$0xff] %v7687_v55  ;;  %v2989_v20 = vmul.f32 0.044715, %v9018_v10  ;;  %v2990_v41 = vmul.f32 0.044715, %v7616_v16 }
 0x2e1   : > { %9011 = vst [vmem:[#allocation118_spill] sm:$0xff] %v7690_v25  ;;  %v2991_v21 = vmul.f32 0.044715, %v7619_v48  ;;  %v2992_v46 = vmul.f32 0.044715, %v7624_v34 }
 0x2e2   : > { %9013 = vst [vmem:[#allocation46_spill] sm:$0xff] %v7693_v9  ;;  %v2993_v0 = vmul.f32 0.044715, %v9023_v15  ;;  %v2996_v2 = vmul.f32 0.044715, %v7633_v4  ;;  %v3022_v9 = vmul.f32 %v2990_v41, %v7616_v16 }
 0x2e3   : > { %9014 = vst [vmem:[#allocation101_spill] sm:$0xff] %v7696_v36  ;;  %v3004_v39 = vmul.f32 0.044715, %v7657_v44  ;;  %v3011_v36 = vmul.f32 0.044715, %v7678_v50  ;;  %v3024_v41 = vmul.f32 %v2992_v46, %v7624_v34 }
 0x2e4   : > { %9015 = vst [vmem:[#allocation115_spill] sm:$0xff] %v7699_v27  ;;  %v3009_v27 = vmul.f32 0.044715, %v7672_v40  ;;  %v3012_v25 = vmul.f32 0.044715, %v7681_v35  ;;  %v3025_v35 = vmul.f32 %v2993_v0, %v9023_v15  ;;  %v3054_v0 = vmul.f32 %v3022_v9, %v7616_v16 }
 0x2e5   : > { %9017 = vst [vmem:[#allocation114_spill] sm:$0xff] %v7702_v7  ;;  %v3021_v7 = vmul.f32 %v2989_v20, %v9018_v10  ;;  %v3049_v20 = vmul.f32 %v3017_v3, %v9012_v30  ;;  %v3015_v50 = vmul.f32 0.044715, %v7754_v49 }
 0x2e6   : > { %9019 = vst [vmem:[#allocation120_spill] sm:$0xff] %v7705_v33  ;;  %v3008_v33 = vmul.f32 0.044715, %v7669_v42  ;;  %v3014_v42 = vmul.f32 0.044715, %v7687_v55  ;;  %v3028_v55 = vmul.f32 %v2996_v2, %v7633_v4 }
 0x2e7   : > { %9020 = vst [vmem:[#allocation116_spill] sm:$0xff] %v7708_v57  ;;  %v3006_v57 = vmul.f32 0.044715, %v7663_v54  ;;  %v3023_v54 = vmul.f32 %v2991_v21, %v7619_v48  ;;  %v3053_v3 = vmul.f32 %v3021_v7, %v9018_v10 }
 0x2e8   : > { %9021 = vst [vmem:[#allocation117_spill] sm:$0xff] %v7711_v5  ;;  %v3020_v5 = vmul.f32 %v2988_v11, %v9016_v63  ;;  %v3013_v11 = vmul.f32 0.044715, %v7684_v37 }
 0x2e9   : > { %9022 = vst [vmem:[#allocation123_spill] sm:$0xff] %v7714_v17  ;;  %v3005_v17 = vmul.f32 0.044715, %v7660_v61 }
 0x2ea   : > { %9024 = vst [vmem:[#allocation66_spill] sm:$0xff] %v7717_v56  ;;  %v3003_v56 = vmul.f32 0.044715, %v7654_v43  ;;  %v3052_v37 = vmul.f32 %v3020_v5, %v9016_v63  ;;  %v3081_v5 = vadd.f32 %v3049_v20, %v9012_v30  ;;  %v3056_v30 = vmul.f32 %v3024_v41, %v7624_v34  ;;  %v9040_v41 = vld [vmem:[#allocation105_spill] sm:$0xff] }
 0x2eb   : > { %9025 = vst [vmem:[#allocation108_spill] sm:$0xff] %v7720_v23  ;;  %v3019_v23 = vmul.f32 %v2987_v12, %v7613_v45  ;;  %v3010_v12 = vmul.f32 0.044715, %v7675_v52 }
 0x2ec   : > { %9026 = vst [vmem:[#allocation44_spill] sm:$0xff] %v7723_v6  ;;  %v3002_v6 = vmul.f32 0.044715, %v7651_v58 }
 0x2ed   : > { %9027 = vst [vmem:[#allocation102_spill] sm:$0xff] %v7726_v28  ;;  %v3000_v28 = vmul.f32 0.044715, %v7645_v31  ;;  %v3051_v52 = vmul.f32 %v3019_v23, %v7613_v45 }
 0x2ee   : > { %9028 = vst [vmem:[#allocation124_spill] sm:$0xff] %v7729_v26  ;;  %v3018_v26 = vmul.f32 %v2986_v14, %v7608_v47  ;;  %v3007_v14 = vmul.f32 0.044715, %v7666_v8 }
 0x2ef   : > { %9029 = vst [vmem:[#allocation128_spill] sm:$0xff] %v7732_v18  ;;  %v2999_v18 = vmul.f32 0.044715, %v7642_v38  ;;  %v3032_v2 = vmul.f32 %v3000_v28, %v7645_v31  ;;  %v9038_v28 = vld [vmem:[#allocation17_spill] sm:$0xff] }
 0x2f0   : > { %9030 = vst [vmem:[#allocation122_spill] sm:$0xff] %v7736_v22  ;;  %v2998_v22 = vmul.f32 0.044715, %v7639_v62  ;;  %v3050_v40 = vmul.f32 %v3018_v26, %v7608_v47 }
 0x2f1   : > { %9031 = vst [vmem:[#allocation127_spill] sm:$0xff] %v7739_v59  ;;  %v2997_v59 = vmul.f32 0.044715, %v7636_v13 }
 0x2f2   : > { %9032 = vst [vmem:[#allocation129_spill] sm:$0xff] %v7742_v29  ;;  %v2995_v29 = vmul.f32 0.044715, %v7630_v1  ;;  %v3030_v23 = vmul.f32 %v2998_v22, %v7639_v62  ;;  %v3084_v22 = vadd.f32 %v3052_v37, %v9016_v63  ;;  %v3086_v37 = vadd.f32 %v3054_v0, %v7616_v16  ;;  %v9041_v16 = vld [vmem:[#allocation112_spill] sm:$0xff]  ;;  %v9042_v0 = vld [vmem:[#allocation79_spill] sm:$0xff] }
 0x2f3   : > { %9033 = vst [vmem:[#allocation125_spill] sm:$0xff] %v7746_v60  ;;  %v2994_v60 = vmul.f32 0.044715, %v7627_v24  ;;  %v3029_v26 = vmul.f32 %v2997_v59, %v7636_v13  ;;  %v3034_v59 = vmul.f32 %v3002_v6, %v7651_v58  ;;  %v3113_v63 = vmul.f32 0.7978846, %v3081_v5 }
 0x2f4   : > { %9034 = vst [vmem:[#allocation126_spill] sm:$0xff] %v7749_v53  ;;  %v3016_v53 = vmul.f32 %v2984_v51, %v9010_v32  ;;  %v3001_v51 = vmul.f32 0.044715, %v7648_v19  ;;  %v3088_v5 = vadd.f32 %v3056_v30, %v7624_v34 }
 0x2f5   : > { %9036 = vst [vmem:[#allocation130_spill] sm:$0xff] %v7754_v49  ;;  %v3026_v21 = vmul.f32 %v2994_v60, %v7627_v24  ;;  %v3031_v49 = vmul.f32 %v2999_v18, %v7642_v38  ;;  %v3082_v60 = vadd.f32 %v3050_v40, %v7608_v47  ;;  %v7816_v18 = vmul.f32 %v3003_v56, %v7654_v43  ;;  %v9037_v40 = vld [vmem:[#allocation52_spill] sm:$0xff] }
 0x2f6   : > { %v3048_v8 = vmul.f32 %v3016_v53, %v9010_v32  ;;  %v3027_v53 = vmul.f32 %v2995_v29, %v7630_v1  ;;  %v3083_v29 = vadd.f32 %v3051_v52, %v7613_v45  ;;  %v3033_v7 = vmul.f32 %v3001_v51, %v7648_v19 }
 0x2f7   : > { %v3085_v47 = vadd.f32 %v3053_v3, %v9018_v10  ;;  %v7824_v45 = vmul.f32 %v3005_v17, %v7660_v61  ;;  %v7827_v52 = vmul.f32 %v3006_v57, %v9037_v40  ;;  %v3114_v56 = vmul.f32 0.7978846, %v3082_v60 }
 0x2f8   : > { %v3080_v46 = vadd.f32 %v3048_v8, %v9010_v32  ;;  %v7819_v8 = vmul.f32 %v3004_v39, %v7657_v44  ;;  %v3055_v32 = vmul.f32 %v3023_v54, %v7619_v48  ;;  %v3115_v6 = vmul.f32 0.7978846, %v3083_v29  ;;  %v9039_v54 = vld [vmem:[#allocation83_spill] sm:$0xff] }
 0x2f9   : > { %v7832_v51 = vmul.f32 %v3007_v14, %v9038_v28  ;;  %v7835_v39 = vmul.f32 %v3008_v33, %v9039_v54  ;;  %v3116_v10 = vmul.f32 0.7978846, %v3084_v22  ;;  %v3057_v17 = vmul.f32 %v3025_v35, %v9023_v15  ;;  %v9043_v35 = vld [vmem:[#allocation98_spill] sm:$0xff] }
 0x2fa   : > { %v3112_v9 = vmul.f32 0.7978846, %v3080_v46  ;;  %v3087_v57 = vadd.f32 %v3055_v32, %v7619_v48  ;;  %v3117_v20 = vmul.f32 0.7978846, %v3085_v47  ;;  %v7840_v3 = vmul.f32 %v3009_v27, %v9040_v41  ;;  %v9045_v47 = vld [vmem:[#allocation77_spill] sm:$0xff] }
 0x2fb   : > { %v7843_v46 = vmul.f32 %v3010_v12, %v9041_v16  ;;  %v7846_v14 = vmul.f32 %v3011_v36, %v9042_v0  ;;  %v3058_v33 = vmul.f32 %v3026_v21, %v7627_v24  ;;  %v3118_v60 = vmul.f32 0.7978846, %v3086_v37  ;;  %v9044_v12 = vld [vmem:[#allocation87_spill] sm:$0xff] }
 0x2fc   : > { %4031 = vtanh.f32 %v3112_v9  ;;  %v7851_v48 = vmul.f32 %v3012_v25, %v9043_v35  ;;  %v3059_v29 = vmul.f32 %v3027_v53, %v7630_v1  ;;  %v3060_v27 = vmul.f32 %v3028_v55, %v7633_v4  ;;  %v9046_v30 = vld [vmem:[#allocation130_spill] sm:$0xff] }
 0x2fd   : > { %4033 = vtanh.f32 %v3113_v63  ;;  %v7856_v22 = vmul.f32 %v3013_v11, %v9044_v12  ;;  %v3089_v36 = vadd.f32 %v3057_v17, %v9023_v15  ;;  %v3119_v32 = vmul.f32 0.7978846, %v3087_v57 }
 0x2fe   : > { %4035 = vtanh.f32 %v3114_v56  ;;  %v7860_v34 = vmul.f32 %v3014_v42, %v9045_v47  ;;  %v7863_v9 = vmul.f32 %v3015_v50, %v9046_v30  ;;  %v3061_v25 = vmul.f32 %v3029_v26, %v7636_v13 }
 0x2ff   : > { %4037 = vtanh.f32 %v3115_v6  ;;  %v3062_v53 = vmul.f32 %v3030_v23, %v7639_v62  ;;  %v3063_v37 = vmul.f32 %v3031_v49, %v7642_v38  ;;  %v3090_v11 = vadd.f32 %v3058_v33, %v7627_v24 }
 0x300   : > { %4039 = vtanh.f32 %v3116_v10  ;;  %v3120_v63 = vmul.f32 0.7978846, %v3088_v5  ;;  %v3064_v56 = vmul.f32 %v3032_v2, %v7645_v31  ;;  %v3065_v42 = vmul.f32 %v3033_v7, %v7648_v19  ;;  %v9047_v7 = vld [vmem:[#allocation118_spill] sm:$0xff] }
 0x301   : > { %4041 = vtanh.f32 %v3117_v20  ;;  %v3091_v6 = vadd.f32 %v3059_v29, %v7630_v1  ;;  %v3092_v50 = vadd.f32 %v3060_v27, %v7633_v4  ;;  %v3121_v26 = vmul.f32 0.7978846, %v3089_v36  ;;  %v9048_v1 = vld [vmem:[#allocation46_spill] sm:$0xff] }
 0x302   : > { %v4032_v21 = vpop.eup %4031  ;;  %4043 = vtanh.f32 %v3118_v60  ;;  %v3066_v49 = vmul.f32 %v3034_v59, %v7651_v58  ;;  %v3093_v24 = vadd.f32 %v3061_v25, %v7636_v13  ;;  %v3122_v2 = vmul.f32 0.7978846, %v3090_v11 }
 0x303   : > { %v4034_v55 = vpop.eup %4033  ;;  %4045 = vtanh.f32 %v3119_v32  ;;  %v3176_v23 = vadd.f32 1.0, %v4032_v21  ;;  %v3067_v29 = vmul.f32 %v7816_v18, %v7654_v43  ;;  %v3123_v27 = vmul.f32 0.7978846, %v3091_v6  ;;  %v9049_v32 = vld [vmem:[#allocation101_spill] sm:$0xff] }
 0x304   : > { %v4036_v15 = vpop.eup %4035  ;;  %v3177_v17 = vadd.f32 1.0, %v4034_v55  ;;  %4047 = vtanh.f32 %v3120_v63  ;;  %v3094_v21 = vadd.f32 %v3062_v53, %v7639_v62  ;;  %v3124_v25 = vmul.f32 0.7978846, %v3092_v50  ;;  %v9051_v50 = vld [vmem:[#allocation114_spill] sm:$0xff] }
 0x305   : > { %v4038_v10 = vpop.eup %4037  ;;  %v3178_v20 = vadd.f32 1.0, %v4036_v15  ;;  %v7876_v60 = vmul.f32 %v3176_v23, %v9047_v7  ;;  %4049 = vtanh.f32 %v3121_v26  ;;  %v3068_v11 = vmul.f32 %v7819_v8, %v7657_v44  ;;  %v9050_v15 = vld [vmem:[#allocation115_spill] sm:$0xff] }
 0x306   : > { %v4040_v57 = vpop.eup %4039  ;;  %v3179_v33 = vadd.f32 1.0, %v4038_v10  ;;  %v7879_v4 = vmul.f32 %v3177_v17, %v9048_v1  ;;  %v3095_v23 = vadd.f32 %v3063_v37, %v7642_v38  ;;  %v3125_v17 = vmul.f32 0.7978846, %v3093_v24  ;;  %v9052_v24 = vld [vmem:[#allocation120_spill] sm:$0xff] }
 0x307   : > { %v4042_v5 = vpop.eup %4041  ;;  %v3180_v36 = vadd.f32 1.0, %v4040_v57  ;;  %v7884_v59 = vmul.f32 %v3178_v20, %v9049_v32  ;;  %v3240_v55 = vsel %vm381_vm0, %v7876_v60, 0.0  ;;  %4051 = vtanh.f32 %v3122_v2 }
 0x308   : > { %v4044_v13 = vpop.eup %4043  ;;  %v3181_v63 = vadd.f32 1.0, %v4042_v5  ;;  %v7892_v10 = vmul.f32 %v3179_v33, %v9050_v15  ;;  %v3241_v18 = vsel %vm381_vm0, %v7879_v4, 0.0  ;;  %4053 = vtanh.f32 %v3123_v27 }
 0x309   : > { %v4046_v6 = vpop.eup %4045  ;;  %v3242_v62 = vadd.f32 %v3241_v18, %v3240_v55  ;;  %v3182_v53 = vadd.f32 1.0, %v4044_v13  ;;  %v7898_v26 = vmul.f32 %v3180_v36, %v9051_v50  ;;  %v3243_v8 = vsel %vm381_vm0, %v7884_v59, 0.0  ;;  %v9053_v13 = vld [vmem:[#allocation116_spill] sm:$0xff] }
 0x30a   : > { %v4048_v57 = vpop.eup %4047  ;;  %v3096_v20 = vadd.f32 %v3064_v56, %v7645_v31  ;;  %v3126_v33 = vmul.f32 0.7978846, %v3094_v21  ;;  %4055 = vtanh.f32 %v3124_v25  ;;  %v3069_v38 = vmul.f32 %v7824_v45, %v7660_v61 }
 0x30b   : > { %v3244_v5 = vadd.f32 %v3243_v8, %v3242_v62  ;;  %v3183_v37 = vadd.f32 1.0, %v4046_v6  ;;  %v7906_v2 = vmul.f32 %v3181_v63, %v9052_v24  ;;  %v3245_v7 = vsel %vm381_vm0, %v7892_v10, 0.0  ;;  %v4050_v1 = vpop.eup %4049  ;;  %v9055_v8 = vld [vmem:[#allocation123_spill] sm:$0xff] }
 0x30c   : > { %v3070_v27 = vmul.f32 %v7827_v52, %v9037_v40  ;;  %v3097_v36 = vadd.f32 %v3065_v42, %v7648_v19  ;;  %v3127_v31 = vmul.f32 0.7978846, %v3095_v23  ;;  %4057 = vtanh.f32 %v3125_v17  ;;  %v9054_v42 = vld [vmem:[#allocation117_spill] sm:$0xff] }
 0x30d   : > { %v3246_v56 = vadd.f32 %v3245_v7, %v3244_v5  ;;  %v3184_v32 = vadd.f32 1.0, %v4048_v57  ;;  %v7914_v21 = vmul.f32 %v3182_v53, %v9053_v13  ;;  %v3247_v45 = vsel %vm381_vm0, %v7898_v26, 0.0  ;;  %v4052_v25 = vpop.eup %4051  ;;  %v9056_v7 = vld [vmem:[#allocation66_spill] sm:$0xff]  ;;  %v9057_v13 = vld [vmem:[#allocation108_spill] sm:$0xff] }
 0x30e   : > { %v3098_v55 = vadd.f32 %v3066_v49, %v7651_v58  ;;  %v3128_v63 = vmul.f32 0.7978846, %v3096_v20  ;;  %4059 = vtanh.f32 %v3126_v33  ;;  %v4054_v18 = vpop.eup %4053  ;;  %v3071_v19 = vmul.f32 %v7832_v51, %v9038_v28 }
 0x30f   : > { %v3248_v15 = vadd.f32 %v3247_v45, %v3246_v56  ;;  %v3185_v52 = vadd.f32 1.0, %v4050_v1  ;;  %v7922_v6 = vmul.f32 %v3183_v37, %v9054_v42  ;;  %v3249_v23 = vsel %vm381_vm0, %v7906_v2, 0.0 }
 0x310   : > { %v4056_v17 = vpop.eup %4055  ;;  %v3072_v62 = vmul.f32 %v7835_v39, %v9039_v54  ;;  %v3099_v58 = vadd.f32 %v3067_v29, %v7654_v43  ;;  %v3129_v49 = vmul.f32 0.7978846, %v3097_v36  ;;  %4061 = vtanh.f32 %v3127_v31 }
 0x311   : > { %v3250_v53 = vadd.f32 %v3249_v23, %v3248_v15  ;;  %v3186_v50 = vadd.f32 1.0, %v4052_v25  ;;  %v7930_v57 = vmul.f32 %v3184_v32, %v9055_v8  ;;  %v3251_v51 = vsel %vm381_vm0, %v7914_v21, 0.0 }
 0x312   : > { %v3100_v20 = vadd.f32 %v3068_v11, %v7657_v44  ;;  %v3130_v33 = vmul.f32 0.7978846, %v3098_v55  ;;  %4063 = vtanh.f32 %v3128_v63  ;;  %v4058_v37 = vpop.eup %4057  ;;  %v3187_v24 = vadd.f32 1.0, %v4054_v18 }
 0x313   : > { %v3252_v5 = vadd.f32 %v3251_v51, %v3250_v53  ;;  %v3188_v39 = vadd.f32 1.0, %v4056_v17  ;;  %v7936_v43 = vmul.f32 %v3185_v52, %v9056_v7  ;;  %v3253_v29 = vsel %vm381_vm0, %v7922_v6, 0.0 }
 0x314   : > { %v4060_v1 = vpop.eup %4059  ;;  %v3073_v36 = vmul.f32 %v7840_v3, %v9040_v41  ;;  %v3101_v31 = vadd.f32 %v3069_v38, %v7660_v61  ;;  %v3102_v11 = vadd.f32 %v3070_v27, %v9037_v40  ;;  %v3131_v32 = vmul.f32 0.7978846, %v3099_v58  ;;  %v9058_v3 = vld [vmem:[#allocation44_spill] sm:$0xff]  ;;  %v9059_v38 = vld [vmem:[#allocation102_spill] sm:$0xff] }
 0x315   : > { %v3254_v56 = vadd.f32 %v3253_v29, %v3252_v5  ;;  %4065 = vtanh.f32 %v3129_v49  ;;  %v7945_v45 = vmul.f32 %v3186_v50, %v9057_v13  ;;  %v3255_v25 = vsel %vm381_vm0, %v7930_v57, 0.0  ;;  %v9060_v5 = vld [vmem:[#allocation124_spill] sm:$0xff] }
 0x316   : > { %v3132_v55 = vmul.f32 0.7978846, %v3100_v20  ;;  %4067 = vtanh.f32 %v3130_v33  ;;  %v3189_v63 = vadd.f32 1.0, %v4058_v37  ;;  %v4062_v18 = vpop.eup %4061  ;;  %v3190_v52 = vadd.f32 1.0, %v4060_v1 }
 0x317   : > { %v3256_v15 = vadd.f32 %v3255_v25, %v3254_v56  ;;  %v7950_v42 = vmul.f32 %v3187_v24, %v9058_v3  ;;  %v7953_v27 = vmul.f32 %v3188_v39, %v9059_v38  ;;  %v3257_v23 = vsel %vm381_vm0, %v7936_v43, 0.0 }
 0x318   : > { %v4064_v17 = vpop.eup %4063  ;;  %v3074_v58 = vmul.f32 %v7843_v46, %v9041_v16  ;;  %v3103_v49 = vadd.f32 %v3071_v19, %v9038_v28  ;;  %v3104_v53 = vadd.f32 %v3072_v62, %v9039_v54  ;;  %v3133_v8 = vmul.f32 0.7978846, %v3101_v31  ;;  %v9061_v46 = vld [vmem:[#allocation128_spill] sm:$0xff] }
 0x319   : > { %v3258_v50 = vadd.f32 %v3257_v23, %v3256_v15  ;;  %v3134_v51 = vmul.f32 0.7978846, %v3102_v11  ;;  %4069 = vtanh.f32 %v3131_v32  ;;  %v3259_v20 = vsel %vm381_vm0, %v7945_v45, 0.0  ;;  %v9062_v15 = vld [vmem:[#allocation122_spill] sm:$0xff] }
 0x31a   : > { %4071 = vtanh.f32 %v3132_v55  ;;  %v3191_v33 = vadd.f32 1.0, %v4062_v18  ;;  %v7964_v37 = vmul.f32 %v3189_v63, %v9060_v5  ;;  %v3192_v7 = vadd.f32 1.0, %v4064_v17  ;;  %v9064_v5 = vld [vmem:[#allocation129_spill] sm:$0xff] }
 0x31b   : > { %v3260_v24 = vadd.f32 %v3259_v20, %v3258_v50  ;;  %v4066_v39 = vpop.eup %4065  ;;  %v7967_v29 = vmul.f32 %v3190_v52, %v9061_v46  ;;  %v3261_v19 = vsel %vm381_vm0, %v7950_v42, 0.0  ;;  %v3263_v62 = vsel %vm381_vm0, %v7953_v27, 0.0 }
 0x31c   : > { %v4068_v1 = vpop.eup %4067  ;;  %v3075_v31 = vmul.f32 %v7846_v14, %v9042_v0  ;;  %v3076_v11 = vmul.f32 %v7851_v48, %v9043_v35  ;;  %v3105_v56 = vadd.f32 %v3073_v36, %v9040_v41  ;;  %v3106_v13 = vadd.f32 %v3074_v58, %v9041_v16  ;;  %v9063_v14 = vld [vmem:[#allocation127_spill] sm:$0xff] }
 0x31d   : > { %v3262_v32 = vadd.f32 %v3261_v19, %v3260_v24  ;;  %v3135_v25 = vmul.f32 0.7978846, %v3103_v49  ;;  %v3136_v55 = vmul.f32 0.7978846, %v3104_v53  ;;  %4073 = vtanh.f32 %v3133_v8 }
 0x31e   : > { %4075 = vtanh.f32 %v3134_v51  ;;  %v3193_v63 = vadd.f32 1.0, %v4066_v39  ;;  %v7980_v18 = vmul.f32 %v3191_v33, %v9062_v15  ;;  %v3194_v38 = vadd.f32 1.0, %v4068_v1  ;;  %v9066_v15 = vld [vmem:[#allocation126_spill] sm:$0xff] }
 0x31f   : > { %v3264_v52 = vadd.f32 %v3263_v62, %v3262_v32  ;;  %v4070_v3 = vpop.eup %4069  ;;  %v7983_v23 = vmul.f32 %v3192_v7, %v9063_v14  ;;  %v3265_v48 = vsel %vm381_vm0, %v7964_v37, 0.0  ;;  %v3267_v36 = vsel %vm381_vm0, %v7967_v29, 0.0 }
 0x320   : > { %v4072_v17 = vpop.eup %4071  ;;  %v3077_v58 = vmul.f32 %v7856_v22, %v9044_v12  ;;  %v3078_v49 = vmul.f32 %v7860_v34, %v9045_v47  ;;  %v3107_v53 = vadd.f32 %v3075_v31, %v9042_v0  ;;  %v3108_v8 = vadd.f32 %v3076_v11, %v9043_v35  ;;  %v9065_v22 = vld [vmem:[#allocation125_spill] sm:$0xff] }
 0x321   : > { %v3266_v50 = vadd.f32 %v3265_v48, %v3264_v52  ;;  %v3137_v51 = vmul.f32 0.7978846, %v3105_v56  ;;  %v3138_v20 = vmul.f32 0.7978846, %v3106_v13  ;;  %4077 = vtanh.f32 %v3135_v25 }
 0x322   : > { %4079 = vtanh.f32 %v3136_v55  ;;  %v3195_v33 = vadd.f32 1.0, %v4070_v3  ;;  %v7996_v24 = vmul.f32 %v3193_v63, %v9064_v5  ;;  %v3196_v46 = vadd.f32 1.0, %v4072_v17 }
 0x323   : > { %v3268_v39 = vadd.f32 %v3267_v36, %v3266_v50  ;;  %v4074_v7 = vpop.eup %4073  ;;  %v7999_v19 = vmul.f32 %v3194_v38, %v9065_v22  ;;  %v3269_v34 = vsel %vm381_vm0, %v7980_v18, 0.0  ;;  %v3271_v62 = vsel %vm381_vm0, %v7983_v23, 0.0 }
 0x324   : > { %v4076_v1 = vpop.eup %4075  ;;  %v2972_v31 = vmul.f32 0.5, %v7657_v44  ;;  %v3079_v11 = vmul.f32 %v7863_v9, %v9046_v30  ;;  %v3139_v56 = vmul.f32 0.7978846, %v3107_v53  ;;  %v3109_v13 = vadd.f32 %v3077_v58, %v9044_v12 }
 0x325   : > { %v3270_v32 = vadd.f32 %v3269_v34, %v3268_v39  ;;  %v3110_v25 = vadd.f32 %v3078_v49, %v9045_v47  ;;  %v3140_v55 = vmul.f32 0.7978846, %v3108_v8  ;;  %4081 = vtanh.f32 %v3137_v51 }
 0x326   : > { %4083 = vtanh.f32 %v3138_v20  ;;  %v3197_v63 = vadd.f32 1.0, %v4074_v7  ;;  %v8011_v52 = vmul.f32 %v3195_v33, %v9066_v15  ;;  %v3198_v14 = vadd.f32 1.0, %v4076_v1 }
 0x327   : > { %v3272_v3 = vadd.f32 %v3271_v62, %v3270_v32  ;;  %v4078_v38 = vpop.eup %4077  ;;  %v8013_v44 = vmul.f32 %v3196_v46, %v2972_v31  ;;  %v3273_v9 = vsel %vm381_vm0, %v7996_v24, 0.0  ;;  %v3275_v48 = vsel %vm381_vm0, %v7999_v19, 0.0 }
 0x328   : > { %v4080_v36 = vpop.eup %4079  ;;  %v2973_v17 = vmul.f32 0.5, %v7660_v61  ;;  %4085 = vtanh.f32 %v3139_v56  ;;  %v2974_v49 = vmul.f32 0.5, %v9037_v40  ;;  %v3111_v53 = vadd.f32 %v3079_v11, %v9046_v30 }
 0x329   : > { %v3274_v58 = vadd.f32 %v3273_v9, %v3272_v3  ;;  %v3141_v50 = vmul.f32 0.7978846, %v3109_v13  ;;  %4087 = vtanh.f32 %v3140_v55  ;;  %v3142_v8 = vmul.f32 0.7978846, %v3110_v25 }
 0x32a   : > { %v3199_v51 = vadd.f32 1.0, %v4078_v38  ;;  %v8022_v20 = vmul.f32 %v3197_v63, %v2973_v17  ;;  %v3200_v39 = vadd.f32 1.0, %v4080_v36  ;;  %v8024_v7 = vmul.f32 %v3198_v14, %v2974_v49 }
 0x32b   : > { %v3276_v33 = vadd.f32 %v3275_v48, %v3274_v58  ;;  %v4082_v5 = vpop.eup %4081  ;;  %v3277_v61 = vsel %vm381_vm0, %v8011_v52, 0.0  ;;  %v3279_v46 = vsel %vm381_vm0, %v8013_v44, 0.0  ;;  %v2975_v22 = vmul.f32 0.5, %v9038_v28 }
 0x32c   : > { %v4084_v40 = vpop.eup %4083  ;;  %v2976_v62 = vmul.f32 0.5, %v9039_v54  ;;  %v3143_v1 = vmul.f32 0.7978846, %v3111_v53  ;;  %4089 = vtanh.f32 %v3141_v50  ;;  %v3201_v11 = vadd.f32 1.0, %v4082_v5 }
 0x32d   : > { %v3278_v34 = vadd.f32 %v3277_v61, %v3276_v33  ;;  %4091 = vtanh.f32 %v3142_v8  ;;  %v8032_v56 = vmul.f32 %v3199_v51, %v2975_v22  ;;  %v3202_v25 = vadd.f32 1.0, %v4084_v40 }
 0x32e   : > { %v4086_v31 = vpop.eup %4085  ;;  %v8034_v55 = vmul.f32 %v3200_v39, %v2976_v62  ;;  %v3281_v63 = vsel %vm381_vm0, %v8022_v20, 0.0  ;;  %v3283_v28 = vsel %vm381_vm0, %v8024_v7, 0.0  ;;  %v2977_v54 = vmul.f32 0.5, %v9040_v41 }
 0x32f   : > { %v3280_v32 = vadd.f32 %v3279_v46, %v3278_v34  ;;  %v4088_v13 = vpop.eup %4087  ;;  %v2978_v3 = vmul.f32 0.5, %v9041_v16  ;;  %4093 = vtanh.f32 %v3143_v1  ;;  %v3203_v38 = vadd.f32 1.0, %v4086_v31 }
 0x330   : > { %v3204_v14 = vadd.f32 1.0, %v4088_v13  ;;  %v8042_v9 = vmul.f32 %v3201_v11, %v2977_v54  ;;  %v3285_v58 = vsel %vm381_vm0, %v8032_v56, 0.0  ;;  %v3287_v49 = vsel %vm381_vm0, %v8034_v55, 0.0 }
 0x331   : > { %v3282_v15 = vadd.f32 %v3281_v63, %v3280_v32  ;;  %v8044_v17 = vmul.f32 %v3202_v25, %v2978_v3  ;;  %v2979_v41 = vmul.f32 0.5, %v9042_v0  ;;  %v2980_v16 = vmul.f32 0.5, %v9043_v35 }
 0x332   : > { %v4090_v36 = vpop.eup %4089  ;;  %v4268_v5 = vmov 256.0   ;;  %v3289_v40 = vsel %vm381_vm0, %v8042_v9, 0.0  ;;  %v2981_v34 = vmul.f32 0.5, %v9044_v12  ;;  %v2982_v35 = vmul.f32 0.5, %v9045_v47 }
 0x333   : > { %v3284_v48 = vadd.f32 %v3283_v28, %v3282_v15  ;;  %v4092_v53 = vpop.eup %4091  ;;  %v3205_v8 = vadd.f32 1.0, %v4090_v36  ;;  %v8052_v51 = vmul.f32 %v3203_v38, %v2979_v41  ;;  %4095 = vrcp.f32 %v4268_v5 }
 0x334   : > { %v3206_v61 = vadd.f32 1.0, %v4092_v53  ;;  %v8054_v46 = vmul.f32 %v3204_v14, %v2980_v16  ;;  %v3291_v22 = vsel %vm381_vm0, %v8044_v17, 0.0  ;;  %v2983_v28 = vmul.f32 0.5, %v9046_v30 }
 0x335   : > { %v3286_v50 = vadd.f32 %v3285_v58, %v3284_v48  ;;  %v4094_v39 = vpop.eup %4093  ;;  %v8062_v31 = vmul.f32 %v3205_v8, %v2981_v34  ;;  %v3293_v32 = vsel %vm381_vm0, %v8052_v51, 0.0 }
 0x336   : > { %v3207_v62 = vadd.f32 1.0, %v4094_v39  ;;  %v8064_v11 = vmul.f32 %v3206_v61, %v2982_v35  ;;  %v3295_v13 = vsel %vm381_vm0, %v8054_v46, 0.0 }
 0x337   : > { %v3288_v33 = vadd.f32 %v3287_v49, %v3286_v50  ;;  %v3297_v47 = vsel %vm381_vm0, %v8062_v31, 0.0 }
 0x338   : > { %v8071_v12 = vmul.f32 %v3207_v62, %v2983_v28  ;;  %v3299_v15 = vsel %vm381_vm0, %v8064_v11, 0.0 }
 0x339   : > { %v3290_v0 = vadd.f32 %v3289_v40, %v3288_v33  ;;  %v4096_v25 = vpop.eup %4095  ;;  %v3352_v40 = vld [vmem:[%s8273_s5] sm:$0xf] }
 0x33a   : > { %v3310_v3 = vmul.f32 256.0, %v4096_v25  ;;  %v3301_v48 = vsel %vm381_vm0, %v8071_v12, 0.0  ;;  %vm3314_vm6 = vweird.f32 %v4096_v25 }
 0x33b   : > { %v3292_v1 = vadd.f32 %v3291_v22, %v3290_v0  ;;  %v3359_v22 = vsel %vm3357_vm7, %v3352_v40, 0 }
 0x33c   : > { %v3311_v36 = vsub.f32 1.0, %v3310_v3  ;;  %3368 = vmatpush.bf16.msrb.mxu1 %v3359_v22 }
 0x33d   : > { %v3294_v63 = vadd.f32 %v3293_v32, %v3292_v1 }
 0x33e   : > { %v3312_v53 = vmul.f32 %v4096_v25, %v3311_v36 }
 0x33f   : > { %v3296_v54 = vadd.f32 %v3295_v13, %v3294_v63 }
 0x340   : > { %v3313_v50 = vadd.f32 %v4096_v25, %v3312_v53 }
 0x341   : > { %v3298_v38 = vadd.f32 %v3297_v47, %v3296_v54 }
 0x342   : > { %v3315_v33 = vsel %vm3314_vm6, %v4096_v25, %v3313_v50 }
 0x343   : > { %v3300_v14 = vadd.f32 %v3299_v15, %v3298_v38  ;;  %v3812_v15 = vld [vmem:[%s8274_s6] sm:$0xff] }
 0x344   : > { %3490 = vmatpush.bf16.msra.mxu0 %v3812_v15  ;;  %3894 = vmatpush.bf16.msra.mxu2 %v3812_v15 }
 0x345   : > { %v3302_v58 = vadd.f32 %v3301_v48, %v3300_v14  ;;  %3895 = vmatpush.bf16.msra.mxu3 %v3812_v15 }
 0x347   : > { %v3303_v49 = vrot.slane %v3302_v58, 4 }
 0x349   : > { %v3304_v30 = vadd.f32 %v3303_v49, %v3302_v58 }
 0x34b   : > { %v3305_v41 = vrot.slane %v3304_v30, 2 }
 0x34d   : > { %v3306_v16 = vadd.f32 %v3305_v41, %v3304_v30 }
 0x34f   : > { %v3307_v8 = vrot.slane %v3306_v16, 1 }
 0x351   : > { %v3308_v5 = vadd.f32 %v3307_v8, %v3306_v16 }
 0x353   : > { %v3316_v39 = vmul.f32 %v3315_v33, %v3308_v5 }
 0x355   : > { %v3317_v61 = vpack.c.bf16 %v3316_v39, %v3316_v39 }
 0x357   : > { %3783 = vmatmul.msk.bf16.vlgmr.msra.gmra.mxu1 %vm381_vm0, %v3317_v61 }
 0x358   : > { %3893 = vmatpush.bf16.msra.mxu1 %v3812_v15  ;;  %v9068_v15 = vld [vmem:[#allocation49_spill] sm:$0xff] }
 0x3d4   : > { %v3338_v0 = vpop.f32.mrf.mxu1 }
 0x3d5   : > { %v3343_v34 = vmul.f32 0.044715, %v3338_v0  ;;  %v3342_v63 = vmul.f32 0.5, %v3338_v0 }
 0x3d7   : > { %v3344_v35 = vmul.f32 %v3343_v34, %v3338_v0 }
 0x3d9   : > { %v3345_v62 = vmul.f32 %v3344_v35, %v3338_v0 }
 0x3db   : > { %v3346_v1 = vadd.f32 %v3345_v62, %v3338_v0 }
 0x3dc   : > { %v3340_v32 = vpop.f32.mrf.mxu1 }
 0x3dd   : > { %v3347_v13 = vmul.f32 0.7978846, %v3346_v1 }
 0x3df   : > { %4097 = vtanh.f32 %v3347_v13 }
 0x3e5   : > { %v4098_v25 = vpop.eup %4097 }
 0x3e6   : > { %v3349_v28 = vadd.f32 1.0, %v4098_v25 }
 0x3e8   : > { %v3350_v54 = vmul.f32 %v3349_v28, %v3342_v63 }
 0x3ea   : > { %v3351_v47 = vpack.c.bf16 %v3350_v54, %v3350_v54  ;;  %v9067_v54 = vld [vmem:[#allocation34_spill] sm:$0xff] }
 0x3ec   : > { %3784 = vmatmul.msk.bf16.vlgmr.msrb.gmra.mxu1 %vm3353_vm8, %v3351_v47 }
 0x469   : > { %v3370_v3 = vpop.f32.mrf.mxu1 }
 0x46a   : > { %v3374_v38 = vmul.f32 0.5, %v3370_v3 }
 0x46c   : > { %4099 = vtanh.f32 %v3374_v38 }
 0x471   : > { %v3372_v14 = vpop.f32.mrf.mxu1 }
 0x472   : > { %v4100_v48 = vpop.eup %4099 }
 0x473   : > { %v3376_v36 = vadd.f32 1.0, %v4100_v48  ;;  %v9070_v48 = vld [vmem:[#allocation22_spill] sm:$0xff] }
 0x475   : > { %v3377_v58 = vmul.f32 0.5, %v3376_v36 }
 0x477   : > { %v3378_v49 = vperm.slane %v3377_v58, 0 }
 0x479   : > { %v3379_v53 = vmul.f32 %v3378_v49, %v7876_v60  ;;  %v3380_v30 = vmul.f32 %v3378_v49, %v7879_v4  ;;  %v3387_v41 = vmul.f32 %v3378_v49, %v7930_v57  ;;  %v3388_v50 = vmul.f32 %v3378_v49, %v7936_v43 }
 0x47a   : > { %v3391_v16 = vmul.f32 %v3378_v49, %v7953_v27  ;;  %v3392_v8 = vmul.f32 %v3378_v49, %v7964_v37  ;;  %v3401_v33 = vmul.f32 %v3378_v49, %v8024_v7  ;;  %v3402_v5 = vmul.f32 %v3378_v49, %v8032_v56 }
 0x47b   : > { %v3411_v39 = vpack.c.bf16 %v3380_v30, %v3379_v53  ;;  %v3415_v61 = vpack.c.bf16 %v3388_v50, %v3387_v41  ;;  %v3381_v60 = vmul.f32 %v3378_v49, %v7884_v59  ;;  %v3382_v4 = vmul.f32 %v3378_v49, %v7892_v10  ;;  %v9071_v53 = vld [vmem:[#allocation36_spill] sm:$0xff]  ;;  %v9072_v41 = vld [vmem:[#allocation58_spill] sm:$0xff] }
 0x47c   : > { %v3417_v40 = vpack.c.bf16 %v3392_v8, %v3391_v16  ;;  %v3422_v22 = vpack.c.bf16 %v3402_v5, %v3401_v33  ;;  %v3389_v57 = vmul.f32 %v3378_v49, %v7945_v45  ;;  %v3390_v43 = vmul.f32 %v3378_v49, %v7950_v42 }
 0x47d   : > { %3789 = vmatmul.msk.bf16.vlgmr.msra.gmra.mxu0 %vm381_vm0, %v3411_v39  ;;  %3793 = vmatmul.msk.bf16.vlgmr.msra.gmra.mxu1 %vm381_vm0, %v3415_v61  ;;  %v3393_v27 = vmul.f32 %v3378_v49, %v7967_v29  ;;  %v3394_v37 = vmul.f32 %v3378_v49, %v7980_v18  ;;  %v3403_v7 = vmul.f32 %v3378_v49, %v8034_v55 }
 0x47e   : > { %3795 = vmatmul.msk.bf16.vlgmr.msra.gmra.mxu2 %vm381_vm0, %v3417_v40  ;;  %3800 = vmatmul.msk.bf16.vlgmr.msra.gmra.mxu3 %vm381_vm0, %v3422_v22  ;;  %v3404_v56 = vmul.f32 %v3378_v49, %v8042_v9  ;;  %v3412_v0 = vpack.c.bf16 %v3382_v4, %v3381_v60  ;;  %v3416_v34 = vpack.c.bf16 %v3390_v43, %v3389_v57  ;;  %v9073_v40 = vld [vmem:[#allocation12_spill] sm:$0xff] }
 0x47f   : > { %v3418_v35 = vpack.c.bf16 %v3394_v37, %v3393_v27  ;;  %v3383_v59 = vmul.f32 %v3378_v49, %v7898_v26  ;;  %v3384_v10 = vmul.f32 %v3378_v49, %v7906_v2  ;;  %v3395_v45 = vmul.f32 %v3378_v49, %v7983_v23  ;;  %v9074_v60 = vld [vmem:[#allocation28_spill] sm:$0xff] }
 0x480   : > { %v3423_v62 = vpack.c.bf16 %v3404_v56, %v3403_v7  ;;  %v3396_v42 = vmul.f32 %v3378_v49, %v7996_v24  ;;  %v3405_v29 = vmul.f32 %v3378_v49, %v8044_v17  ;;  %v3406_v18 = vmul.f32 %v3378_v49, %v8052_v51  ;;  %v9075_v27 = vld [vmem:[#allocation40_spill] sm:$0xff]  ;;  %v9076_v7 = vld [vmem:[#allocation59_spill] sm:$0xff] }
 0x481   : > { %v3413_v55 = vpack.c.bf16 %v3384_v10, %v3383_v59  ;;  %v3385_v26 = vmul.f32 %v3378_v49, %v7914_v21  ;;  %v3386_v2 = vmul.f32 %v3378_v49, %v7922_v6  ;;  %v3397_v23 = vmul.f32 %v3378_v49, %v7999_v19 }
 0x482   : > { %v3419_v9 = vpack.c.bf16 %v3396_v42, %v3395_v45  ;;  %v3424_v1 = vpack.c.bf16 %v3406_v18, %v3405_v29  ;;  %v3398_v24 = vmul.f32 %v3378_v49, %v8011_v52  ;;  %v3407_v17 = vmul.f32 %v3378_v49, %v8054_v46  ;;  %v9077_v45 = vld [vmem:[#allocation18_spill] sm:$0xff]  ;;  %v9078_v29 = vld [vmem:[#allocation91_spill] sm:$0xff] }
 0x483   : > { %v3408_v51 = vmul.f32 %v3378_v49, %v8062_v31  ;;  %v3414_v32 = vpack.c.bf16 %v3386_v2, %v3385_v26  ;;  %v3399_v21 = vmul.f32 %v3378_v49, %v8013_v44  ;;  %v3400_v6 = vmul.f32 %v3378_v49, %v8022_v20  ;;  %v9080_v2 = vld [vmem:[#allocation55_spill] sm:$0xff] }
 0x484   : > { %v3420_v13 = vpack.c.bf16 %v3398_v24, %v3397_v23  ;;  %v3409_v19 = vmul.f32 %v3378_v49, %v8064_v11  ;;  %v3410_v52 = vmul.f32 %v3378_v49, %v8071_v12  ;;  %v9069_v12 = vld [vmem:[#allocation48_spill] sm:$0xff] }
 0x485   : > { %v3425_v25 = vpack.c.bf16 %v3408_v51, %v3407_v17  ;;  %v3421_v46 = vpack.c.bf16 %v3400_v6, %v3399_v21  ;;  %v9081_v21 = vld [vmem:[#allocation16_spill] sm:$0xff] }
 0x486   : > { %v3426_v31 = vpack.c.bf16 %v3410_v52, %v3409_v19  ;;  %v9082_v19 = vld [vmem:[#allocation93_spill] sm:$0xff] }
 0x48d   : > { %3790 = vmatmul.msk.bf16.gmra.mxu0 %vm381_vm0, %v3412_v0  ;;  %3794 = vmatmul.msk.bf16.gmra.mxu1 %vm381_vm0, %v3416_v34 }
 0x48e   : > { %3796 = vmatmul.msk.bf16.gmra.mxu2 %vm381_vm0, %v3418_v35  ;;  %3801 = vmatmul.msk.bf16.gmra.mxu3 %vm381_vm0, %v3423_v62 }
 0x49d   : > { %3791 = vmatmul.msk.bf16.gmra.mxu0 %vm381_vm0, %v3413_v55 }
 0x49e   : > { %3797 = vmatmul.msk.bf16.gmra.mxu2 %vm381_vm0, %v3419_v9  ;;  %3802 = vmatmul.msk.bf16.gmra.mxu3 %vm381_vm0, %v3424_v1  ;;  %v9079_v1 = vld [vmem:[#allocation35_spill] sm:$0xff] }
 0x4ad   : > { %3792 = vmatmul.msk.bf16.gmra.mxu0 %vm381_vm0, %v3414_v32 }
 0x4ae   : > { %3798 = vmatmul.msk.bf16.gmra.mxu2 %vm381_vm0, %v3420_v13  ;;  %3803 = vmatmul.msk.bf16.gmra.mxu3 %vm381_vm0, %v3425_v25 }
 0x4be   : > { %3799 = vmatmul.msk.bf16.gmra.mxu2 %vm381_vm0, %v3421_v46  ;;  %3804 = vmatmul.msk.bf16.gmra.mxu3 %vm381_vm0, %v3426_v31  ;;  %v9083_v31 = vld [vmem:[#allocation38_spill] sm:$0xff] }
 0x4fa   : > { %v3492_v63 = vpop.f32.mrf.mxu0  ;;  %v3512_v28 = vpop.f32.mrf.mxu1 }
 0x4fb   : > { %v3572_v47 = vadd.f32 %v3492_v63, %v9067_v54  ;;  %v3580_v3 = vadd.f32 %v3512_v28, %v9068_v15 }
 0x4fd   : > { %v3604_v44 = vpack.c.bf16 %v3572_v47, %v3572_v47  ;;  %v3612_v38 = vpack.c.bf16 %v3580_v3, %v3580_v3 }
 0x4ff   : > { %3637 = vst.msk [vmem:[%s8138_s12] sm:$0xf] %vm3636_vm9, %v3604_v44  ;;  %v9084_v44 = vld [vmem:[#allocation90_spill] sm:$0xff] }
 0x500   : > { %3645 = vst.msk [vmem:[%s8138_s12 + $0x20] sm:$0xf] %vm3636_vm9, %v3612_v38 }
 0x501   : > { %v3522_v20 = vpop.f32.mrf.mxu2  ;;  %v3547_v11 = vpop.f32.mrf.mxu3 }
 0x502   : > { %v3584_v14 = vadd.f32 %v3522_v20, %v9069_v12  ;;  %v3594_v36 = vadd.f32 %v3547_v11, %v9070_v48  ;;  %v3494_v58 = vpop.f32.mrf.mxu0  ;;  %v3514_v49 = vpop.f32.mrf.mxu1  ;;  %v9085_v20 = vld [vmem:[#allocation32_spill] sm:$0xff] }
 0x503   : > { %v3573_v30 = vadd.f32 %v3494_v58, %v9071_v53  ;;  %v3581_v50 = vadd.f32 %v3514_v49, %v9072_v41  ;;  %v9087_v41 = vld [vmem:[#allocation21_spill] sm:$0xff] }
 0x504   : > { %v3616_v16 = vpack.c.bf16 %v3584_v14, %v3584_v14  ;;  %v3626_v8 = vpack.c.bf16 %v3594_v36, %v3594_v36  ;;  %v9086_v14 = vld [vmem:[#allocation37_spill] sm:$0xff] }
 0x505   : > { %v3605_v33 = vpack.c.bf16 %v3573_v30, %v3573_v30  ;;  %v3613_v5 = vpack.c.bf16 %v3581_v50, %v3581_v50 }
 0x506   : > { %3649 = vst.msk [vmem:[%s8138_s12 + $0x30] sm:$0xf] %vm3636_vm9, %v3616_v16  ;;  %v9088_v16 = vld [vmem:[#allocation29_spill] sm:$0xff] }
 0x507   : > { %3659 = vst.msk [vmem:[%s8138_s12 + $0x58] sm:$0xf] %vm3636_vm9, %v3626_v8 }
 0x508   : > { %3638 = vst.msk [vmem:[%s8138_s12 + $0x4] sm:$0xf] %vm3636_vm9, %v3605_v33 }
 0x509   : > { %3646 = vst.msk [vmem:[%s8138_s12 + $0x24] sm:$0xf] %vm3636_vm9, %v3613_v5  ;;  %v3524_v39 = vpop.f32.mrf.mxu2  ;;  %v3549_v61 = vpop.f32.mrf.mxu3  ;;  %v9089_v5 = vld [vmem:[#allocation45_spill] sm:$0xff] }
 0x50a   : > { %v3585_v22 = vadd.f32 %v3524_v39, %v9073_v40  ;;  %v3595_v4 = vadd.f32 %v3549_v61, %v9074_v60  ;;  %v3497_v57 = vpop.f32.mrf.mxu0  ;;  %v3517_v43 = vpop.f32.mrf.mxu1 }
 0x50b   : > { %v3574_v37 = vadd.f32 %v3497_v57, %v9075_v27  ;;  %v3582_v56 = vadd.f32 %v3517_v43, %v9076_v7  ;;  %v9090_v57 = vld [vmem:[#allocation20_spill] sm:$0xff]  ;;  %v9091_v27 = vld [vmem:[#allocation95_spill] sm:$0xff] }
 0x50c   : > { %v3617_v0 = vpack.c.bf16 %v3585_v22, %v3585_v22  ;;  %v3627_v34 = vpack.c.bf16 %v3595_v4, %v3595_v4 }
 0x50d   : > { %v3606_v35 = vpack.c.bf16 %v3574_v37, %v3574_v37  ;;  %v3614_v62 = vpack.c.bf16 %v3582_v56, %v3582_v56  ;;  %v9092_v56 = vld [vmem:[#allocation57_spill] sm:$0xff] }
 0x50e   : > { %3650 = vst.msk [vmem:[%s8138_s12 + $0x34] sm:$0xf] %vm3636_vm9, %v3617_v0 }
 0x50f   : > { %3660 = vst.msk [vmem:[%s8138_s12 + $0x5c] sm:$0xf] %vm3636_vm9, %v3627_v34 }
 0x510   : > { %3639 = vst.msk [vmem:[%s8138_s12 + $0x8] sm:$0xf] %vm3636_vm9, %v3606_v35 }
 0x511   : > { %3647 = vst.msk [vmem:[%s8138_s12 + $0x28] sm:$0xf] %vm3636_vm9, %v3614_v62  ;;  %v3527_v59 = vpop.f32.mrf.mxu2  ;;  %v3552_v10 = vpop.f32.mrf.mxu3 }
 0x512   : > { %v3586_v42 = vadd.f32 %v3527_v59, %v9077_v45  ;;  %v3596_v18 = vadd.f32 %v3552_v10, %v9078_v29  ;;  %v3499_v55 = vpop.f32.mrf.mxu0  ;;  %v3519_v9 = vpop.f32.mrf.mxu1  ;;  %v9093_v45 = vld [vmem:[#allocation19_spill] sm:$0xff] }
 0x513   : > { %v3575_v26 = vadd.f32 %v3499_v55, %v9079_v1  ;;  %v3583_v23 = vadd.f32 %v3519_v9, %v9080_v2  ;;  %v9094_v29 = vld [vmem:[#allocation99_spill] sm:$0xff]  ;;  %v9095_v2 = vld [vmem:[#allocation25_spill] sm:$0xff] }
 0x514   : > { %v3618_v24 = vpack.c.bf16 %v3586_v42, %v3586_v42  ;;  %v3628_v17 = vpack.c.bf16 %v3596_v18, %v3596_v18 }
 0x515   : > { %v3607_v51 = vpack.c.bf16 %v3575_v26, %v3575_v26  ;;  %v3615_v32 = vpack.c.bf16 %v3583_v23, %v3583_v23 }
 0x516   : > { %3651 = vst.msk [vmem:[%s8138_s12 + $0x38] sm:$0xf] %vm3636_vm9, %v3618_v24  ;;  %v9096_v24 = vld [vmem:[#allocation30_spill] sm:$0xff] }
 0x517   : > { %3661 = vst.msk [vmem:[%s8138_s12 + $0x60] sm:$0xf] %vm3636_vm9, %v3628_v17 }
 0x518   : > { %3640 = vst.msk [vmem:[%s8138_s12 + $0xc] sm:$0xf] %vm3636_vm9, %v3607_v51 }
 0x519   : > { %3648 = vst.msk [vmem:[%s8138_s12 + $0x2c] sm:$0xf] %vm3636_vm9, %v3615_v32  ;;  %v3529_v13 = vpop.f32.mrf.mxu2  ;;  %v3554_v25 = vpop.f32.mrf.mxu3 }
 0x51a   : > { %v3587_v6 = vadd.f32 %v3529_v13, %v9081_v21  ;;  %v3597_v52 = vadd.f32 %v3554_v25, %v9082_v19  ;;  %v3502_v46 = vpop.f32.mrf.mxu0  ;;  %v9097_v21 = vld [vmem:[#allocation23_spill] sm:$0xff]  ;;  %v9098_v19 = vld [vmem:[#allocation33_spill] sm:$0xff] }
 0x51b   : > { %v3576_v63 = vadd.f32 %v3502_v46, %v9083_v31 }
 0x51c   : > { %v3619_v28 = vpack.c.bf16 %v3587_v6, %v3587_v6  ;;  %v3629_v54 = vpack.c.bf16 %v3597_v52, %v3597_v52 }
 0x51d   : > { %v3608_v47 = vpack.c.bf16 %v3576_v63, %v3576_v63 }
 0x51e   : > { %3652 = vst.msk [vmem:[%s8138_s12 + $0x3c] sm:$0xf] %vm3636_vm9, %v3619_v28 }
 0x51f   : > { %3662 = vst.msk [vmem:[%s8138_s12 + $0x64] sm:$0xf] %vm3636_vm9, %v3629_v54 }
 0x520   : > { %3641 = vst.msk [vmem:[%s8138_s12 + $0x10] sm:$0xf] %vm3636_vm9, %v3608_v47 }
 0x521   : > { %v3532_v15 = vpop.f32.mrf.mxu2  ;;  %v3557_v3 = vpop.f32.mrf.mxu3 }
 0x522   : > { %v3588_v38 = vadd.f32 %v3532_v15, %v9084_v44  ;;  %v3598_v11 = vadd.f32 %v3557_v3, %v9085_v20  ;;  %v3504_v12 = vpop.f32.mrf.mxu0 }
 0x523   : > { %v3577_v48 = vadd.f32 %v3504_v12, %v9086_v14 }
 0x524   : > { %v3620_v36 = vpack.c.bf16 %v3588_v38, %v3588_v38  ;;  %v3630_v58 = vpack.c.bf16 %v3598_v11, %v3598_v11 }
 0x525   : > { %v3609_v49 = vpack.c.bf16 %v3577_v48, %v3577_v48 }
 0x526   : > { %3653 = vst.msk [vmem:[%s8138_s12 + $0x40] sm:$0xf] %vm3636_vm9, %v3620_v36 }
 0x527   : > { %3663 = vst.msk [vmem:[%s8138_s12 + $0x68] sm:$0xf] %vm3636_vm9, %v3630_v58 }
 0x528   : > { %3642 = vst.msk [vmem:[%s8138_s12 + $0x14] sm:$0xf] %vm3636_vm9, %v3609_v49 }
 0x529   : > { %v3534_v53 = vpop.f32.mrf.mxu2  ;;  %v3559_v30 = vpop.f32.mrf.mxu3 }
 0x52a   : > { %v3589_v50 = vadd.f32 %v3534_v53, %v9087_v41  ;;  %v3599_v8 = vadd.f32 %v3559_v30, %v9088_v16  ;;  %v3507_v33 = vpop.f32.mrf.mxu0 }
 0x52b   : > { %v3578_v39 = vadd.f32 %v3507_v33, %v9089_v5 }
 0x52c   : > { %v3621_v61 = vpack.c.bf16 %v3589_v50, %v3589_v50  ;;  %v3631_v40 = vpack.c.bf16 %v3599_v8, %v3599_v8 }
 0x52d   : > { %v3610_v22 = vpack.c.bf16 %v3578_v39, %v3578_v39 }
 0x52e   : > { %3654 = vst.msk [vmem:[%s8138_s12 + $0x44] sm:$0xf] %vm3636_vm9, %v3621_v61 }
 0x52f   : > { %3664 = vst.msk [vmem:[%s8138_s12 + $0x6c] sm:$0xf] %vm3636_vm9, %v3631_v40 }
 0x530   : > { %3643 = vst.msk [vmem:[%s8138_s12 + $0x18] sm:$0xf] %vm3636_vm9, %v3610_v22 }
 0x531   : > { %v3537_v60 = vpop.f32.mrf.mxu2  ;;  %v3562_v4 = vpop.f32.mrf.mxu3 }
 0x532   : > { %v3590_v43 = vadd.f32 %v3537_v60, %v9090_v57  ;;  %v3600_v37 = vadd.f32 %v3562_v4, %v9091_v27  ;;  %v3509_v7 = vpop.f32.mrf.mxu0 }
 0x533   : > { %v3579_v0 = vadd.f32 %v3509_v7, %v9092_v56 }
 0x534   : > { %v3622_v34 = vpack.c.bf16 %v3590_v43, %v3590_v43  ;;  %v3632_v35 = vpack.c.bf16 %v3600_v37, %v3600_v37 }
 0x535   : > { %v3611_v62 = vpack.c.bf16 %v3579_v0, %v3579_v0 }
 0x536   : > { %3655 = vst.msk [vmem:[%s8138_s12 + $0x48] sm:$0xf] %vm3636_vm9, %v3622_v34 }
 0x537   : > { %3665 = vst.msk [vmem:[%s8138_s12 + $0x70] sm:$0xf] %vm3636_vm9, %v3632_v35 }
 0x538   : > { %3644 = vst.msk [vmem:[%s8138_s12 + $0x1c] sm:$0xf] %vm3636_vm9, %v3611_v62 }
 0x539   : > { %v3539_v59 = vpop.f32.mrf.mxu2  ;;  %v3564_v10 = vpop.f32.mrf.mxu3 }
 0x53a   : > { %v3591_v42 = vadd.f32 %v3539_v59, %v9093_v45  ;;  %v3601_v18 = vadd.f32 %v3564_v10, %v9094_v29 }
 0x53c   : > { %v3623_v55 = vpack.c.bf16 %v3591_v42, %v3591_v42  ;;  %v3633_v9 = vpack.c.bf16 %v3601_v18, %v3601_v18 }
 0x53e   : > { %3656 = vst.msk [vmem:[%s8138_s12 + $0x4c] sm:$0xf] %vm3636_vm9, %v3623_v55 }
 0x53f   : > { %3666 = vst.msk [vmem:[%s8138_s12 + $0x74] sm:$0xf] %vm3636_vm9, %v3633_v9 }
 0x541   : > { %v3542_v1 = vpop.f32.mrf.mxu2  ;;  %v3567_v26 = vpop.f32.mrf.mxu3 }
 0x542   : > { %v3592_v23 = vadd.f32 %v3542_v1, %v9095_v2  ;;  %v3602_v17 = vadd.f32 %v3567_v26, %v9096_v24 }
 0x544   : > { %v3624_v51 = vpack.c.bf16 %v3592_v23, %v3592_v23  ;;  %v3634_v32 = vpack.c.bf16 %v3602_v17, %v3602_v17 }
 0x546   : > { %3657 = vst.msk [vmem:[%s8138_s12 + $0x50] sm:$0xf] %vm3636_vm9, %v3624_v51 }
 0x547   : > { %3667 = vst.msk [vmem:[%s8138_s12 + $0x78] sm:$0xf] %vm3636_vm9, %v3634_v32 }
 0x549   : > { %v3544_v13 = vpop.f32.mrf.mxu2  ;;  %v3569_v25 = vpop.f32.mrf.mxu3 }
 0x54a   : > { %v3593_v6 = vadd.f32 %v3544_v13, %v9097_v21  ;;  %v3603_v52 = vadd.f32 %v3569_v25, %v9098_v19 }
 0x54c   : > { %v3625_v46 = vpack.c.bf16 %v3593_v6, %v3593_v6  ;;  %v3635_v31 = vpack.c.bf16 %v3603_v52, %v3603_v52 }
 0x54e   : > { %3658 = vst.msk [vmem:[%s8138_s12 + $0x54] sm:$0xf] %vm3636_vm9, %v3625_v46 }
 0x54f   : > { %3668 = vst.msk [vmem:[%s8138_s12 + $0x7c] sm:$0xf] %vm3636_vm9, %v3635_v31 }
 0x550   : > { %4216 = shalt.err (!%p4213_p10)
}
 0x551   : > { %s4269_s23 = smov 64   ;;  %s4270_s12 = smov 4  }
 0x552   : > { %3902 = dma.vmem_to_hbm [thread:$0]  (%p4378_p7), %s3683_s18, 2048, %s3685_s9, %s3670_s28, %s4269_s23, %s4269_s23, %s4270_s12  }
 0x553 PF: > { %s3699_s19 = sand.u32 1, %s4247_s24   ;;  %p9099_p12 = scmp.ge.s32.totalorder %s4259_s27, 2 }
 0x554   : > { %s3700_s13 = scalar_lea.sflag [#allocation5], %s3699_s19 }
 0x555   : > { %p3913_p13 = pnand %p9099_p12, %p4346_p6 }
 0x557   : > { %p3914_p0 = pneg %p3913_p13 }
 0x559   : > { %4242 = dma.done.wait (%p3914_p0), %s3700_s13, 2048  }
 0x55a   : > { %4244 = vsyncadd (%p3914_p0), %s3700_s13, 4294965248  ;;  %p21_p3 = scmp.ge.s32.totalorder %s4364_s15, 4   ;;  %s9100_s24 = smov %s4251_s25 }
 0x55b   : > { %s9101_s25 = smov %s4255_s26  ;;  %s9102_s26 = smov %s4374_s20 }
 0x55c   : > { %s9103_s27 = smov %s4364_s15  ;;  %23 = sbr.rel (!%p21_p3) target bundleno = 8 (0x8), region = 98 }
 0x561   :  { %3706 = vsyncpa [#allocation4], 1 }
 0x562   :  { %3708 = vsyncpa [#allocation4 + $0x1], 1 }
 0x563   :  { %3709 = vsyncpa [#allocation7], 1 }
 0x564   :  { %3710 = vsyncpa [#allocation5], 1 }
 0x565   :  { %3712 = vsyncpa [#allocation5 + $0x1], 1 }

</bundles_post_ra>
